<compile_context>
chip_gen: v5e
topology: v5e:2x2
jax: 0.10.0
libtpu: 0.0.40
codegen_flags: <defaults>
</compile_context>

<pallas_src>
import functools

import jax
import jax.numpy as jnp
import numpy as np
from jax.experimental import pallas as pl
from jax.experimental.pallas import tpu as pltpu


# ----------------------------------------------------------------------------- #
# Pallas kernel
# ----------------------------------------------------------------------------- #
def seq_regressor_kernel(
    temporal_ref,   # (T*Bp, 8)  col 0 = x_t (fwd), col 1 = x_{T-1-t} (reversed), cols 2..7 = 0
    audio_ref,      # (Bp, 8)
    packs_ref,      # (8H+10, 8H) fused LSTM weights (g-gate lanes pre-scaled by 2)
    head_ref,       # (8+3H+4, H) MLP head weights
    out_ref,        # (Bp, 1)
    h0_scr,         # VMEM scratch (T*Bp, 2H)  layer-0 hidden states
    pre0_scr,       # VMEM scratch (T*Bp, 8H)  layer-0 input projections
    pre1a_scr,      # VMEM scratch (T*Bp, 8H)  layer-1 input projections (A term + bias)
    pre1b_scr,      # VMEM scratch (T*Bp, 8H)  layer-1 input projections (B term)
    *, T, Bp, H,
):
    H2 = 2 * H
    dotf = functools.partial(jnp.dot, preferred_element_type=jnp.float32)
    dot_hi = functools.partial(jnp.dot, preferred_element_type=jnp.float32,
                               precision=jax.lax.Precision.HIGHEST)

    # Row offsets inside the merged LSTM weight buffer.
    R_WHH0, R_WHH1, R_AW, R_BW = 0, H2, 2 * H2, 3 * H2
    R_WX0, R_B0, R_B1 = 4 * H2, 4 * H2 + 8, 4 * H2 + 9

    def fused_cell(gates, c):
        # gates: (Bp, 8H) layout [i_f i_b | f_f f_b | g_f g_b | o_f o_b]; c: (Bp, 2H)
        # Single EUP pass: g-gate pre-activations were pre-scaled by 2 host-side,
        # so tanh(z) == 2*sigmoid(2z) - 1.
        acts = jax.nn.sigmoid(gates)
        i = acts[:, 0 * H2:1 * H2]
        f = acts[:, 1 * H2:2 * H2]
        g = 2.0 * acts[:, 2 * H2:3 * H2] - 1.0
        o = acts[:, 3 * H2:4 * H2]
        c_new = f * c + i * g
        h_new = o * jnp.tanh(c_new)
        return h_new, c_new

    zeros = jnp.zeros((Bp, H2), jnp.float32)

    # ---------------- layer 0: fused bidirectional recurrence -----------------
    # Input projection batched over T, one MXU dot (K=8), straight to VMEM scratch.
    pre0_scr[...] = (dot_hi(temporal_ref[...], packs_ref[R_WX0:R_WX0 + 8, :])
                     + packs_ref[R_B0:R_B0 + 1, :])

    whh0 = packs_ref[R_WHH0:R_WHH0 + H2, :]            # (2H, 8H)
    h, c = zeros, zeros
    for t in range(T):                                  # T static & small -> unrolled
        gates = pre0_scr[t * Bp:(t + 1) * Bp, :] + dotf(h, whh0)
        h, c = fused_cell(gates, c)
        # h = [h_fwd(t) | h_bwd(T-1-t)]
        h0_scr[t * Bp:(t + 1) * Bp, :] = h

    # ---------------- layer 1: fused bidirectional recurrence -----------------
    h0_flat = h0_scr[...]                               # (T*Bp, 2H)
    pre1a_scr[...] = (dot_hi(h0_flat, packs_ref[R_AW:R_AW + H2, :])
                      + packs_ref[R_B1:R_B1 + 1, :])
    pre1b_scr[...] = dot_hi(h0_flat, packs_ref[R_BW:R_BW + H2, :])

    whh1 = packs_ref[R_WHH1:R_WHH1 + H2, :]             # (2H, 8H)
    h, c = zeros, zeros
    h1_bwd_last = None
    for t in range(T):
        gates = (pre1a_scr[t * Bp:(t + 1) * Bp, :]
                 + pre1b_scr[(T - 1 - t) * Bp:(T - t) * Bp, :]
                 + dotf(h, whh1))
        h, c = fused_cell(gates, c)
        if t == 0:
            # reverse-direction hidden at original time T-1 == first reverse step
            h1_bwd_last = h[:, H:H2]
    h1_fwd_last = h[:, 0:H]

    # ---------------- MLP head -------------------------------------------------
    # TODO(synk): dropout1/dropout2 are eval-mode identities (no RNG mask applied).
    w1   = head_ref[0:8, :]                          # (8, H)
    w2a  = head_ref[8 + 0 * H:8 + 1 * H, :]          # (H, H)   lstm fwd half
    w2b  = head_ref[8 + 1 * H:8 + 2 * H, :]          # (H, H)   lstm bwd half
    w2c  = head_ref[8 + 2 * H:8 + 3 * H, :]          # (H, H)   audio branch
    w3r  = head_ref[8 + 3 * H + 0:8 + 3 * H + 1, :]  # (1, H) = w3.T
    bfc1 = head_ref[8 + 3 * H + 1:8 + 3 * H + 2, :]
    bfc2 = head_ref[8 + 3 * H + 2:8 + 3 * H + 3, :]
    bfc3 = head_ref[8 + 3 * H + 3:8 + 3 * H + 4, 0:1]

    x = jnp.maximum(dotf(audio_ref[...], w1) + bfc1, 0.0)                  # (Bp, H)
    # fc2 on concat([h1_fwd, h1_bwd, x]) == sum of split matmuls (exact).
    y = dotf(h1_fwd_last, w2a) + dotf(h1_bwd_last, w2b) + dotf(x, w2c) + bfc2
    y = jnp.maximum(y, 0.0)                                                # (Bp, H)
    out_ref[...] = jnp.sum(y * w3r, axis=1, keepdims=True) + bfc3          # (Bp, 1)


# ----------------------------------------------------------------------------- #
# Host-side weight packing (fused gate layout, merged DMA buffers)
# ----------------------------------------------------------------------------- #
def _interleave_gates(af, ab, H):
    """(R,4H),(R,4H) -> (R,8H) with layout [i_f i_b | f_f f_b | g_f g_b | o_f o_b]."""
    parts = []
    for k in range(4):
        parts.append(af[:, k * H:(k + 1) * H])
        parts.append(ab[:, k * H:(k + 1) * H])
    return jnp.concatenate(parts, axis=1)


def pack_params(params, H):
    z1 = jnp.zeros((1, 4 * H), jnp.float32)
    zH = jnp.zeros((H, 4 * H), jnp.float32)
    z2H = jnp.zeros((2 * H, 4 * H), jnp.float32)

    # ---- layer 0 (fused bidirectional) ----
    whh0 = jnp.concatenate([_interleave_gates(params["whh0f"], zH, H),
                            _interleave_gates(zH, params["whh0b"], H)], axis=0)  # (2H, 8H)
    w0x_f = _interleave_gates(params["wih0f"], z1, H)                            # (1, 8H)
    w0x_b = _interleave_gates(z1, params["wih0b"], H)
    wx0 = jnp.concatenate([w0x_f, w0x_b,
                           jnp.zeros((6, 8 * H), jnp.float32)], axis=0)          # (8, 8H)
    b0 = _interleave_gates(params["b0f"], params["b0b"], H)                      # (1, 8H)

    # ---- layer 1 (fused bidirectional) ----
    whh1 = jnp.concatenate([_interleave_gates(params["whh1f"], zH, H),
                            _interleave_gates(zH, params["whh1b"], H)], axis=0)  # (2H, 8H)
    w1x_f = _interleave_gates(params["wih1f"], z2H, H)                           # (2H, 8H)
    w1x_b = _interleave_gates(z2H, params["wih1b"], H)
    # pre1(t) = h0_state(t) @ A + h0_state(T-1-t) @ B + b1
    a_w = jnp.concatenate([w1x_f[:H], w1x_b[H:]], axis=0)                        # (2H, 8H)
    b_w = jnp.concatenate([w1x_b[:H], w1x_f[H:]], axis=0)                        # (2H, 8H)
    b1 = _interleave_gates(params["b1f"], params["b1b"], H)                      # (1, 8H)

    # Merge all LSTM weights into one buffer (one DMA). Row layout matches the
    # R_* offsets in the kernel: whh0 | whh1 | a_w | b_w | wx0 | b0 | b1.
    packs = jnp.concatenate([whh0, whh1, a_w, b_w, wx0, b0, b1], axis=0)         # (8H+10, 8H)

    # EUP trick: pre-scale g-gate lanes [4H, 6H) by 2 so the kernel can use a
    # single sigmoid and recover tanh(x) = 2*sigmoid(2x) - 1.
    lane = jnp.arange(8 * H)
    g_scale = jnp.where((lane >= 4 * H) & (lane < 6 * H), 2.0, 1.0).astype(jnp.float32)
    packs = packs * g_scale[None, :]

    # ---- MLP head ----
    head = jnp.concatenate([
        params["w1"],                                   # rows 0:8
        params["w2"],                                   # rows 8:8+3H
        params["w3"].T,                                 # row  8+3H
        params["bfc1"],                                 # row  8+3H+1
        params["bfc2"],                                 # row  8+3H+2
        jnp.broadcast_to(params["bfc3"], (1, H)),       # row  8+3H+3
    ], axis=0)                                          # (8+3H+4, H)
    return packs, head


# ----------------------------------------------------------------------------- #
# Wrapper
# ----------------------------------------------------------------------------- #
def sequence_regressor_forward(temporal_BT1, audio_B18, params, *, H):
    """temporal_BT1: (B, T, 1) ; audio_B18: (B, 1, 8) -> (B, 1)."""
    B, T, _ = temporal_BT1.shape
    Bp = max(8, ((B + 7) // 8) * 8)          # pad batch to a full sublane group

    tm = jnp.transpose(temporal_BT1, (1, 0, 2)).astype(jnp.float32)   # (T, B, 1)
    tm = jnp.pad(tm, ((0, 0), (0, Bp - B), (0, 0)))                   # (T, Bp, 1)
    t2 = jnp.concatenate([tm, jnp.flip(tm, axis=0)], axis=-1)         # (T, Bp, 2)
    t8 = jnp.pad(t2, ((0, 0), (0, 0), (0, 6))).reshape(T * Bp, 8)     # (T*Bp, 8), K=8 dot

    audio = audio_B18.reshape(B, 8).astype(jnp.float32)
    audio = jnp.pad(audio, ((0, Bp - B), (0, 0)))                     # (Bp, 8)

    packs, head = pack_params(params, H)

    vmem = pl.BlockSpec(memory_space=pltpu.MemorySpace.VMEM)
    # TODO(synk): for large serving batches add a batch grid axis with
    # dimension_semantics=("parallel",) to use both v7x TensorCores.
    out = pl.pallas_call(
        functools.partial(seq_regressor_kernel, T=T, Bp=Bp, H=H),
        out_shape=jax.ShapeDtypeStruct((Bp, 1), jnp.float32),
        in_specs=[vmem] * 4,
        out_specs=vmem,
        scratch_shapes=[
            pltpu.VMEM((T * Bp, 2 * H), jnp.float32),   # h0 states
            pltpu.VMEM((T * Bp, 8 * H), jnp.float32),   # pre0
            pltpu.VMEM((T * Bp, 8 * H), jnp.float32),   # pre1a
            pltpu.VMEM((T * Bp, 8 * H), jnp.float32),   # pre1b
        ],
    )(t8, audio, packs, head)
    return out[:B]


# ----------------------------------------------------------------------------- #
# Deterministic parameter construction (shapes follow nn.LSTM / nn.Linear,
# weights pre-transposed to (in, out), gate order i,f,g,o, biases combined)
# ----------------------------------------------------------------------------- #
def init_params(key, H):
    k = 1.0 / np.sqrt(H)

    def u(key, shape):
        return jax.random.uniform(key, shape, jnp.float32, minval=-k, maxval=k)

    names_shapes = [
        ("wih0f", (1, 4 * H)), ("whh0f", (H, 4 * H)), ("b0f", (1, 4 * H)),
        ("wih0b", (1, 4 * H)), ("whh0b", (H, 4 * H)), ("b0b", (1, 4 * H)),
        ("wih1f", (2 * H, 4 * H)), ("whh1f", (H, 4 * H)), ("b1f", (1, 4 * H)),
        ("wih1b", (2 * H, 4 * H)), ("whh1b", (H, 4 * H)), ("b1b", (1, 4 * H)),
        ("w1", (8, H)), ("bfc1", (1, H)),
        ("w2", (3 * H, H)), ("bfc2", (1, H)),
        ("w3", (H, 1)), ("bfc3", (1, 1)),
    ]
    keys = jax.random.split(key, len(names_shapes))
    return {n: u(kk, s) for kk, (n, s) in zip(keys, names_shapes)}


# ----------------------------------------------------------------------------- #
# Pure-JAX reference (full bidirectional 2-layer LSTM, PyTorch semantics)
# ----------------------------------------------------------------------------- #
def reference_forward(temporal_BT1, audio_B18, params, *, H):
    B, T, _ = temporal_BT1.shape
    temporal = jnp.transpose(temporal_BT1, (1, 0, 2)).astype(jnp.float32)  # (T,B,1)
    audio = audio_B18.reshape(B, 8).astype(jnp.float32)

    def cell(x, h, c, wih, whh, b):
        gates = x @ wih + h @ whh + b
        i = jax.nn.sigmoid(gates[:, 0 * H:1 * H])
        f = jax.nn.sigmoid(gates[:, 1 * H:2 * H])
        g = jnp.tanh(gates[:, 2 * H:3 * H])
        o = jax.nn.sigmoid(gates[:, 3 * H:4 * H])
        c = f * c + i * g
        return o * jnp.tanh(c), c

    def run_dir(xs, wih, whh, b, reverse):
        h = jnp.zeros((B, H), jnp.float32)
        c = jnp.zeros((B, H), jnp.float32)
        order = range(T - 1, -1, -1) if reverse else range(T)
        out = [None] * T
        for t in order:
            h, c = cell(xs[t], h, c, wih, whh, b)
            out[t] = h
        return out

    xs = [temporal[t] for t in range(T)]
    f0 = run_dir(xs, params["wih0f"], params["whh0f"], params["b0f"], False)
    b0 = run_dir(xs, params["wih0b"], params["whh0b"], params["b0b"], True)
    xs1 = [jnp.concatenate([f0[t], b0[t]], axis=1) for t in range(T)]
    f1 = run_dir(xs1, params["wih1f"], params["whh1f"], params["b1f"], False)
    b1 = run_dir(xs1, params["wih1b"], params["whh1b"], params["b1b"], True)
    lstm_final = jnp.concatenate([f1[T - 1], b1[T - 1]], axis=1)            # (B,2H)

    x = jax.nn.relu(audio @ params["w1"] + params["bfc1"])
    cat = jnp.concatenate([lstm_final, x], axis=1)
    x = jax.nn.relu(cat @ params["w2"] + params["bfc2"])
    return x @ params["w3"] + params["bfc3"]


# ----------------------------------------------------------------------------- #
if __name__ == "__main__":
    B, T, H = 2, 8, 32

    key = jax.random.PRNGKey(0)
    k_t, k_a, k_p = jax.random.split(key, 3)

    temporal_features = jax.random.normal(k_t, (B, T, 1), jnp.float32)   # (B, seq, 1)
    audio_feature = jax.random.normal(k_a, (B, 1, 8), jnp.float32)       # (B, 1, 8)
    params = init_params(k_p, H)

    out = sequence_regressor_forward(temporal_features, audio_feature, params, H=H)
    out = jax.block_until_ready(out)

    ref = reference_forward(temporal_features, audio_feature, params, H=H)
    np.testing.assert_allclose(np.asarray(out), np.asarray(ref), rtol=2e-2, atol=2e-2)

    assert out.shape == (B, 1) and np.all(np.isfinite(np.asarray(out)))
    print("KERNEL_OK")
</pallas_src>

<mosaic_0001>
module attributes {stable_mosaic.version = 11 : i64} {
  func.func @seq_regressor_kernel(%arg0: memref<64x8xf32, #tpu.memory_space<vmem>>, %arg1: memref<8x8xf32, #tpu.memory_space<vmem>>, %arg2: memref<266x256xf32, #tpu.memory_space<vmem>>, %arg3: memref<108x32xf32, #tpu.memory_space<vmem>>, %arg4: memref<8x1xf32, #tpu.memory_space<vmem>>, %arg5: memref<64x64xf32, #tpu.memory_space<vmem>>, %arg6: memref<64x256xf32, #tpu.memory_space<vmem>>, %arg7: memref<64x256xf32, #tpu.memory_space<vmem>>, %arg8: memref<64x256xf32, #tpu.memory_space<vmem>>) attributes {dimension_semantics = [], scalar_prefetch = 0 : i64, scratch_operands = 4 : i64, tpu.core_type = #tpu.core_type<tc>} {
    %cst = arith.constant 0.000000e+00 : f32
    %0 = vector.broadcast %cst : f32 to vector<8x64xf32>
    %c0 = arith.constant 0 : index
    %c0_0 = arith.constant 0 : index
    %1 = vector.load %arg0[%c0, %c0_0] : memref<64x8xf32, #tpu.memory_space<vmem>>, vector<64x8xf32>
    %c256 = arith.constant 256 : index
    %c0_1 = arith.constant 0 : index
    %2 = vector.load %arg2[%c256, %c0_1] : memref<266x256xf32, #tpu.memory_space<vmem>>, vector<8x256xf32>
    %cst_2 = arith.constant dense<0.000000e+00> : vector<64x256xf32>
    %3 = tpu.matmul %1, %2, %cst_2 {dimension_numbers = #tpu.dot_dimension_numbers<[1], [0], [0], [1], [0, 0, 1, 1], [], []>, precision = #tpu.contract_precision<fp32>} : vector<64x8xf32>, vector<8x256xf32>, vector<64x256xf32> -> vector<64x256xf32>
    %c264 = arith.constant 264 : index
    %c0_3 = arith.constant 0 : index
    %4 = vector.load %arg2[%c264, %c0_3] : memref<266x256xf32, #tpu.memory_space<vmem>>, vector<1x256xf32>
    %5 = vector.broadcast %4 : vector<1x256xf32> to vector<64x256xf32>
    %6 = arith.addf %3, %5 : vector<64x256xf32>
    %c0_4 = arith.constant 0 : index
    %c0_5 = arith.constant 0 : index
    %7 = vector.load %arg6[%c0_4, %c0_5] : memref<64x256xf32, #tpu.memory_space<vmem>>, vector<64x256xf32>
    tpu.vector_store %arg6[%c0_4, %c0_5], %6 {strides = array<i32>} : memref<64x256xf32, #tpu.memory_space<vmem>>, vector<64x256xf32>,
    %c0_6 = arith.constant 0 : index
    %c0_7 = arith.constant 0 : index
    %8 = vector.load %arg2[%c0_6, %c0_7] : memref<266x256xf32, #tpu.memory_space<vmem>>, vector<64x256xf32>
    %c0_8 = arith.constant 0 : index
    %c0_9 = arith.constant 0 : index
    %9 = vector.load %arg6[%c0_8, %c0_9] : memref<64x256xf32, #tpu.memory_space<vmem>>, vector<8x256xf32>
    %cst_10 = arith.constant dense<0.000000e+00> : vector<8x256xf32>
    %10 = tpu.matmul %0, %8, %cst_10 {dimension_numbers = #tpu.dot_dimension_numbers<[1], [0], [0], [1], [0, 0, 1, 1], [], []>} : vector<8x64xf32>, vector<64x256xf32>, vector<8x256xf32> -> vector<8x256xf32>
    %11 = arith.addf %9, %10 : vector<8x256xf32>
    %12 = arith.negf %11 : vector<8x256xf32>
    %13 = math.exp %12 : vector<8x256xf32>
    %cst_11 = arith.constant 1.000000e+00 : f32
    %14 = vector.broadcast %cst_11 : f32 to vector<8x256xf32>
    %15 = arith.addf %14, %13 : vector<8x256xf32>
    %16 = arith.divf %14, %15 : vector<8x256xf32>
    %17 = vector.extract_strided_slice %16 {offsets = [0, 0], sizes = [8, 64], strides = [1, 1]} : vector<8x256xf32> to vector<8x64xf32>
    %18 = vector.extract_strided_slice %16 {offsets = [0, 64], sizes = [8, 64], strides = [1, 1]} : vector<8x256xf32> to vector<8x64xf32>
    %19 = vector.extract_strided_slice %16 {offsets = [0, 128], sizes = [8, 64], strides = [1, 1]} : vector<8x256xf32> to vector<8x64xf32>
    %cst_12 = arith.constant 2.000000e+00 : f32
    %20 = vector.broadcast %cst_12 : f32 to vector<8x64xf32>
    %21 = arith.mulf %20, %19 : vector<8x64xf32>
    %cst_13 = arith.constant 1.000000e+00 : f32
    %22 = vector.broadcast %cst_13 : f32 to vector<8x64xf32>
    %23 = arith.subf %21, %22 : vector<8x64xf32>
    %24 = vector.extract_strided_slice %16 {offsets = [0, 192], sizes = [8, 64], strides = [1, 1]} : vector<8x256xf32> to vector<8x64xf32>
    %25 = arith.mulf %18, %0 : vector<8x64xf32>
    %26 = arith.mulf %17, %23 : vector<8x64xf32>
    %27 = arith.addf %25, %26 : vector<8x64xf32>
    %28 = math.tanh %27 : vector<8x64xf32>
    %29 = arith.mulf %24, %28 : vector<8x64xf32>
    %c0_14 = arith.constant 0 : index
    %c0_15 = arith.constant 0 : index
    %30 = vector.load %arg5[%c0_14, %c0_15] : memref<64x64xf32, #tpu.memory_space<vmem>>, vector<8x64xf32>
    tpu.vector_store %arg5[%c0_14, %c0_15], %29 {strides = array<i32>} : memref<64x64xf32, #tpu.memory_space<vmem>>, vector<8x64xf32>,
    %c8 = arith.constant 8 : index
    %c0_16 = arith.constant 0 : index
    %31 = vector.load %arg6[%c8, %c0_16] : memref<64x256xf32, #tpu.memory_space<vmem>>, vector<8x256xf32>
    %cst_17 = arith.constant dense<0.000000e+00> : vector<8x256xf32>
    %32 = tpu.matmul %29, %8, %cst_17 {dimension_numbers = #tpu.dot_dimension_numbers<[1], [0], [0], [1], [0, 0, 1, 1], [], []>} : vector<8x64xf32>, vector<64x256xf32>, vector<8x256xf32> -> vector<8x256xf32>
    %33 = arith.addf %31, %32 : vector<8x256xf32>
    %34 = arith.negf %33 : vector<8x256xf32>
    %35 = math.exp %34 : vector<8x256xf32>
    %cst_18 = arith.constant 1.000000e+00 : f32
    %36 = vector.broadcast %cst_18 : f32 to vector<8x256xf32>
    %37 = arith.addf %36, %35 : vector<8x256xf32>
    %38 = arith.divf %36, %37 : vector<8x256xf32>
    %39 = vector.extract_strided_slice %38 {offsets = [0, 0], sizes = [8, 64], strides = [1, 1]} : vector<8x256xf32> to vector<8x64xf32>
    %40 = vector.extract_strided_slice %38 {offsets = [0, 64], sizes = [8, 64], strides = [1, 1]} : vector<8x256xf32> to vector<8x64xf32>
    %41 = vector.extract_strided_slice %38 {offsets = [0, 128], sizes = [8, 64], strides = [1, 1]} : vector<8x256xf32> to vector<8x64xf32>
    %cst_19 = arith.constant 2.000000e+00 : f32
    %42 = vector.broadcast %cst_19 : f32 to vector<8x64xf32>
    %43 = arith.mulf %42, %41 : vector<8x64xf32>
    %cst_20 = arith.constant 1.000000e+00 : f32
    %44 = vector.broadcast %cst_20 : f32 to vector<8x64xf32>
    %45 = arith.subf %43, %44 : vector<8x64xf32>
    %46 = vector.extract_strided_slice %38 {offsets = [0, 192], sizes = [8, 64], strides = [1, 1]} : vector<8x256xf32> to vector<8x64xf32>
    %47 = arith.mulf %40, %27 : vector<8x64xf32>
    %48 = arith.mulf %39, %45 : vector<8x64xf32>
    %49 = arith.addf %47, %48 : vector<8x64xf32>
    %50 = math.tanh %49 : vector<8x64xf32>
    %51 = arith.mulf %46, %50 : vector<8x64xf32>
    %c8_21 = arith.constant 8 : index
    %c0_22 = arith.constant 0 : index
    %52 = vector.load %arg5[%c8_21, %c0_22] : memref<64x64xf32, #tpu.memory_space<vmem>>, vector<8x64xf32>
    tpu.vector_store %arg5[%c8_21, %c0_22], %51 {strides = array<i32>} : memref<64x64xf32, #tpu.memory_space<vmem>>, vector<8x64xf32>,
    %c16 = arith.constant 16 : index
    %c0_23 = arith.constant 0 : index
    %53 = vector.load %arg6[%c16, %c0_23] : memref<64x256xf32, #tpu.memory_space<vmem>>, vector<8x256xf32>
    %cst_24 = arith.constant dense<0.000000e+00> : vector<8x256xf32>
    %54 = tpu.matmul %51, %8, %cst_24 {dimension_numbers = #tpu.dot_dimension_numbers<[1], [0], [0], [1], [0, 0, 1, 1], [], []>} : vector<8x64xf32>, vector<64x256xf32>, vector<8x256xf32> -> vector<8x256xf32>
    %55 = arith.addf %53, %54 : vector<8x256xf32>
    %56 = arith.negf %55 : vector<8x256xf32>
    %57 = math.exp %56 : vector<8x256xf32>
    %cst_25 = arith.constant 1.000000e+00 : f32
    %58 = vector.broadcast %cst_25 : f32 to vector<8x256xf32>
    %59 = arith.addf %58, %57 : vector<8x256xf32>
    %60 = arith.divf %58, %59 : vector<8x256xf32>
    %61 = vector.extract_strided_slice %60 {offsets = [0, 0], sizes = [8, 64], strides = [1, 1]} : vector<8x256xf32> to vector<8x64xf32>
    %62 = vector.extract_strided_slice %60 {offsets = [0, 64], sizes = [8, 64], strides = [1, 1]} : vector<8x256xf32> to vector<8x64xf32>
    %63 = vector.extract_strided_slice %60 {offsets = [0, 128], sizes = [8, 64], strides = [1, 1]} : vector<8x256xf32> to vector<8x64xf32>
    %cst_26 = arith.constant 2.000000e+00 : f32
    %64 = vector.broadcast %cst_26 : f32 to vector<8x64xf32>
    %65 = arith.mulf %64, %63 : vector<8x64xf32>
    %cst_27 = arith.constant 1.000000e+00 : f32
    %66 = vector.broadcast %cst_27 : f32 to vector<8x64xf32>
    %67 = arith.subf %65, %66 : vector<8x64xf32>
    %68 = vector.extract_strided_slice %60 {offsets = [0, 192], sizes = [8, 64], strides = [1, 1]} : vector<8x256xf32> to vector<8x64xf32>
    %69 = arith.mulf %62, %49 : vector<8x64xf32>
    %70 = arith.mulf %61, %67 : vector<8x64xf32>
    %71 = arith.addf %69, %70 : vector<8x64xf32>
    %72 = math.tanh %71 : vector<8x64xf32>
    %73 = arith.mulf %68, %72 : vector<8x64xf32>
    %c16_28 = arith.constant 16 : index
    %c0_29 = arith.constant 0 : index
    %74 = vector.load %arg5[%c16_28, %c0_29] : memref<64x64xf32, #tpu.memory_space<vmem>>, vector<8x64xf32>
    tpu.vector_store %arg5[%c16_28, %c0_29], %73 {strides = array<i32>} : memref<64x64xf32, #tpu.memory_space<vmem>>, vector<8x64xf32>,
    %c24 = arith.constant 24 : index
    %c0_30 = arith.constant 0 : index
    %75 = vector.load %arg6[%c24, %c0_30] : memref<64x256xf32, #tpu.memory_space<vmem>>, vector<8x256xf32>
    %cst_31 = arith.constant dense<0.000000e+00> : vector<8x256xf32>
    %76 = tpu.matmul %73, %8, %cst_31 {dimension_numbers = #tpu.dot_dimension_numbers<[1], [0], [0], [1], [0, 0, 1, 1], [], []>} : vector<8x64xf32>, vector<64x256xf32>, vector<8x256xf32> -> vector<8x256xf32>
    %77 = arith.addf %75, %76 : vector<8x256xf32>
    %78 = arith.negf %77 : vector<8x256xf32>
    %79 = math.exp %78 : vector<8x256xf32>
    %cst_32 = arith.constant 1.000000e+00 : f32
    %80 = vector.broadcast %cst_32 : f32 to vector<8x256xf32>
    %81 = arith.addf %80, %79 : vector<8x256xf32>
    %82 = arith.divf %80, %81 : vector<8x256xf32>
    %83 = vector.extract_strided_slice %82 {offsets = [0, 0], sizes = [8, 64], strides = [1, 1]} : vector<8x256xf32> to vector<8x64xf32>
    %84 = vector.extract_strided_slice %82 {offsets = [0, 64], sizes = [8, 64], strides = [1, 1]} : vector<8x256xf32> to vector<8x64xf32>
    %85 = vector.extract_strided_slice %82 {offsets = [0, 128], sizes = [8, 64], strides = [1, 1]} : vector<8x256xf32> to vector<8x64xf32>
    %cst_33 = arith.constant 2.000000e+00 : f32
    %86 = vector.broadcast %cst_33 : f32 to vector<8x64xf32>
    %87 = arith.mulf %86, %85 : vector<8x64xf32>
    %cst_34 = arith.constant 1.000000e+00 : f32
    %88 = vector.broadcast %cst_34 : f32 to vector<8x64xf32>
    %89 = arith.subf %87, %88 : vector<8x64xf32>
    %90 = vector.extract_strided_slice %82 {offsets = [0, 192], sizes = [8, 64], strides = [1, 1]} : vector<8x256xf32> to vector<8x64xf32>
    %91 = arith.mulf %84, %71 : vector<8x64xf32>
    %92 = arith.mulf %83, %89 : vector<8x64xf32>
    %93 = arith.addf %91, %92 : vector<8x64xf32>
    %94 = math.tanh %93 : vector<8x64xf32>
    %95 = arith.mulf %90, %94 : vector<8x64xf32>
    %c24_35 = arith.constant 24 : index
    %c0_36 = arith.constant 0 : index
    %96 = vector.load %arg5[%c24_35, %c0_36] : memref<64x64xf32, #tpu.memory_space<vmem>>, vector<8x64xf32>
    tpu.vector_store %arg5[%c24_35, %c0_36], %95 {strides = array<i32>} : memref<64x64xf32, #tpu.memory_space<vmem>>, vector<8x64xf32>,
    %c32 = arith.constant 32 : index
    %c0_37 = arith.constant 0 : index
    %97 = vector.load %arg6[%c32, %c0_37] : memref<64x256xf32, #tpu.memory_space<vmem>>, vector<8x256xf32>
    %cst_38 = arith.constant dense<0.000000e+00> : vector<8x256xf32>
    %98 = tpu.matmul %95, %8, %cst_38 {dimension_numbers = #tpu.dot_dimension_numbers<[1], [0], [0], [1], [0, 0, 1, 1], [], []>} : vector<8x64xf32>, vector<64x256xf32>, vector<8x256xf32> -> vector<8x256xf32>
    %99 = arith.addf %97, %98 : vector<8x256xf32>
    %100 = arith.negf %99 : vector<8x256xf32>
    %101 = math.exp %100 : vector<8x256xf32>
    %cst_39 = arith.constant 1.000000e+00 : f32
    %102 = vector.broadcast %cst_39 : f32 to vector<8x256xf32>
    %103 = arith.addf %102, %101 : vector<8x256xf32>
    %104 = arith.divf %102, %103 : vector<8x256xf32>
    %105 = vector.extract_strided_slice %104 {offsets = [0, 0], sizes = [8, 64], strides = [1, 1]} : vector<8x256xf32> to vector<8x64xf32>
    %106 = vector.extract_strided_slice %104 {offsets = [0, 64], sizes = [8, 64], strides = [1, 1]} : vector<8x256xf32> to vector<8x64xf32>
    %107 = vector.extract_strided_slice %104 {offsets = [0, 128], sizes = [8, 64], strides = [1, 1]} : vector<8x256xf32> to vector<8x64xf32>
    %cst_40 = arith.constant 2.000000e+00 : f32
    %108 = vector.broadcast %cst_40 : f32 to vector<8x64xf32>
    %109 = arith.mulf %108, %107 : vector<8x64xf32>
    %cst_41 = arith.constant 1.000000e+00 : f32
    %110 = vector.broadcast %cst_41 : f32 to vector<8x64xf32>
    %111 = arith.subf %109, %110 : vector<8x64xf32>
    %112 = vector.extract_strided_slice %104 {offsets = [0, 192], sizes = [8, 64], strides = [1, 1]} : vector<8x256xf32> to vector<8x64xf32>
    %113 = arith.mulf %106, %93 : vector<8x64xf32>
    %114 = arith.mulf %105, %111 : vector<8x64xf32>
    %115 = arith.addf %113, %114 : vector<8x64xf32>
    %116 = math.tanh %115 : vector<8x64xf32>
    %117 = arith.mulf %112, %116 : vector<8x64xf32>
    %c32_42 = arith.constant 32 : index
    %c0_43 = arith.constant 0 : index
    %118 = vector.load %arg5[%c32_42, %c0_43] : memref<64x64xf32, #tpu.memory_space<vmem>>, vector<8x64xf32>
    tpu.vector_store %arg5[%c32_42, %c0_43], %117 {strides = array<i32>} : memref<64x64xf32, #tpu.memory_space<vmem>>, vector<8x64xf32>,
    %c40 = arith.constant 40 : index
    %c0_44 = arith.constant 0 : index
    %119 = vector.load %arg6[%c40, %c0_44] : memref<64x256xf32, #tpu.memory_space<vmem>>, vector<8x256xf32>
    %cst_45 = arith.constant dense<0.000000e+00> : vector<8x256xf32>
    %120 = tpu.matmul %117, %8, %cst_45 {dimension_numbers = #tpu.dot_dimension_numbers<[1], [0], [0], [1], [0, 0, 1, 1], [], []>} : vector<8x64xf32>, vector<64x256xf32>, vector<8x256xf32> -> vector<8x256xf32>
    %121 = arith.addf %119, %120 : vector<8x256xf32>
    %122 = arith.negf %121 : vector<8x256xf32>
    %123 = math.exp %122 : vector<8x256xf32>
    %cst_46 = arith.constant 1.000000e+00 : f32
    %124 = vector.broadcast %cst_46 : f32 to vector<8x256xf32>
    %125 = arith.addf %124, %123 : vector<8x256xf32>
    %126 = arith.divf %124, %125 : vector<8x256xf32>
    %127 = vector.extract_strided_slice %126 {offsets = [0, 0], sizes = [8, 64], strides = [1, 1]} : vector<8x256xf32> to vector<8x64xf32>
    %128 = vector.extract_strided_slice %126 {offsets = [0, 64], sizes = [8, 64], strides = [1, 1]} : vector<8x256xf32> to vector<8x64xf32>
    %129 = vector.extract_strided_slice %126 {offsets = [0, 128], sizes = [8, 64], strides = [1, 1]} : vector<8x256xf32> to vector<8x64xf32>
    %cst_47 = arith.constant 2.000000e+00 : f32
    %130 = vector.broadcast %cst_47 : f32 to vector<8x64xf32>
    %131 = arith.mulf %130, %129 : vector<8x64xf32>
    %cst_48 = arith.constant 1.000000e+00 : f32
    %132 = vector.broadcast %cst_48 : f32 to vector<8x64xf32>
    %133 = arith.subf %131, %132 : vector<8x64xf32>
    %134 = vector.extract_strided_slice %126 {offsets = [0, 192], sizes = [8, 64], strides = [1, 1]} : vector<8x256xf32> to vector<8x64xf32>
    %135 = arith.mulf %128, %115 : vector<8x64xf32>
    %136 = arith.mulf %127, %133 : vector<8x64xf32>
    %137 = arith.addf %135, %136 : vector<8x64xf32>
    %138 = math.tanh %137 : vector<8x64xf32>
    %139 = arith.mulf %134, %138 : vector<8x64xf32>
    %c40_49 = arith.constant 40 : index
    %c0_50 = arith.constant 0 : index
    %140 = vector.load %arg5[%c40_49, %c0_50] : memref<64x64xf32, #tpu.memory_space<vmem>>, vector<8x64xf32>
    tpu.vector_store %arg5[%c40_49, %c0_50], %139 {strides = array<i32>} : memref<64x64xf32, #tpu.memory_space<vmem>>, vector<8x64xf32>,
    %c48 = arith.constant 48 : index
    %c0_51 = arith.constant 0 : index
    %141 = vector.load %arg6[%c48, %c0_51] : memref<64x256xf32, #tpu.memory_space<vmem>>, vector<8x256xf32>
    %cst_52 = arith.constant dense<0.000000e+00> : vector<8x256xf32>
    %142 = tpu.matmul %139, %8, %cst_52 {dimension_numbers = #tpu.dot_dimension_numbers<[1], [0], [0], [1], [0, 0, 1, 1], [], []>} : vector<8x64xf32>, vector<64x256xf32>, vector<8x256xf32> -> vector<8x256xf32>
    %143 = arith.addf %141, %142 : vector<8x256xf32>
    %144 = arith.negf %143 : vector<8x256xf32>
    %145 = math.exp %144 : vector<8x256xf32>
    %cst_53 = arith.constant 1.000000e+00 : f32
    %146 = vector.broadcast %cst_53 : f32 to vector<8x256xf32>
    %147 = arith.addf %146, %145 : vector<8x256xf32>
    %148 = arith.divf %146, %147 : vector<8x256xf32>
    %149 = vector.extract_strided_slice %148 {offsets = [0, 0], sizes = [8, 64], strides = [1, 1]} : vector<8x256xf32> to vector<8x64xf32>
    %150 = vector.extract_strided_slice %148 {offsets = [0, 64], sizes = [8, 64], strides = [1, 1]} : vector<8x256xf32> to vector<8x64xf32>
    %151 = vector.extract_strided_slice %148 {offsets = [0, 128], sizes = [8, 64], strides = [1, 1]} : vector<8x256xf32> to vector<8x64xf32>
    %cst_54 = arith.constant 2.000000e+00 : f32
    %152 = vector.broadcast %cst_54 : f32 to vector<8x64xf32>
    %153 = arith.mulf %152, %151 : vector<8x64xf32>
    %cst_55 = arith.constant 1.000000e+00 : f32
    %154 = vector.broadcast %cst_55 : f32 to vector<8x64xf32>
    %155 = arith.subf %153, %154 : vector<8x64xf32>
    %156 = vector.extract_strided_slice %148 {offsets = [0, 192], sizes = [8, 64], strides = [1, 1]} : vector<8x256xf32> to vector<8x64xf32>
    %157 = arith.mulf %150, %137 : vector<8x64xf32>
    %158 = arith.mulf %149, %155 : vector<8x64xf32>
    %159 = arith.addf %157, %158 : vector<8x64xf32>
    %160 = math.tanh %159 : vector<8x64xf32>
    %161 = arith.mulf %156, %160 : vector<8x64xf32>
    %c48_56 = arith.constant 48 : index
    %c0_57 = arith.constant 0 : index
    %162 = vector.load %arg5[%c48_56, %c0_57] : memref<64x64xf32, #tpu.memory_space<vmem>>, vector<8x64xf32>
    tpu.vector_store %arg5[%c48_56, %c0_57], %161 {strides = array<i32>} : memref<64x64xf32, #tpu.memory_space<vmem>>, vector<8x64xf32>,
    %c56 = arith.constant 56 : index
    %c0_58 = arith.constant 0 : index
    %163 = vector.load %arg6[%c56, %c0_58] : memref<64x256xf32, #tpu.memory_space<vmem>>, vector<8x256xf32>
    %cst_59 = arith.constant dense<0.000000e+00> : vector<8x256xf32>
    %164 = tpu.matmul %161, %8, %cst_59 {dimension_numbers = #tpu.dot_dimension_numbers<[1], [0], [0], [1], [0, 0, 1, 1], [], []>} : vector<8x64xf32>, vector<64x256xf32>, vector<8x256xf32> -> vector<8x256xf32>
    %165 = arith.addf %163, %164 : vector<8x256xf32>
    %166 = arith.negf %165 : vector<8x256xf32>
    %167 = math.exp %166 : vector<8x256xf32>
    %cst_60 = arith.constant 1.000000e+00 : f32
    %168 = vector.broadcast %cst_60 : f32 to vector<8x256xf32>
    %169 = arith.addf %168, %167 : vector<8x256xf32>
    %170 = arith.divf %168, %169 : vector<8x256xf32>
    %171 = vector.extract_strided_slice %170 {offsets = [0, 0], sizes = [8, 64], strides = [1, 1]} : vector<8x256xf32> to vector<8x64xf32>
    %172 = vector.extract_strided_slice %170 {offsets = [0, 64], sizes = [8, 64], strides = [1, 1]} : vector<8x256xf32> to vector<8x64xf32>
    %173 = vector.extract_strided_slice %170 {offsets = [0, 128], sizes = [8, 64], strides = [1, 1]} : vector<8x256xf32> to vector<8x64xf32>
    %cst_61 = arith.constant 2.000000e+00 : f32
    %174 = vector.broadcast %cst_61 : f32 to vector<8x64xf32>
    %175 = arith.mulf %174, %173 : vector<8x64xf32>
    %cst_62 = arith.constant 1.000000e+00 : f32
    %176 = vector.broadcast %cst_62 : f32 to vector<8x64xf32>
    %177 = arith.subf %175, %176 : vector<8x64xf32>
    %178 = vector.extract_strided_slice %170 {offsets = [0, 192], sizes = [8, 64], strides = [1, 1]} : vector<8x256xf32> to vector<8x64xf32>
    %179 = arith.mulf %172, %159 : vector<8x64xf32>
    %180 = arith.mulf %171, %177 : vector<8x64xf32>
    %181 = arith.addf %179, %180 : vector<8x64xf32>
    %182 = math.tanh %181 : vector<8x64xf32>
    %183 = arith.mulf %178, %182 : vector<8x64xf32>
    %c56_63 = arith.constant 56 : index
    %c0_64 = arith.constant 0 : index
    %184 = vector.load %arg5[%c56_63, %c0_64] : memref<64x64xf32, #tpu.memory_space<vmem>>, vector<8x64xf32>
    tpu.vector_store %arg5[%c56_63, %c0_64], %183 {strides = array<i32>} : memref<64x64xf32, #tpu.memory_space<vmem>>, vector<8x64xf32>,
    %c0_65 = arith.constant 0 : index
    %c0_66 = arith.constant 0 : index
    %185 = vector.load %arg5[%c0_65, %c0_66] : memref<64x64xf32, #tpu.memory_space<vmem>>, vector<64x64xf32>
    %c128 = arith.constant 128 : index
    %c0_67 = arith.constant 0 : index
    %186 = vector.load %arg2[%c128, %c0_67] : memref<266x256xf32, #tpu.memory_space<vmem>>, vector<64x256xf32>
    %cst_68 = arith.constant dense<0.000000e+00> : vector<64x256xf32>
    %187 = tpu.matmul %185, %186, %cst_68 {dimension_numbers = #tpu.dot_dimension_numbers<[1], [0], [0], [1], [0, 0, 1, 1], [], []>, precision = #tpu.contract_precision<fp32>} : vector<64x64xf32>, vector<64x256xf32>, vector<64x256xf32> -> vector<64x256xf32>
    %c265 = arith.constant 265 : index
    %c0_69 = arith.constant 0 : index
    %188 = vector.load %arg2[%c265, %c0_69] : memref<266x256xf32, #tpu.memory_space<vmem>>, vector<1x256xf32>
    %189 = vector.broadcast %188 : vector<1x256xf32> to vector<64x256xf32>
    %190 = arith.addf %187, %189 : vector<64x256xf32>
    %c0_70 = arith.constant 0 : index
    %c0_71 = arith.constant 0 : index
    %191 = vector.load %arg7[%c0_70, %c0_71] : memref<64x256xf32, #tpu.memory_space<vmem>>, vector<64x256xf32>
    tpu.vector_store %arg7[%c0_70, %c0_71], %190 {strides = array<i32>} : memref<64x256xf32, #tpu.memory_space<vmem>>, vector<64x256xf32>,
    %c192 = arith.constant 192 : index
    %c0_72 = arith.constant 0 : index
    %192 = vector.load %arg2[%c192, %c0_72] : memref<266x256xf32, #tpu.memory_space<vmem>>, vector<64x256xf32>
    %cst_73 = arith.constant dense<0.000000e+00> : vector<64x256xf32>
    %193 = tpu.matmul %185, %192, %cst_73 {dimension_numbers = #tpu.dot_dimension_numbers<[1], [0], [0], [1], [0, 0, 1, 1], [], []>, precision = #tpu.contract_precision<fp32>} : vector<64x64xf32>, vector<64x256xf32>, vector<64x256xf32> -> vector<64x256xf32>
    %c0_74 = arith.constant 0 : index
    %c0_75 = arith.constant 0 : index
    %194 = vector.load %arg8[%c0_74, %c0_75] : memref<64x256xf32, #tpu.memory_space<vmem>>, vector<64x256xf32>
    tpu.vector_store %arg8[%c0_74, %c0_75], %193 {strides = array<i32>} : memref<64x256xf32, #tpu.memory_space<vmem>>, vector<64x256xf32>,
    %c64 = arith.constant 64 : index
    %c0_76 = arith.constant 0 : index
    %195 = vector.load %arg2[%c64, %c0_76] : memref<266x256xf32, #tpu.memory_space<vmem>>, vector<64x256xf32>
    %c0_77 = arith.constant 0 : index
    %c0_78 = arith.constant 0 : index
    %196 = vector.load %arg7[%c0_77, %c0_78] : memref<64x256xf32, #tpu.memory_space<vmem>>, vector<8x256xf32>
    %c56_79 = arith.constant 56 : index
    %c0_80 = arith.constant 0 : index
    %197 = vector.load %arg8[%c56_79, %c0_80] : memref<64x256xf32, #tpu.memory_space<vmem>>, vector<8x256xf32>
    %198 = arith.addf %196, %197 : vector<8x256xf32>
    %cst_81 = arith.constant dense<0.000000e+00> : vector<8x256xf32>
    %199 = tpu.matmul %0, %195, %cst_81 {dimension_numbers = #tpu.dot_dimension_numbers<[1], [0], [0], [1], [0, 0, 1, 1], [], []>} : vector<8x64xf32>, vector<64x256xf32>, vector<8x256xf32> -> vector<8x256xf32>
    %200 = arith.addf %198, %199 : vector<8x256xf32>
    %201 = arith.negf %200 : vector<8x256xf32>
    %202 = math.exp %201 : vector<8x256xf32>
    %cst_82 = arith.constant 1.000000e+00 : f32
    %203 = vector.broadcast %cst_82 : f32 to vector<8x256xf32>
    %204 = arith.addf %203, %202 : vector<8x256xf32>
    %205 = arith.divf %203, %204 : vector<8x256xf32>
    %206 = vector.extract_strided_slice %205 {offsets = [0, 0], sizes = [8, 64], strides = [1, 1]} : vector<8x256xf32> to vector<8x64xf32>
    %207 = vector.extract_strided_slice %205 {offsets = [0, 64], sizes = [8, 64], strides = [1, 1]} : vector<8x256xf32> to vector<8x64xf32>
    %208 = vector.extract_strided_slice %205 {offsets = [0, 128], sizes = [8, 64], strides = [1, 1]} : vector<8x256xf32> to vector<8x64xf32>
    %cst_83 = arith.constant 2.000000e+00 : f32
    %209 = vector.broadcast %cst_83 : f32 to vector<8x64xf32>
    %210 = arith.mulf %209, %208 : vector<8x64xf32>
    %cst_84 = arith.constant 1.000000e+00 : f32
    %211 = vector.broadcast %cst_84 : f32 to vector<8x64xf32>
    %212 = arith.subf %210, %211 : vector<8x64xf32>
    %213 = vector.extract_strided_slice %205 {offsets = [0, 192], sizes = [8, 64], strides = [1, 1]} : vector<8x256xf32> to vector<8x64xf32>
    %214 = arith.mulf %207, %0 : vector<8x64xf32>
    %215 = arith.mulf %206, %212 : vector<8x64xf32>
    %216 = arith.addf %214, %215 : vector<8x64xf32>
    %217 = math.tanh %216 : vector<8x64xf32>
    %218 = arith.mulf %213, %217 : vector<8x64xf32>
    %219 = vector.extract_strided_slice %218 {offsets = [0, 32], sizes = [8, 32], strides = [1, 1]} : vector<8x64xf32> to vector<8x32xf32>
    %c8_85 = arith.constant 8 : index
    %c0_86 = arith.constant 0 : index
    %220 = vector.load %arg7[%c8_85, %c0_86] : memref<64x256xf32, #tpu.memory_space<vmem>>, vector<8x256xf32>
    %c48_87 = arith.constant 48 : index
    %c0_88 = arith.constant 0 : index
    %221 = vector.load %arg8[%c48_87, %c0_88] : memref<64x256xf32, #tpu.memory_space<vmem>>, vector<8x256xf32>
    %222 = arith.addf %220, %221 : vector<8x256xf32>
    %cst_89 = arith.constant dense<0.000000e+00> : vector<8x256xf32>
    %223 = tpu.matmul %218, %195, %cst_89 {dimension_numbers = #tpu.dot_dimension_numbers<[1], [0], [0], [1], [0, 0, 1, 1], [], []>} : vector<8x64xf32>, vector<64x256xf32>, vector<8x256xf32> -> vector<8x256xf32>
    %224 = arith.addf %222, %223 : vector<8x256xf32>
    %225 = arith.negf %224 : vector<8x256xf32>
    %226 = math.exp %225 : vector<8x256xf32>
    %cst_90 = arith.constant 1.000000e+00 : f32
    %227 = vector.broadcast %cst_90 : f32 to vector<8x256xf32>
    %228 = arith.addf %227, %226 : vector<8x256xf32>
    %229 = arith.divf %227, %228 : vector<8x256xf32>
    %230 = vector.extract_strided_slice %229 {offsets = [0, 0], sizes = [8, 64], strides = [1, 1]} : vector<8x256xf32> to vector<8x64xf32>
    %231 = vector.extract_strided_slice %229 {offsets = [0, 64], sizes = [8, 64], strides = [1, 1]} : vector<8x256xf32> to vector<8x64xf32>
    %232 = vector.extract_strided_slice %229 {offsets = [0, 128], sizes = [8, 64], strides = [1, 1]} : vector<8x256xf32> to vector<8x64xf32>
    %cst_91 = arith.constant 2.000000e+00 : f32
    %233 = vector.broadcast %cst_91 : f32 to vector<8x64xf32>
    %234 = arith.mulf %233, %232 : vector<8x64xf32>
    %cst_92 = arith.constant 1.000000e+00 : f32
    %235 = vector.broadcast %cst_92 : f32 to vector<8x64xf32>
    %236 = arith.subf %234, %235 : vector<8x64xf32>
    %237 = vector.extract_strided_slice %229 {offsets = [0, 192], sizes = [8, 64], strides = [1, 1]} : vector<8x256xf32> to vector<8x64xf32>
    %238 = arith.mulf %231, %216 : vector<8x64xf32>
    %239 = arith.mulf %230, %236 : vector<8x64xf32>
    %240 = arith.addf %238, %239 : vector<8x64xf32>
    %241 = math.tanh %240 : vector<8x64xf32>
    %242 = arith.mulf %237, %241 : vector<8x64xf32>
    %c16_93 = arith.constant 16 : index
    %c0_94 = arith.constant 0 : index
    %243 = vector.load %arg7[%c16_93, %c0_94] : memref<64x256xf32, #tpu.memory_space<vmem>>, vector<8x256xf32>
    %c40_95 = arith.constant 40 : index
    %c0_96 = arith.constant 0 : index
    %244 = vector.load %arg8[%c40_95, %c0_96] : memref<64x256xf32, #tpu.memory_space<vmem>>, vector<8x256xf32>
    %245 = arith.addf %243, %244 : vector<8x256xf32>
    %cst_97 = arith.constant dense<0.000000e+00> : vector<8x256xf32>
    %246 = tpu.matmul %242, %195, %cst_97 {dimension_numbers = #tpu.dot_dimension_numbers<[1], [0], [0], [1], [0, 0, 1, 1], [], []>} : vector<8x64xf32>, vector<64x256xf32>, vector<8x256xf32> -> vector<8x256xf32>
    %247 = arith.addf %245, %246 : vector<8x256xf32>
    %248 = arith.negf %247 : vector<8x256xf32>
    %249 = math.exp %248 : vector<8x256xf32>
    %cst_98 = arith.constant 1.000000e+00 : f32
    %250 = vector.broadcast %cst_98 : f32 to vector<8x256xf32>
    %251 = arith.addf %250, %249 : vector<8x256xf32>
    %252 = arith.divf %250, %251 : vector<8x256xf32>
    %253 = vector.extract_strided_slice %252 {offsets = [0, 0], sizes = [8, 64], strides = [1, 1]} : vector<8x256xf32> to vector<8x64xf32>
    %254 = vector.extract_strided_slice %252 {offsets = [0, 64], sizes = [8, 64], strides = [1, 1]} : vector<8x256xf32> to vector<8x64xf32>
    %255 = vector.extract_strided_slice %252 {offsets = [0, 128], sizes = [8, 64], strides = [1, 1]} : vector<8x256xf32> to vector<8x64xf32>
    %cst_99 = arith.constant 2.000000e+00 : f32
    %256 = vector.broadcast %cst_99 : f32 to vector<8x64xf32>
    %257 = arith.mulf %256, %255 : vector<8x64xf32>
    %cst_100 = arith.constant 1.000000e+00 : f32
    %258 = vector.broadcast %cst_100 : f32 to vector<8x64xf32>
    %259 = arith.subf %257, %258 : vector<8x64xf32>
    %260 = vector.extract_strided_slice %252 {offsets = [0, 192], sizes = [8, 64], strides = [1, 1]} : vector<8x256xf32> to vector<8x64xf32>
    %261 = arith.mulf %254, %240 : vector<8x64xf32>
    %262 = arith.mulf %253, %259 : vector<8x64xf32>
    %263 = arith.addf %261, %262 : vector<8x64xf32>
    %264 = math.tanh %263 : vector<8x64xf32>
    %265 = arith.mulf %260, %264 : vector<8x64xf32>
    %c24_101 = arith.constant 24 : index
    %c0_102 = arith.constant 0 : index
    %266 = vector.load %arg7[%c24_101, %c0_102] : memref<64x256xf32, #tpu.memory_space<vmem>>, vector<8x256xf32>
    %c32_103 = arith.constant 32 : index
    %c0_104 = arith.constant 0 : index
    %267 = vector.load %arg8[%c32_103, %c0_104] : memref<64x256xf32, #tpu.memory_space<vmem>>, vector<8x256xf32>
    %268 = arith.addf %266, %267 : vector<8x256xf32>
    %cst_105 = arith.constant dense<0.000000e+00> : vector<8x256xf32>
    %269 = tpu.matmul %265, %195, %cst_105 {dimension_numbers = #tpu.dot_dimension_numbers<[1], [0], [0], [1], [0, 0, 1, 1], [], []>} : vector<8x64xf32>, vector<64x256xf32>, vector<8x256xf32> -> vector<8x256xf32>
    %270 = arith.addf %268, %269 : vector<8x256xf32>
    %271 = arith.negf %270 : vector<8x256xf32>
    %272 = math.exp %271 : vector<8x256xf32>
    %cst_106 = arith.constant 1.000000e+00 : f32
    %273 = vector.broadcast %cst_106 : f32 to vector<8x256xf32>
    %274 = arith.addf %273, %272 : vector<8x256xf32>
    %275 = arith.divf %273, %274 : vector<8x256xf32>
    %276 = vector.extract_strided_slice %275 {offsets = [0, 0], sizes = [8, 64], strides = [1, 1]} : vector<8x256xf32> to vector<8x64xf32>
    %277 = vector.extract_strided_slice %275 {offsets = [0, 64], sizes = [8, 64], strides = [1, 1]} : vector<8x256xf32> to vector<8x64xf32>
    %278 = vector.extract_strided_slice %275 {offsets = [0, 128], sizes = [8, 64], strides = [1, 1]} : vector<8x256xf32> to vector<8x64xf32>
    %cst_107 = arith.constant 2.000000e+00 : f32
    %279 = vector.broadcast %cst_107 : f32 to vector<8x64xf32>
    %280 = arith.mulf %279, %278 : vector<8x64xf32>
    %cst_108 = arith.constant 1.000000e+00 : f32
    %281 = vector.broadcast %cst_108 : f32 to vector<8x64xf32>
    %282 = arith.subf %280, %281 : vector<8x64xf32>
    %283 = vector.extract_strided_slice %275 {offsets = [0, 192], sizes = [8, 64], strides = [1, 1]} : vector<8x256xf32> to vector<8x64xf32>
    %284 = arith.mulf %277, %263 : vector<8x64xf32>
    %285 = arith.mulf %276, %282 : vector<8x64xf32>
    %286 = arith.addf %284, %285 : vector<8x64xf32>
    %287 = math.tanh %286 : vector<8x64xf32>
    %288 = arith.mulf %283, %287 : vector<8x64xf32>
    %c32_109 = arith.constant 32 : index
    %c0_110 = arith.constant 0 : index
    %289 = vector.load %arg7[%c32_109, %c0_110] : memref<64x256xf32, #tpu.memory_space<vmem>>, vector<8x256xf32>
    %c24_111 = arith.constant 24 : index
    %c0_112 = arith.constant 0 : index
    %290 = vector.load %arg8[%c24_111, %c0_112] : memref<64x256xf32, #tpu.memory_space<vmem>>, vector<8x256xf32>
    %291 = arith.addf %289, %290 : vector<8x256xf32>
    %cst_113 = arith.constant dense<0.000000e+00> : vector<8x256xf32>
    %292 = tpu.matmul %288, %195, %cst_113 {dimension_numbers = #tpu.dot_dimension_numbers<[1], [0], [0], [1], [0, 0, 1, 1], [], []>} : vector<8x64xf32>, vector<64x256xf32>, vector<8x256xf32> -> vector<8x256xf32>
    %293 = arith.addf %291, %292 : vector<8x256xf32>
    %294 = arith.negf %293 : vector<8x256xf32>
    %295 = math.exp %294 : vector<8x256xf32>
    %cst_114 = arith.constant 1.000000e+00 : f32
    %296 = vector.broadcast %cst_114 : f32 to vector<8x256xf32>
    %297 = arith.addf %296, %295 : vector<8x256xf32>
    %298 = arith.divf %296, %297 : vector<8x256xf32>
    %299 = vector.extract_strided_slice %298 {offsets = [0, 0], sizes = [8, 64], strides = [1, 1]} : vector<8x256xf32> to vector<8x64xf32>
    %300 = vector.extract_strided_slice %298 {offsets = [0, 64], sizes = [8, 64], strides = [1, 1]} : vector<8x256xf32> to vector<8x64xf32>
    %301 = vector.extract_strided_slice %298 {offsets = [0, 128], sizes = [8, 64], strides = [1, 1]} : vector<8x256xf32> to vector<8x64xf32>
    %cst_115 = arith.constant 2.000000e+00 : f32
    %302 = vector.broadcast %cst_115 : f32 to vector<8x64xf32>
    %303 = arith.mulf %302, %301 : vector<8x64xf32>
    %cst_116 = arith.constant 1.000000e+00 : f32
    %304 = vector.broadcast %cst_116 : f32 to vector<8x64xf32>
    %305 = arith.subf %303, %304 : vector<8x64xf32>
    %306 = vector.extract_strided_slice %298 {offsets = [0, 192], sizes = [8, 64], strides = [1, 1]} : vector<8x256xf32> to vector<8x64xf32>
    %307 = arith.mulf %300, %286 : vector<8x64xf32>
    %308 = arith.mulf %299, %305 : vector<8x64xf32>
    %309 = arith.addf %307, %308 : vector<8x64xf32>
    %310 = math.tanh %309 : vector<8x64xf32>
    %311 = arith.mulf %306, %310 : vector<8x64xf32>
    %c40_117 = arith.constant 40 : index
    %c0_118 = arith.constant 0 : index
    %312 = vector.load %arg7[%c40_117, %c0_118] : memref<64x256xf32, #tpu.memory_space<vmem>>, vector<8x256xf32>
    %c16_119 = arith.constant 16 : index
    %c0_120 = arith.constant 0 : index
    %313 = vector.load %arg8[%c16_119, %c0_120] : memref<64x256xf32, #tpu.memory_space<vmem>>, vector<8x256xf32>
    %314 = arith.addf %312, %313 : vector<8x256xf32>
    %cst_121 = arith.constant dense<0.000000e+00> : vector<8x256xf32>
    %315 = tpu.matmul %311, %195, %cst_121 {dimension_numbers = #tpu.dot_dimension_numbers<[1], [0], [0], [1], [0, 0, 1, 1], [], []>} : vector<8x64xf32>, vector<64x256xf32>, vector<8x256xf32> -> vector<8x256xf32>
    %316 = arith.addf %314, %315 : vector<8x256xf32>
    %317 = arith.negf %316 : vector<8x256xf32>
    %318 = math.exp %317 : vector<8x256xf32>
    %cst_122 = arith.constant 1.000000e+00 : f32
    %319 = vector.broadcast %cst_122 : f32 to vector<8x256xf32>
    %320 = arith.addf %319, %318 : vector<8x256xf32>
    %321 = arith.divf %319, %320 : vector<8x256xf32>
    %322 = vector.extract_strided_slice %321 {offsets = [0, 0], sizes = [8, 64], strides = [1, 1]} : vector<8x256xf32> to vector<8x64xf32>
    %323 = vector.extract_strided_slice %321 {offsets = [0, 64], sizes = [8, 64], strides = [1, 1]} : vector<8x256xf32> to vector<8x64xf32>
    %324 = vector.extract_strided_slice %321 {offsets = [0, 128], sizes = [8, 64], strides = [1, 1]} : vector<8x256xf32> to vector<8x64xf32>
    %cst_123 = arith.constant 2.000000e+00 : f32
    %325 = vector.broadcast %cst_123 : f32 to vector<8x64xf32>
    %326 = arith.mulf %325, %324 : vector<8x64xf32>
    %cst_124 = arith.constant 1.000000e+00 : f32
    %327 = vector.broadcast %cst_124 : f32 to vector<8x64xf32>
    %328 = arith.subf %326, %327 : vector<8x64xf32>
    %329 = vector.extract_strided_slice %321 {offsets = [0, 192], sizes = [8, 64], strides = [1, 1]} : vector<8x256xf32> to vector<8x64xf32>
    %330 = arith.mulf %323, %309 : vector<8x64xf32>
    %331 = arith.mulf %322, %328 : vector<8x64xf32>
    %332 = arith.addf %330, %331 : vector<8x64xf32>
    %333 = math.tanh %332 : vector<8x64xf32>
    %334 = arith.mulf %329, %333 : vector<8x64xf32>
    %c48_125 = arith.constant 48 : index
    %c0_126 = arith.constant 0 : index
    %335 = vector.load %arg7[%c48_125, %c0_126] : memref<64x256xf32, #tpu.memory_space<vmem>>, vector<8x256xf32>
    %c8_127 = arith.constant 8 : index
    %c0_128 = arith.constant 0 : index
    %336 = vector.load %arg8[%c8_127, %c0_128] : memref<64x256xf32, #tpu.memory_space<vmem>>, vector<8x256xf32>
    %337 = arith.addf %335, %336 : vector<8x256xf32>
    %cst_129 = arith.constant dense<0.000000e+00> : vector<8x256xf32>
    %338 = tpu.matmul %334, %195, %cst_129 {dimension_numbers = #tpu.dot_dimension_numbers<[1], [0], [0], [1], [0, 0, 1, 1], [], []>} : vector<8x64xf32>, vector<64x256xf32>, vector<8x256xf32> -> vector<8x256xf32>
    %339 = arith.addf %337, %338 : vector<8x256xf32>
    %340 = arith.negf %339 : vector<8x256xf32>
    %341 = math.exp %340 : vector<8x256xf32>
    %cst_130 = arith.constant 1.000000e+00 : f32
    %342 = vector.broadcast %cst_130 : f32 to vector<8x256xf32>
    %343 = arith.addf %342, %341 : vector<8x256xf32>
    %344 = arith.divf %342, %343 : vector<8x256xf32>
    %345 = vector.extract_strided_slice %344 {offsets = [0, 0], sizes = [8, 64], strides = [1, 1]} : vector<8x256xf32> to vector<8x64xf32>
    %346 = vector.extract_strided_slice %344 {offsets = [0, 64], sizes = [8, 64], strides = [1, 1]} : vector<8x256xf32> to vector<8x64xf32>
    %347 = vector.extract_strided_slice %344 {offsets = [0, 128], sizes = [8, 64], strides = [1, 1]} : vector<8x256xf32> to vector<8x64xf32>
    %cst_131 = arith.constant 2.000000e+00 : f32
    %348 = vector.broadcast %cst_131 : f32 to vector<8x64xf32>
    %349 = arith.mulf %348, %347 : vector<8x64xf32>
    %cst_132 = arith.constant 1.000000e+00 : f32
    %350 = vector.broadcast %cst_132 : f32 to vector<8x64xf32>
    %351 = arith.subf %349, %350 : vector<8x64xf32>
    %352 = vector.extract_strided_slice %344 {offsets = [0, 192], sizes = [8, 64], strides = [1, 1]} : vector<8x256xf32> to vector<8x64xf32>
    %353 = arith.mulf %346, %332 : vector<8x64xf32>
    %354 = arith.mulf %345, %351 : vector<8x64xf32>
    %355 = arith.addf %353, %354 : vector<8x64xf32>
    %356 = math.tanh %355 : vector<8x64xf32>
    %357 = arith.mulf %352, %356 : vector<8x64xf32>
    %c56_133 = arith.constant 56 : index
    %c0_134 = arith.constant 0 : index
    %358 = vector.load %arg7[%c56_133, %c0_134] : memref<64x256xf32, #tpu.memory_space<vmem>>, vector<8x256xf32>
    %c0_135 = arith.constant 0 : index
    %c0_136 = arith.constant 0 : index
    %359 = vector.load %arg8[%c0_135, %c0_136] : memref<64x256xf32, #tpu.memory_space<vmem>>, vector<8x256xf32>
    %360 = arith.addf %358, %359 : vector<8x256xf32>
    %cst_137 = arith.constant dense<0.000000e+00> : vector<8x256xf32>
    %361 = tpu.matmul %357, %195, %cst_137 {dimension_numbers = #tpu.dot_dimension_numbers<[1], [0], [0], [1], [0, 0, 1, 1], [], []>} : vector<8x64xf32>, vector<64x256xf32>, vector<8x256xf32> -> vector<8x256xf32>
    %362 = arith.addf %360, %361 : vector<8x256xf32>
    %363 = arith.negf %362 : vector<8x256xf32>
    %364 = math.exp %363 : vector<8x256xf32>
    %cst_138 = arith.constant 1.000000e+00 : f32
    %365 = vector.broadcast %cst_138 : f32 to vector<8x256xf32>
    %366 = arith.addf %365, %364 : vector<8x256xf32>
    %367 = arith.divf %365, %366 : vector<8x256xf32>
    %368 = vector.extract_strided_slice %367 {offsets = [0, 0], sizes = [8, 64], strides = [1, 1]} : vector<8x256xf32> to vector<8x64xf32>
    %369 = vector.extract_strided_slice %367 {offsets = [0, 64], sizes = [8, 64], strides = [1, 1]} : vector<8x256xf32> to vector<8x64xf32>
    %370 = vector.extract_strided_slice %367 {offsets = [0, 128], sizes = [8, 64], strides = [1, 1]} : vector<8x256xf32> to vector<8x64xf32>
    %cst_139 = arith.constant 2.000000e+00 : f32
    %371 = vector.broadcast %cst_139 : f32 to vector<8x64xf32>
    %372 = arith.mulf %371, %370 : vector<8x64xf32>
    %cst_140 = arith.constant 1.000000e+00 : f32
    %373 = vector.broadcast %cst_140 : f32 to vector<8x64xf32>
    %374 = arith.subf %372, %373 : vector<8x64xf32>
    %375 = vector.extract_strided_slice %367 {offsets = [0, 192], sizes = [8, 64], strides = [1, 1]} : vector<8x256xf32> to vector<8x64xf32>
    %376 = arith.mulf %369, %355 : vector<8x64xf32>
    %377 = arith.mulf %368, %374 : vector<8x64xf32>
    %378 = arith.addf %376, %377 : vector<8x64xf32>
    %379 = math.tanh %378 : vector<8x64xf32>
    %380 = arith.mulf %375, %379 : vector<8x64xf32>
    %381 = vector.extract_strided_slice %380 {offsets = [0, 0], sizes = [8, 32], strides = [1, 1]} : vector<8x64xf32> to vector<8x32xf32>
    %c0_141 = arith.constant 0 : index
    %c0_142 = arith.constant 0 : index
    %382 = vector.load %arg3[%c0_141, %c0_142] : memref<108x32xf32, #tpu.memory_space<vmem>>, vector<8x32xf32>
    %c8_143 = arith.constant 8 : index
    %c0_144 = arith.constant 0 : index
    %383 = vector.load %arg3[%c8_143, %c0_144] : memref<108x32xf32, #tpu.memory_space<vmem>>, vector<32x32xf32>
    %c40_145 = arith.constant 40 : index
    %c0_146 = arith.constant 0 : index
    %384 = vector.load %arg3[%c40_145, %c0_146] : memref<108x32xf32, #tpu.memory_space<vmem>>, vector<32x32xf32>
    %c72 = arith.constant 72 : index
    %c0_147 = arith.constant 0 : index
    %385 = vector.load %arg3[%c72, %c0_147] : memref<108x32xf32, #tpu.memory_space<vmem>>, vector<32x32xf32>
    %c104 = arith.constant 104 : index
    %c0_148 = arith.constant 0 : index
    %386 = vector.load %arg3[%c104, %c0_148] : memref<108x32xf32, #tpu.memory_space<vmem>>, vector<1x32xf32>
    %c105 = arith.constant 105 : index
    %c0_149 = arith.constant 0 : index
    %387 = vector.load %arg3[%c105, %c0_149] : memref<108x32xf32, #tpu.memory_space<vmem>>, vector<1x32xf32>
    %c106 = arith.constant 106 : index
    %c0_150 = arith.constant 0 : index
    %388 = vector.load %arg3[%c106, %c0_150] : memref<108x32xf32, #tpu.memory_space<vmem>>, vector<1x32xf32>
    %c107 = arith.constant 107 : index
    %c0_151 = arith.constant 0 : index
    %389 = vector.load %arg3[%c107, %c0_151] : memref<108x32xf32, #tpu.memory_space<vmem>>, vector<1x1xf32>
    %c0_152 = arith.constant 0 : index
    %c0_153 = arith.constant 0 : index
    %390 = vector.load %arg1[%c0_152, %c0_153] : memref<8x8xf32, #tpu.memory_space<vmem>>, vector<8x8xf32>
    %cst_154 = arith.constant dense<0.000000e+00> : vector<8x32xf32>
    %391 = tpu.matmul %390, %382, %cst_154 {dimension_numbers = #tpu.dot_dimension_numbers<[1], [0], [0], [1], [0, 0, 1, 1], [], []>} : vector<8x8xf32>, vector<8x32xf32>, vector<8x32xf32> -> vector<8x32xf32>
    %392 = vector.broadcast %387 : vector<1x32xf32> to vector<8x32xf32>
    %393 = arith.addf %391, %392 : vector<8x32xf32>
    %cst_155 = arith.constant 0.000000e+00 : f32
    %394 = vector.broadcast %cst_155 : f32 to vector<8x32xf32>
    %395 = arith.maximumf %393, %394 : vector<8x32xf32>
    %cst_156 = arith.constant dense<0.000000e+00> : vector<8x32xf32>
    %396 = tpu.matmul %381, %383, %cst_156 {dimension_numbers = #tpu.dot_dimension_numbers<[1], [0], [0], [1], [0, 0, 1, 1], [], []>} : vector<8x32xf32>, vector<32x32xf32>, vector<8x32xf32> -> vector<8x32xf32>
    %cst_157 = arith.constant dense<0.000000e+00> : vector<8x32xf32>
    %397 = tpu.matmul %219, %384, %cst_157 {dimension_numbers = #tpu.dot_dimension_numbers<[1], [0], [0], [1], [0, 0, 1, 1], [], []>} : vector<8x32xf32>, vector<32x32xf32>, vector<8x32xf32> -> vector<8x32xf32>
    %398 = arith.addf %396, %397 : vector<8x32xf32>
    %cst_158 = arith.constant dense<0.000000e+00> : vector<8x32xf32>
    %399 = tpu.matmul %395, %385, %cst_158 {dimension_numbers = #tpu.dot_dimension_numbers<[1], [0], [0], [1], [0, 0, 1, 1], [], []>} : vector<8x32xf32>, vector<32x32xf32>, vector<8x32xf32> -> vector<8x32xf32>
    %400 = arith.addf %398, %399 : vector<8x32xf32>
    %401 = vector.broadcast %388 : vector<1x32xf32> to vector<8x32xf32>
    %402 = arith.addf %400, %401 : vector<8x32xf32>
    %cst_159 = arith.constant 0.000000e+00 : f32
    %403 = vector.broadcast %cst_159 : f32 to vector<8x32xf32>
    %404 = arith.maximumf %402, %403 : vector<8x32xf32>
    %405 = vector.broadcast %386 : vector<1x32xf32> to vector<8x32xf32>
    %406 = arith.mulf %404, %405 : vector<8x32xf32>
    %cst_160 = arith.constant dense<0.000000e+00> : vector<8xf32>
    %407 = vector.multi_reduction <add>, %406, %cst_160 [1] : vector<8x32xf32> to vector<8xf32>
    %408 = vector.shape_cast %407 : vector<8xf32> to vector<8x1xf32>
    %409 = vector.broadcast %389 : vector<1x1xf32> to vector<8x1xf32>
    %410 = arith.addf %408, %409 : vector<8x1xf32>
    %c0_161 = arith.constant 0 : index
    %c0_162 = arith.constant 0 : index
    %411 = vector.load %arg4[%c0_161, %c0_162] : memref<8x1xf32, #tpu.memory_space<vmem>>, vector<8x1xf32>
    tpu.vector_store %arg4[%c0_161, %c0_162], %410 {strides = array<i32>} : memref<8x1xf32, #tpu.memory_space<vmem>>, vector<8x1xf32>,
    return
  }
}

</mosaic_0001>

<bundles_post_ra>
// kernel: tpu_custom_call.1
= control target key start
LH: loop header
LB: loop body
LE: loop exit
PB: predicated region body
PF: predicated region fallthrough
CT: control target
= control target key end

     0   :  { %9 = vsyncpa [#allocation7], 0  ;;  %s4804_s18 = smov [#allocation6]   ;;  %s4805_s20 = smov 256   ;;  %s6816_s0 = inlined_call_operand.vmem [shape: f32[64,8], index: 0, kind: input, shape index: {}]   ;;  %s6817_s1 = inlined_call_operand.vmem [shape: f32[8,8], index: 1, kind: input, shape index: {}]   ;;  %s6818_s2 = inlined_call_operand.hbm [shape: f32[266,256], index: 2, kind: input, shape index: {}]   ;;  %s6819_s3 = inlined_call_operand.vmem [shape: f32[108,32], index: 3, kind: input, shape index: {}]   ;;  %s6820_s4 = inlined_call_operand.vmem [shape: f32[8,1], index: 4, kind: output, shape index: {}]  }
   0x1   :  { %s18_s17 = sshll.u32 %s6818_s2, 4  ;;  %s20_s19 = sshll.u32 %s4804_s18, 4  ;;  %s19_s17 = int_to_ptr.hbm [resolvable:$true] %s18_s17  ;;  %s21_s19 = int_to_ptr.vmem [resolvable:$true] %s20_s19 }
   0x2   :  { %s4806_s21 = smov 16  }
   0x3   :  { %26 = dma.hbm_to_vmem [thread:$0]  %s19_s17, 8704, %s21_s19, [#allocation7], %s4805_s20, %s4805_s20, %s4806_s21  }
   0x4   :  { %4802 = dma.done.wait [#allocation7], 8704  }
   0x5   :  { %4803 = vsyncadd [#allocation7], 4294958592  ;;  %vm50_vm0 = vcmask 64512   ;;  %v41_v0 = vld [vmem:[#allocation6 + $0x200] sm:$0xff]  ;;  %v34_v2 = vld [vmem:[%s6816_s0 + $0x8] sm:$0xff]  ;;  %vm835_vm9 = vcmask 523264  }
   0x6   :  { %v33_v1 = vld [vmem:[%s6816_s0] sm:$0xff]  ;;  %v90_v3 = vand.u32 4294901760, %v41_v0  ;;  %v55_v5 = vsel %vm50_vm0, %v34_v2, 0  ;;  %v35_v8 = vld [vmem:[%s6816_s0 + $0x10] sm:$0xff]  ;;  %v36_v21 = vld [vmem:[%s6816_s0 + $0x18] sm:$0xff]  ;;  %s4809_s11 = smov 32  }
   0x7   :  { %v52_v4 = vsel %vm50_vm0, %v33_v1, 0  ;;  %v4848_v7 = vand.u32 4294901760, %v55_v5  ;;  %v58_v13 = vsel %vm50_vm0, %v35_v8, 0  ;;  %v61_v24 = vsel %vm50_vm0, %v36_v21, 0  ;;  %v37_v28 = vld [vmem:[%s6816_s0 + $0x20] sm:$0xff]  ;;  %v38_v35 = vld [vmem:[%s6816_s0 + $0x28] sm:$0xff] }
   0x8   :  { %v4846_v6 = vand.u32 4294901760, %v52_v4  ;;  %v173_v9 = vsub.f32 %v41_v0, %v90_v3  ;;  %91 = vmatpush.msra.mxu0 %v90_v3  ;;  %286 = vmatpush.msra.mxu3 %v90_v3  ;;  %v4870_v18 = vand.u32 4294901760, %v58_v13  ;;  %v4892_v27 = vand.u32 4294901760, %v61_v24  ;;  %v42_v39 = vld [vmem:[#allocation6 + $0x208] sm:$0xff]  ;;  %v39_v44 = vld [vmem:[%s6816_s0 + $0x30] sm:$0xff]  ;;  %v40_v55 = vld [vmem:[%s6816_s0 + $0x38] sm:$0xff] }
   0x9   :  { %v4857_v11 = vsub.f32 %v55_v5, %v4848_v7  ;;  %v64_v31 = vsel %vm50_vm0, %v37_v28, 0  ;;  %v67_v38 = vsel %vm50_vm0, %v38_v35, 0  ;;  %v453_v40 = vand.u32 4294901760, %v42_v39  ;;  %v5010_v5 = vld [vmem:[#allocation6 + $0x70] sm:$0xff]  ;;  %v5016_v8 = vld [vmem:[#allocation6 + $0x68] sm:$0xff]  ;;  %v5054_v21 = vld [vmem:[#allocation6 + $0x38] sm:$0xff] }
   0xa   :  { %v4854_v10 = vsub.f32 %v52_v4, %v4846_v6  ;;  %228 = vmatpush.msra.mxu2 %v173_v9  ;;  %v174_v12 = vand.u32 4294901760, %v173_v9  ;;  %v4882_v23 = vsub.f32 %v58_v13, %v4870_v18  ;;  %v4902_v30 = vsub.f32 %v61_v24, %v4892_v27  ;;  %v5005_v4 = vld [vmem:[#allocation6 + $0x78] sm:$0xff]  ;;  %v5032_v13 = vld [vmem:[#allocation6 + $0x50] sm:$0xff]  ;;  %s4808_s0 = smov 64  }
   0xb   :  { %v4868_v17 = vand.u32 4294901760, %v4857_v11  ;;  %v4912_v34 = vand.u32 4294901760, %v64_v31  ;;  %v4932_v43 = vand.u32 4294901760, %v67_v38  ;;  %v536_v45 = vsub.f32 %v42_v39, %v453_v40 }
   0xc   :  { %231 = vmatmul.f32.vlgmr.msra.gmra.mxu2 %v4854_v10  ;;  %v4862_v14 = vand.u32 4294901760, %v4854_v10  ;;  %v175_v15 = vsub.f32 %v173_v9, %v174_v12  ;;  %354 = vmatpush.msrb.mxu0 %v174_v12  ;;  %v4890_v26 = vand.u32 4294901760, %v4882_v23  ;;  %v4910_v33 = vand.u32 4294901760, %v4902_v30  ;;  %v5021_v9 = vld [vmem:[#allocation6 + $0x60] sm:$0xff]  ;;  %v5027_v12 = vld [vmem:[#allocation6 + $0x58] sm:$0xff] }
   0xd   :  { %v103_v22 = vsub.f32 %v4857_v11, %v4868_v17  ;;  %v4922_v37 = vsub.f32 %v64_v31, %v4912_v34  ;;  %454 = vmatpush.msrb.mxu2 %v453_v40  ;;  %v4942_v47 = vsub.f32 %v67_v38, %v4932_v43  ;;  %v70_v48 = vsel %vm50_vm0, %v39_v44, 0 }
   0xe   :  { %v95_v16 = vsub.f32 %v4854_v10, %v4862_v14  ;;  %290 = vmatmul.f32.vlgmr.msra.gmra.mxu3 %v4862_v14  ;;  %v176_v19 = vand.u32 4294901760, %v175_v15  ;;  %v111_v29 = vsub.f32 %v4882_v23, %v4890_v26  ;;  %v119_v36 = vsub.f32 %v4902_v30, %v4910_v33  ;;  %v5038_v15 = vld [vmem:[#allocation6 + $0x48] sm:$0xff] }
   0xf   :  { %v4886_v25 = vand.u32 4294901760, %v103_v22  ;;  %v4930_v42 = vand.u32 4294901760, %v4922_v37  ;;  %v537_v49 = vand.u32 4294901760, %v536_v45  ;;  %v4948_v52 = vand.u32 4294901760, %v4942_v47 }
  0x10   :  { %v4872_v20 = vand.u32 4294901760, %v95_v16  ;;  %177 = vmatpush.msra.mxu1 %v176_v19  ;;  %v4906_v32 = vand.u32 4294901760, %v111_v29  ;;  %v4926_v41 = vand.u32 4294901760, %v119_v36  ;;  %v4950_v53 = vand.u32 4294901760, %v70_v48  ;;  %v5044_v16 = vld [vmem:[#allocation6 + $0x40] sm:$0xff] }
  0x11   :  { %179 = vmatmul.f32.vlgmr.msra.gmra.mxu1 %v4846_v6  ;;  %v127_v46 = vsub.f32 %v4922_v37, %v4930_v42  ;;  %v538_v50 = vsub.f32 %v536_v45, %v537_v49  ;;  %717 = vmatpush.msra.mxu2 %v537_v49  ;;  %v135_v56 = vsub.f32 %v4942_v47, %v4948_v52  ;;  %v73_v58 = vsel %vm50_vm0, %v40_v55, 0 }
  0x12   :  { %97 = vmatmul.f32.vlgmr.msra.gmra.mxu0 %v4872_v20  ;;  %404 = vmatpush.msrb.mxu1 %v90_v3  ;;  %v4959_v57 = vsub.f32 %v70_v48, %v4950_v53  ;;  %v4967_v61 = vand.u32 4294901760, %v73_v58  ;;  %v6821_v48 = vmov 0.0  }
  0x13   :  { %591 = vmatpush.msra.mxu0 %v536_v45  ;;  %v128_v51 = vand.u32 4294901760, %v127_v46  ;;  %v539_v54 = vand.u32 4294901760, %v538_v50  ;;  %v136_v59 = vand.u32 4294901760, %v135_v56 }
  0x14   :  { %236 = vmatmul.f32.gmra.mxu2 %v4857_v11  ;;  %649 = vmatpush.msra.mxu1 %v453_v40  ;;  %v4965_v60 = vand.u32 4294901760, %v4959_v57  ;;  %v4973_v63 = vsub.f32 %v73_v58, %v4967_v61 }
  0x15   :  { %540 = vmatpush.msrb.mxu3 %v539_v54 }
  0x16   :  { %296 = vmatmul.f32.gmra.mxu3 %v4868_v17  ;;  %v143_v62 = vsub.f32 %v4959_v57, %v4965_v60  ;;  %v4978_v1 = vand.u32 4294901760, %v4973_v63 }
  0x17   :  { %767 = vmatpush.msra.mxu3 %v453_v40 }
  0x18   :  { %v144_v0 = vand.u32 4294901760, %v143_v62  ;;  %v151_v2 = vsub.f32 %v4973_v63, %v4978_v1 }
  0x19   :  { %183 = vmatmul.f32.gmra.mxu1 %v4848_v7 }
  0x1a   :  { %105 = vmatmul.f32.gmra.mxu0 %v4886_v25  ;;  %v152_v3 = vand.u32 4294901760, %v151_v2 }
  0x1c   :  { %241 = vmatmul.f32.gmra.mxu2 %v4882_v23 }
  0x1e   :  { %302 = vmatmul.f32.gmra.mxu3 %v4890_v26 }
  0x21   :  { %187 = vmatmul.f32.gmra.mxu1 %v4870_v18 }
  0x22   :  { %113 = vmatmul.f32.gmra.mxu0 %v4906_v32 }
  0x24   :  { %246 = vmatmul.f32.gmra.mxu2 %v4902_v30 }
  0x26   :  { %308 = vmatmul.f32.gmra.mxu3 %v4910_v33 }
  0x29   :  { %191 = vmatmul.f32.gmra.mxu1 %v4892_v27 }
  0x2a   :  { %121 = vmatmul.f32.gmra.mxu0 %v4926_v41 }
  0x2c   :  { %251 = vmatmul.f32.gmra.mxu2 %v4922_v37 }
  0x2e   :  { %314 = vmatmul.f32.gmra.mxu3 %v4930_v42 }
  0x31   :  { %195 = vmatmul.f32.gmra.mxu1 %v4912_v34 }
  0x32   :  { %129 = vmatmul.f32.gmra.mxu0 %v128_v51 }
  0x34   :  { %256 = vmatmul.f32.gmra.mxu2 %v4942_v47 }
  0x36   :  { %320 = vmatmul.f32.gmra.mxu3 %v4948_v52 }
  0x39   :  { %199 = vmatmul.f32.gmra.mxu1 %v4932_v43 }
  0x3a   :  { %137 = vmatmul.f32.gmra.mxu0 %v136_v59 }
  0x3c   :  { %261 = vmatmul.f32.gmra.mxu2 %v4959_v57 }
  0x3e   :  { %326 = vmatmul.f32.gmra.mxu3 %v4965_v60 }
  0x41   :  { %203 = vmatmul.f32.gmra.mxu1 %v4950_v53 }
  0x42   :  { %145 = vmatmul.f32.gmra.mxu0 %v144_v0 }
  0x44   :  { %266 = vmatmul.f32.gmra.mxu2 %v4973_v63 }
  0x46   :  { %332 = vmatmul.f32.gmra.mxu3 %v4978_v1 }
  0x49   :  { %207 = vmatmul.f32.gmra.mxu1 %v4967_v61 }
  0x4a   :  { %153 = vmatmul.f32.gmra.mxu0 %v152_v3 }
  0x4c   :  { %460 = vmatmul.f32.vlgmr.msrb.gmra.mxu2 %v4872_v20 }
  0x4d   :  { %947 = vmatpush.msrb.mxu2 %v5010_v5 }
  0x4e   :  { %542 = vmatmul.f32.vlgmr.msrb.gmra.mxu3 %v4846_v6 }
  0x4f   :  { %967 = vmatpush.msrb.mxu3 %v5005_v4  ;;  %948 = vmatpush.msrb.mxu2 %v5021_v9 }
  0x51   :  { %406 = vmatmul.f32.vlgmr.msrb.gmra.mxu1 %v4846_v6  ;;  %968 = vmatpush.msrb.mxu3 %v5016_v8 }
  0x52   :  { %356 = vmatmul.f32.vlgmr.msrb.gmra.mxu0 %v4846_v6  ;;  %867 = vmatpush.msrb.mxu1 %v5005_v4 }
  0x53   :  { %847 = vmatpush.msrb.mxu0 %v5010_v5  ;;  %969 = vmatpush.msrb.mxu3 %v5027_v12 }
  0x54   :  { %468 = vmatmul.f32.gmra.mxu2 %v4886_v25  ;;  %868 = vmatpush.msrb.mxu1 %v5016_v8 }
  0x55   :  { %848 = vmatpush.msrb.mxu0 %v5021_v9  ;;  %949 = vmatpush.msrb.mxu2 %v5032_v13 }
  0x56   :  { %546 = vmatmul.f32.gmra.mxu3 %v4848_v7  ;;  %869 = vmatpush.msrb.mxu1 %v5027_v12 }
  0x57   :  { %849 = vmatpush.msrb.mxu0 %v5032_v13  ;;  %970 = vmatpush.msrb.mxu3 %v5038_v15 }
  0x58   :  { %870 = vmatpush.msrb.mxu1 %v5038_v15  ;;  %950 = vmatpush.msrb.mxu2 %v5044_v16 }
  0x59   :  { %410 = vmatmul.f32.gmra.mxu1 %v4848_v7  ;;  %850 = vmatpush.msrb.mxu0 %v5044_v16 }
  0x5a   :  { %360 = vmatmul.f32.gmra.mxu0 %v4848_v7  ;;  %871 = vmatpush.msrb.mxu1 %v5054_v21 }
  0x5b   :  { %971 = vmatpush.msrb.mxu3 %v5054_v21 }
  0x5c   :  { %476 = vmatmul.f32.gmra.mxu2 %v4906_v32 }
  0x5e   :  { %550 = vmatmul.f32.gmra.mxu3 %v4870_v18 }
  0x61   :  { %414 = vmatmul.f32.gmra.mxu1 %v4870_v18 }
  0x62   :  { %364 = vmatmul.f32.gmra.mxu0 %v4870_v18 }
  0x64   :  { %484 = vmatmul.f32.gmra.mxu2 %v4926_v41 }
  0x66   :  { %554 = vmatmul.f32.gmra.mxu3 %v4892_v27 }
  0x69   :  { %418 = vmatmul.f32.gmra.mxu1 %v4892_v27 }
  0x6a   :  { %368 = vmatmul.f32.gmra.mxu0 %v4892_v27 }
  0x6c   :  { %492 = vmatmul.f32.gmra.mxu2 %v128_v51 }
  0x6e   :  { %558 = vmatmul.f32.gmra.mxu3 %v4912_v34 }
  0x71   :  { %422 = vmatmul.f32.gmra.mxu1 %v4912_v34 }
  0x72   :  { %372 = vmatmul.f32.gmra.mxu0 %v4912_v34 }
  0x74   :  { %500 = vmatmul.f32.gmra.mxu2 %v136_v59 }
  0x76   :  { %562 = vmatmul.f32.gmra.mxu3 %v4932_v43 }
  0x79   :  { %426 = vmatmul.f32.gmra.mxu1 %v4932_v43 }
  0x7a   :  { %376 = vmatmul.f32.gmra.mxu0 %v4932_v43 }
  0x7c   :  { %508 = vmatmul.f32.gmra.mxu2 %v144_v0 }
  0x7e   :  { %566 = vmatmul.f32.gmra.mxu3 %v4950_v53 }
  0x81   :  { %430 = vmatmul.f32.gmra.mxu1 %v4950_v53 }
  0x82   :  { %380 = vmatmul.f32.gmra.mxu0 %v4950_v53 }
  0x84   :  { %516 = vmatmul.f32.gmra.mxu2 %v152_v3 }
  0x86   :  { %570 = vmatmul.f32.gmra.mxu3 %v4967_v61 }
  0x89   :  { %434 = vmatmul.f32.gmra.mxu1 %v4967_v61 }
  0x8a   :  { %384 = vmatmul.f32.gmra.mxu0 %v4967_v61 }
  0x8c   :  { %719 = vmatmul.f32.vlgmr.msra.gmra.mxu2 %v4846_v6 }
  0x8e   :  { %769 = vmatmul.f32.vlgmr.msra.gmra.mxu3 %v4846_v6  ;;  %v5048_v20 = vpop.f32.mrf.mxu1  ;;  %v5060_v6 = vld [vmem:[#allocation6 + $0x30] sm:$0xff] }
  0x8f   :  { %v5046_v19 = vpop.f32.mrf.mxu0  ;;  %851 = vmatpush.msrb.mxu0 %v5060_v6  ;;  %951 = vmatpush.msrb.mxu2 %v5060_v6 }
  0x91   :  { %653 = vmatmul.f32.vlgmr.msra.gmra.mxu1 %v4862_v14 }
  0x92   :  { %594 = vmatmul.f32.vlgmr.msra.gmra.mxu0 %v4854_v10  ;;  %v5070_v10 = vld [vmem:[#allocation6 + $0x28] sm:$0xff] }
  0x93   :  { %872 = vmatpush.msrb.mxu1 %v5070_v10  ;;  %972 = vmatpush.msrb.mxu3 %v5070_v10 }
  0x94   :  { %723 = vmatmul.f32.gmra.mxu2 %v4848_v7 }
  0x96   :  { %773 = vmatmul.f32.gmra.mxu3 %v4848_v7  ;;  %v5064_v24 = vpop.f32.mrf.mxu1  ;;  %v5076_v7 = vld [vmem:[#allocation6 + $0x20] sm:$0xff] }
  0x97   :  { %v5062_v22 = vpop.f32.mrf.mxu0  ;;  %852 = vmatpush.msrb.mxu0 %v5076_v7  ;;  %952 = vmatpush.msrb.mxu2 %v5076_v7 }
  0x99   :  { %659 = vmatmul.f32.gmra.mxu1 %v4868_v17  ;;  %v5091_v17 = vpop.f32.mrf.mxu2 }
  0x9a   :  { %599 = vmatmul.f32.gmra.mxu0 %v4857_v11  ;;  %v5086_v11 = vld [vmem:[#allocation6 + $0x18] sm:$0xff] }
  0x9b   :  { %873 = vmatpush.msrb.mxu1 %v5086_v11  ;;  %973 = vmatpush.msrb.mxu3 %v5086_v11 }
  0x9c   :  { %727 = vmatmul.f32.gmra.mxu2 %v4870_v18 }
  0x9e   :  { %777 = vmatmul.f32.gmra.mxu3 %v4870_v18  ;;  %v5080_v25 = vpop.f32.mrf.mxu1  ;;  %v5094_v18 = vld [vmem:[#allocation6 + $0x10] sm:$0xff] }
  0x9f   :  { %v5078_v14 = vpop.f32.mrf.mxu0  ;;  %853 = vmatpush.msrb.mxu0 %v5094_v18  ;;  %953 = vmatpush.msrb.mxu2 %v5094_v18 }
  0xa1   :  { %665 = vmatmul.f32.gmra.mxu1 %v4890_v26  ;;  %v5106_v26 = vld [vmem:[#allocation6 + $0x8] sm:$0xff]  ;;  %v5123_v32 = vpop.f32.mrf.mxu2 }
  0xa2   :  { %604 = vmatmul.f32.gmra.mxu0 %v4882_v23  ;;  %v5102_v23 = vpop.f32.mrf.mxu3  ;;  %874 = vmatpush.msrb.mxu1 %v5106_v26 }
  0xa3   :  { %974 = vmatpush.msrb.mxu3 %v5106_v26 }
  0xa4   :  { %731 = vmatmul.f32.gmra.mxu2 %v4892_v27  ;;  %1067 = vmatpush.msra.mxu1 %v5005_v4 }
  0xa5   :  { %1167 = vmatpush.msra.mxu3 %v5005_v4 }
  0xa6   :  { %781 = vmatmul.f32.gmra.mxu3 %v4892_v27  ;;  %v5098_v29 = vpop.f32.mrf.mxu1  ;;  %v5114_v27 = vld [vmem:[#allocation6] sm:$0xff]  ;;  %1068 = vmatpush.msra.mxu1 %v5016_v8 }
  0xa7   :  { %v5096_v28 = vpop.f32.mrf.mxu0  ;;  %6837 = vst [vmem:[#allocation9_spill] sm:$0xff] %v5098_v29  ;;  %854 = vmatpush.msrb.mxu0 %v5114_v27  ;;  %954 = vmatpush.msrb.mxu2 %v5114_v27 }
  0xa8   :  { %1069 = vmatpush.msra.mxu1 %v5027_v12  ;;  %1168 = vmatpush.msra.mxu3 %v5016_v8 }
  0xa9   :  { %671 = vmatmul.f32.gmra.mxu1 %v4910_v33  ;;  %1047 = vmatpush.msra.mxu0 %v5010_v5  ;;  %v5151_v36 = vpop.f32.mrf.mxu2 }
  0xaa   :  { %609 = vmatmul.f32.gmra.mxu0 %v4902_v30  ;;  %1147 = vmatpush.msra.mxu2 %v5010_v5  ;;  %v5133_v33 = vpop.f32.mrf.mxu3 }
  0xab   :  { %1048 = vmatpush.msra.mxu0 %v5021_v9  ;;  %1070 = vmatpush.msra.mxu1 %v5038_v15 }
  0xac   :  { %735 = vmatmul.f32.gmra.mxu2 %v4912_v34  ;;  %1169 = vmatpush.msra.mxu3 %v5027_v12 }
  0xad   :  { %1049 = vmatpush.msra.mxu0 %v5032_v13  ;;  %1071 = vmatpush.msra.mxu1 %v5054_v21 }
  0xae   :  { %785 = vmatmul.f32.gmra.mxu3 %v4912_v34  ;;  %v5119_v31 = vpop.f32.mrf.mxu1  ;;  %1148 = vmatpush.msra.mxu2 %v5021_v9 }
  0xaf   :  { %v5117_v30 = vpop.f32.mrf.mxu0  ;;  %6839 = vst [vmem:[#allocation11_spill] sm:$0xff] %v5119_v31  ;;  %1050 = vmatpush.msra.mxu0 %v5044_v16  ;;  %1072 = vmatpush.msra.mxu1 %v5070_v10 }
  0xb0   :  { %6838 = vst [vmem:[#allocation10_spill] sm:$0xff] %v5117_v30  ;;  %1149 = vmatpush.msra.mxu2 %v5032_v13  ;;  %1170 = vmatpush.msra.mxu3 %v5038_v15  ;;  %v44_v30 = vld [vmem:[#allocation6 + $0x210] ss:$8 sm:$0x3] }
  0xb1   :  { %677 = vmatmul.f32.gmra.mxu1 %v4930_v42  ;;  %1051 = vmatpush.msra.mxu0 %v5060_v6  ;;  %v5176_v40 = vpop.f32.mrf.mxu2 }
  0xb2   :  { %614 = vmatmul.f32.gmra.mxu0 %v4922_v37  ;;  %1073 = vmatpush.msra.mxu1 %v5086_v11  ;;  %v5161_v37 = vpop.f32.mrf.mxu3  ;;  %6844 = vst [vmem:[#allocation16_spill] sm:$0xff] %v5176_v40 }
  0xb3   :  { %1052 = vmatpush.msra.mxu0 %v5076_v7  ;;  %1171 = vmatpush.msra.mxu3 %v5054_v21 }
  0xb4   :  { %739 = vmatmul.f32.gmra.mxu2 %v4932_v43  ;;  %1074 = vmatpush.msra.mxu1 %v5106_v26 }
  0xb5   :  { %1053 = vmatpush.msra.mxu0 %v5094_v18  ;;  %1150 = vmatpush.msra.mxu2 %v5044_v16 }
  0xb6   :  { %789 = vmatmul.f32.gmra.mxu3 %v4932_v43  ;;  %v5143_v35 = vpop.f32.mrf.mxu1 }
  0xb7   :  { %v5141_v34 = vpop.f32.mrf.mxu0  ;;  %6841 = vst [vmem:[#allocation13_spill] sm:$0xff] %v5143_v35  ;;  %1054 = vmatpush.msra.mxu0 %v5114_v27  ;;  %1151 = vmatpush.msra.mxu2 %v5060_v6 }
  0xb8   :  { %6840 = vst [vmem:[#allocation12_spill] sm:$0xff] %v5141_v34  ;;  %1172 = vmatpush.msra.mxu3 %v5070_v10 }
  0xb9   :  { %683 = vmatmul.f32.gmra.mxu1 %v4948_v52  ;;  %1152 = vmatpush.msra.mxu2 %v5076_v7  ;;  %v5190_v44 = vpop.f32.mrf.mxu2 }
  0xba   :  { %619 = vmatmul.f32.gmra.mxu0 %v4942_v47  ;;  %1173 = vmatpush.msra.mxu3 %v5086_v11  ;;  %v5186_v43 = vpop.f32.mrf.mxu3  ;;  %6848 = vst [vmem:[#allocation20_spill] sm:$0xff] %v5190_v44 }
  0xbb   :  { %1153 = vmatpush.msra.mxu2 %v5094_v18  ;;  %6847 = vst [vmem:[#allocation19_spill] sm:$0xff] %v5186_v43  ;;  %v5302_v43 = vperm.slane %v44_v30, 0 }
  0xbc   :  { %743 = vmatmul.f32.gmra.mxu2 %v4950_v53  ;;  %1174 = vmatpush.msra.mxu3 %v5106_v26 }
  0xbd   :  { %1154 = vmatpush.msra.mxu2 %v5114_v27 }
  0xbe   :  { %793 = vmatmul.f32.gmra.mxu3 %v4950_v53  ;;  %v5166_v39 = vpop.f32.mrf.mxu1 }
  0xbf   :  { %v5164_v38 = vpop.f32.mrf.mxu0  ;;  %6843 = vst [vmem:[#allocation15_spill] sm:$0xff] %v5166_v39 }
  0xc0   :  { %6842 = vst [vmem:[#allocation14_spill] sm:$0xff] %v5164_v38 }
  0xc1   :  { %689 = vmatmul.f32.gmra.mxu1 %v4965_v60  ;;  %v5210_v51 = vpop.f32.mrf.mxu2 }
  0xc2   :  { %624 = vmatmul.f32.gmra.mxu0 %v4959_v57  ;;  %v5196_v47 = vpop.f32.mrf.mxu3  ;;  %6850 = vst [vmem:[#allocation22_spill] sm:$0xff] %v5210_v51 }
  0xc3   :  { %6849 = vst [vmem:[#allocation21_spill] sm:$0xff] %v5196_v47 }
  0xc4   :  { %747 = vmatmul.f32.gmra.mxu2 %v4967_v61 }
  0xc6   :  { %797 = vmatmul.f32.gmra.mxu3 %v4967_v61  ;;  %v5184_v42 = vpop.f32.mrf.mxu1 }
  0xc7   :  { %v5182_v41 = vpop.f32.mrf.mxu0  ;;  %6846 = vst [vmem:[#allocation18_spill] sm:$0xff] %v5184_v42 }
  0xc8   :  { %6845 = vst [vmem:[#allocation17_spill] sm:$0xff] %v5182_v41 }
  0xc9   :  { %695 = vmatmul.f32.gmra.mxu1 %v4978_v1  ;;  %v5228_v55 = vpop.f32.mrf.mxu2 }
  0xca   :  { %629 = vmatmul.f32.gmra.mxu0 %v4973_v63  ;;  %v5216_v52 = vpop.f32.mrf.mxu3  ;;  %6852 = vst [vmem:[#allocation24_spill] sm:$0xff] %v5228_v55 }
  0xcb   :  { %6851 = vst [vmem:[#allocation23_spill] sm:$0xff] %v5216_v52 }
  0xce   :  { %v5194_v46 = vpop.f32.mrf.mxu1 }
  0xcf   :  { %v5192_v45 = vpop.f32.mrf.mxu0 }
  0xd1   :  { %875 = vmatmul.f32.vlgmr.msrb.gmra.mxu1 %v6821_v48  ;;  %v5236_v59 = vpop.f32.mrf.mxu2 }
  0xd2   :  { %855 = vmatmul.f32.vlgmr.msrb.gmra.mxu0 %v6821_v48  ;;  %1267 = vmatpush.msrb.mxu1 %v5005_v4  ;;  %v5230_v56 = vpop.f32.mrf.mxu3  ;;  %6856 = vst [vmem:[#allocation28_spill] sm:$0xff] %v5236_v59 }
  0xd3   :  { %1247 = vmatpush.msrb.mxu0 %v5010_v5  ;;  %6853 = vst [vmem:[#allocation25_spill] sm:$0xff] %v5230_v56 }
  0xd4   :  { %1268 = vmatpush.msrb.mxu1 %v5016_v8 }
  0xd5   :  { %1248 = vmatpush.msrb.mxu0 %v5021_v9 }
  0xd6   :  { %v5206_v50 = vpop.f32.mrf.mxu1  ;;  %1269 = vmatpush.msrb.mxu1 %v5027_v12 }
  0xd7   :  { %v5204_v49 = vpop.f32.mrf.mxu0  ;;  %1249 = vmatpush.msrb.mxu0 %v5032_v13 }
  0xd8   :  { %1270 = vmatpush.msrb.mxu1 %v5038_v15 }
  0xd9   :  { %1250 = vmatpush.msrb.mxu0 %v5044_v16  ;;  %v461_v63 = vpop.f32.mrf.mxu2 }
  0xda   :  { %1271 = vmatpush.msrb.mxu1 %v5054_v21  ;;  %v5242_v62 = vpop.f32.mrf.mxu3 }
  0xdb   :  { %1251 = vmatpush.msrb.mxu0 %v5060_v6  ;;  %6859 = vst [vmem:[#allocation31_spill] sm:$0xff] %v5242_v62 }
  0xdc   :  { %1272 = vmatpush.msrb.mxu1 %v5070_v10 }
  0xdd   :  { %1252 = vmatpush.msrb.mxu0 %v5076_v7 }
  0xde   :  { %v5222_v54 = vpop.f32.mrf.mxu1  ;;  %1273 = vmatpush.msrb.mxu1 %v5086_v11 }
  0xdf   :  { %v5220_v53 = vpop.f32.mrf.mxu0  ;;  %1253 = vmatpush.msrb.mxu0 %v5094_v18 }
  0xe0   :  { %1274 = vmatpush.msrb.mxu1 %v5106_v26 }
  0xe1   :  { %1254 = vmatpush.msrb.mxu0 %v5114_v27  ;;  %v5252_v42 = vpop.f32.mrf.mxu2 }
  0xe2   :  { %v543_v2 = vpop.f32.mrf.mxu3 }
  0xe6   :  { %v5234_v58 = vpop.f32.mrf.mxu1 }
  0xe7   :  { %v5232_v57 = vpop.f32.mrf.mxu0  ;;  %6855 = vst [vmem:[#allocation27_spill] sm:$0xff] %v5234_v58 }
  0xe8   :  { %6854 = vst [vmem:[#allocation26_spill] sm:$0xff] %v5232_v57 }
  0xe9   :  { %v5260_v55 = vpop.f32.mrf.mxu2 }
  0xea   :  { %v5254_v41 = vpop.f32.mrf.mxu3 }
  0xee   :  { %v5240_v61 = vpop.f32.mrf.mxu1 }
  0xef   :  { %v5238_v60 = vpop.f32.mrf.mxu0  ;;  %6858 = vst [vmem:[#allocation30_spill] sm:$0xff] %v5240_v61 }
  0xf0   :  { %6857 = vst [vmem:[#allocation29_spill] sm:$0xff] %v5238_v60 }
  0xf2   :  { %v5262_v62 = vpop.f32.mrf.mxu3 }
  0xf6   :  { %v5246_v1 = vpop.f32.mrf.mxu1 }
  0xf7   :  { %v5244_v0 = vpop.f32.mrf.mxu0  ;;  %6861 = vst [vmem:[#allocation33_spill] sm:$0xff] %v5246_v1  ;;  %v5264_v1 = vpop.f32.mrf.mxu2 }
  0xf8   :  { %6860 = vst [vmem:[#allocation32_spill] sm:$0xff] %v5244_v0 }
  0xfe   :  { %v5250_v48 = vpop.f32.mrf.mxu1 }
  0xff   :  { %v5248_v3 = vpop.f32.mrf.mxu0  ;;  %6863 = vst [vmem:[#allocation35_spill] sm:$0xff] %v5250_v48  ;;  %v5270_v48 = vpop.f32.mrf.mxu3 }
 0x100   :  { %6862 = vst [vmem:[#allocation34_spill] sm:$0xff] %v5248_v3  ;;  %v5272_v52 = vpop.f32.mrf.mxu2 }
 0x101   :  { %6866 = vst [vmem:[#allocation38_spill] sm:$0xff] %v5272_v52  ;;  %v5294_v52 = vperm.slane %v44_v30, 1 }
 0x106   :  { %v5258_v56 = vpop.f32.mrf.mxu1 }
 0x107   :  { %v5256_v59 = vpop.f32.mrf.mxu0  ;;  %6865 = vst [vmem:[#allocation37_spill] sm:$0xff] %v5258_v56  ;;  %v5278_v56 = vpop.f32.mrf.mxu3 }
 0x108   :  { %6864 = vst [vmem:[#allocation36_spill] sm:$0xff] %v5256_v59  ;;  %v5284_v61 = vpop.f32.mrf.mxu2 }
 0x109   :  { %6867 = vst [vmem:[#allocation39_spill] sm:$0xff] %v5278_v56 }
 0x10a   :  { %6870 = vst [vmem:[#allocation42_spill] sm:$0xff] %v5284_v61  ;;  %v462_v61 = vadd.f32 %v461_v63, %v5294_v52 }
 0x10e   :  { %v654_v38 = vpop.f32.mrf.mxu1 }
 0x10f   :  { %v595_v39 = vpop.f32.mrf.mxu0  ;;  %v5286_v60 = vpop.f32.mrf.mxu3 }
 0x110   :  { %6871 = vst [vmem:[#allocation43_spill] sm:$0xff] %v5286_v60  ;;  %v5292_v31 = vpop.f32.mrf.mxu2  ;;  %v99_v60 = vadd.f32 %v5046_v19, %v5302_v43 }
 0x111   :  { %6874 = vst [vmem:[#allocation46_spill] sm:$0xff] %v5292_v31 }
 0x116   :  { %v5268_v3 = vpop.f32.mrf.mxu1 }
 0x117   :  { %v5266_v0 = vpop.f32.mrf.mxu0  ;;  %v5296_v58 = vpop.f32.mrf.mxu3 }
 0x118   :  { %6875 = vst [vmem:[#allocation47_spill] sm:$0xff] %v5296_v58  ;;  %v181_v58 = vadd.f32 %v5048_v20, %v99_v60 }
 0x11a   :  { %v233_v30 = vadd.f32 %v5091_v17, %v181_v58 }
 0x11c   :  { %v292_v19 = vadd.f32 %v5102_v23, %v233_v30 }
 0x11e   :  { %v5276_v59 = vpop.f32.mrf.mxu1 }
 0x11f   :  { %v5274_v51 = vpop.f32.mrf.mxu0  ;;  %v5314_v40 = vpop.f32.mrf.mxu3 }
 0x120   :  { %6880 = vst [vmem:[#allocation52_spill] sm:$0xff] %v5314_v40 }
 0x126   :  { %v5282_v34 = vpop.f32.mrf.mxu1 }
 0x127   :  { %v5280_v35 = vpop.f32.mrf.mxu0  ;;  %6869 = vst [vmem:[#allocation41_spill] sm:$0xff] %v5282_v34 }
 0x128   :  { %6868 = vst [vmem:[#allocation40_spill] sm:$0xff] %v5280_v35 }
 0x12e   :  { %v5290_v44 = vpop.f32.mrf.mxu1 }
 0x12f   :  { %v5288_v47 = vpop.f32.mrf.mxu0  ;;  %6873 = vst [vmem:[#allocation45_spill] sm:$0xff] %v5290_v44  ;;  %v544_v44 = vadd.f32 %v543_v2, %v462_v61  ;;  %v358_v61 = vadd.f32 %v5192_v45, %v292_v19 }
 0x130   :  { %6872 = vst [vmem:[#allocation44_spill] sm:$0xff] %v5288_v47  ;;  %v5307_v47 = vpop.f32.mrf.mxu2 }
 0x131   :  { %6878 = vst [vmem:[#allocation50_spill] sm:$0xff] %v5307_v47  ;;  %v770_v47 = vpop.f32.mrf.mxu3 }
 0x136   :  { %v5300_v57 = vpop.f32.mrf.mxu1 }
 0x137   :  { %v5298_v56 = vpop.f32.mrf.mxu0  ;;  %6877 = vst [vmem:[#allocation49_spill] sm:$0xff] %v5300_v57 }
 0x138   :  { %6876 = vst [vmem:[#allocation48_spill] sm:$0xff] %v5298_v56  ;;  %v596_v56 = vadd.f32 %v595_v39, %v544_v44  ;;  %v720_v35 = vpop.f32.mrf.mxu2 }
 0x13a   :  { %v655_v57 = vadd.f32 %v654_v38, %v596_v56 }
 0x13c   :  { %v721_v2 = vadd.f32 %v720_v35, %v655_v57 }
 0x13e   :  { %v5311_v34 = vpop.f32.mrf.mxu1  ;;  %v771_v20 = vadd.f32 %v770_v47, %v721_v2 }
 0x13f   :  { %v5309_v31 = vpop.f32.mrf.mxu0  ;;  %6879 = vst [vmem:[#allocation51_spill] sm:$0xff] %v5311_v34  ;;  %v408_v34 = vadd.f32 %v5194_v46, %v358_v61 }
 0x146   :  { %v5319_v29 = vpop.f32.mrf.mxu1 }
 0x147   :  { %v5317_v63 = vpop.f32.mrf.mxu0  ;;  %6882 = vst [vmem:[#allocation54_spill] sm:$0xff] %v5319_v29 }
 0x148   :  { %6881 = vst [vmem:[#allocation53_spill] sm:$0xff] %v5317_v63 }
 0x14e   :  { %v876_v40 = vpop.f32.mrf.mxu1 }
 0x14f   :  { %v856_v60 = vpop.f32.mrf.mxu0  ;;  %v880_v44 = vadd.f32 %v876_v40, %v771_v20 }
 0x150   :  { %v879_v39 = vadd.f32 %v856_v60, %v408_v34 }
 0x151   :  { %v4516_v38 = vmul.f32 -1.442695, %v880_v44 }
 0x152   :  { %v4515_v17 = vmul.f32 -1.442695, %v879_v39 }
 0x154   :  { %4605 = vpow2.f32 %v4515_v17 }
 0x155   :  { %4607 = vpow2.f32 %v4516_v38 }
 0x15a   :  { %v4606_v56 = vpop.eup %4605 }
 0x15b   :  { %v4608_v58 = vpop.eup %4607  ;;  %v887_v29 = vadd.f32 1.0, %v4606_v56 }
 0x15c   :  { %v888_v63 = vadd.f32 1.0, %v4608_v58 }
 0x15d   :  { %4609 = vrcp.f32 %v887_v29  ;;  %v900_v20 = vand.u32 2147483648, %v887_v29  ;;  %vm894_vm5 = vweird.f32 %v887_v29  ;;  %v898_v39 = vand.u32 2147483647, %v887_v29 }
 0x15e   :  { %4611 = vrcp.f32 %v888_v63  ;;  %v915_v19 = vand.u32 2147483648, %v888_v63  ;;  %v913_v40 = vand.u32 2147483647, %v888_v63  ;;  %vm909_vm3 = vweird.f32 %v888_v63 }
 0x15f   :  { %v901_v58 = vor.u32 1.1754944e-38, %v900_v20  ;;  %vm899_vm8 = vcmp.eq.f32.partialorder %v898_v39, 8.507059e+37 }
 0x160   :  { %v916_v60 = vor.u32 1.1754944e-38, %v915_v19  ;;  %vm914_vm6 = vcmp.eq.f32.partialorder %v913_v40, 8.507059e+37  ;;  %v724_v19 = vpop.f32.mrf.mxu2 }
 0x163   :  { %v4610_v23 = vpop.eup %4609 }
 0x164   :  { %v4612_v35 = vpop.eup %4611  ;;  %v890_v45 = vmul.f32 %v4610_v23, %v887_v29  ;;  %vm895_vm2 = vweird.f32 %v4610_v23 }
 0x165   :  { %v905_v57 = vmul.f32 %v4612_v35, %v888_v63  ;;  %vm910_vm1 = vweird.f32 %v4612_v35  ;;  %vm896_vm7 = vmor %vm894_vm5, %vm895_vm2 }
 0x166   :  { %v891_v46 = vsub.f32 1.0, %v890_v45  ;;  %vm911_vm4 = vmor %vm909_vm3, %vm910_vm1 }
 0x167   :  { %v906_v47 = vsub.f32 1.0, %v905_v57 }
 0x168   :  { %v892_v30 = vmul.f32 %v4610_v23, %v891_v46  ;;  %v5348_v40 = vpop.f32.mrf.mxu2 }
 0x169   :  { %v907_v34 = vmul.f32 %v4612_v35, %v906_v47 }
 0x16a   :  { %v893_v61 = vadd.f32 %v4610_v23, %v892_v30 }
 0x16b   :  { %v908_v2 = vadd.f32 %v4612_v35, %v907_v34  ;;  %v774_v34 = vpop.f32.mrf.mxu3 }
 0x16c   :  { %v897_v38 = vsel %vm896_vm7, %v4610_v23, %v893_v61 }
 0x16d   :  { %v912_v44 = vsel %vm911_vm4, %v4612_v35, %v908_v2  ;;  %v902_v57 = vsel %vm899_vm8, %v901_v58, %v897_v38  ;;  %v470_v38 = vadd.f32 %v5252_v42, %v5294_v52 }
 0x16e   :  { %v917_v17 = vsel %vm914_vm6, %v916_v60, %v912_v44  ;;  %v921_v63 = vmul.f32 0.0, %v902_v57 }
 0x16f   :  { %v919_v56 = vmul.f32 2.0, %v917_v17 }
 0x170   :  { %v5352_v2 = vpop.f32.mrf.mxu2 }
 0x171   :  { %v4517_v45 = vadd.f32 -1.0, %v919_v56  ;;  %v107_v56 = vadd.f32 %v5062_v22, %v5302_v43 }
 0x173   :  { %v922_v46 = vmul.f32 %v4517_v45, %v902_v57  ;;  %v5350_v61 = vpop.f32.mrf.mxu3  ;;  %v548_v57 = vadd.f32 %v5254_v41, %v470_v38 }
 0x175   :  { %924 = vrot.lane.b32.xlu0 %v922_v46, %s4808_s0  ;;  %v185_v46 = vadd.f32 %v5064_v24, %v107_v56 }
 0x178   :  { %v5356_v60 = vpop.f32.mrf.mxu2 }
 0x17b   :  { %v5354_v20 = vpop.f32.mrf.mxu3 }
 0x180   :  { %v5360_v44 = vpop.f32.mrf.mxu2 }
 0x183   :  { %v5358_v39 = vpop.f32.mrf.mxu3 }
 0x188   :  { %v5368_v58 = vpop.f32.mrf.mxu2 }
 0x189   :  { %6883 = vst [vmem:[#allocation55_spill] sm:$0xff] %v5368_v58 }
 0x1e7   :  { %v925_v47 = vpop.permute.xlu0 %924 }
 0x1e8   :  { %v5325_v30 = vadd.f32 %v925_v47, %v921_v63  ;;  %v601_v63 = vadd.f32 %v5266_v0, %v548_v57  ;;  %v238_v47 = vadd.f32 %v5123_v32, %v185_v46 }
 0x1ea   :  { %4613 = vtanh.f32 %v5325_v30  ;;  %v298_v22 = vadd.f32 %v5133_v33, %v238_v47 }
 0x1f0   :  { %v4614_v29 = vpop.eup %4613 }
 0x1f1   :  { %v929_v35 = vmul.f32 %v4614_v29, %v917_v17  ;;  %v5362_v17 = vpop.f32.mrf.mxu3  ;;  %v661_v29 = vadd.f32 %v5268_v3, %v601_v63 }
 0x1f3   :  { %931 = vrot.lane.b32.xlu0 %v929_v35, %s4808_s0  ;;  %v5377_v35 = vpop.f32.mrf.mxu2  ;;  %v725_v58 = vadd.f32 %v724_v19, %v661_v29 }
 0x1f5   :  { %v775_v41 = vadd.f32 %v774_v34, %v725_v58 }
 0x1f9   :  { %v5370_v45 = vpop.f32.mrf.mxu3 }
 0x1fa   :  { %6884 = vst [vmem:[#allocation56_spill] sm:$0xff] %v5370_v45 }
 0x201   :  { %v5379_v42 = vpop.f32.mrf.mxu3 }
 0x202   :  { %6885 = vst [vmem:[#allocation57_spill] sm:$0xff] %v5379_v42 }
 0x265   :  { %v932_v23 = vpop.permute.xlu0 %931 }
 0x266   :  { %934 = vst.msk [vmem:[#allocation2] sm:$0xff] %vm835_vm9, %v932_v23  ;;  %4518 = vmatmul.msk.f32.vlgmr.msrb.gmra.mxu2 %vm835_vm9, %v932_v23  ;;  %4519 = vmatmul.msk.f32.vlgmr.msrb.gmra.mxu3 %vm835_vm9, %v932_v23  ;;  %v362_v23 = vadd.f32 %v5204_v49, %v298_v22 }
 0x267   :  { %1347 = vmatpush.msrb.mxu2 %v5010_v5  ;;  %1367 = vmatpush.msrb.mxu3 %v5005_v4 }
 0x268   :  { %v412_v45 = vadd.f32 %v5206_v50, %v362_v23 }
 0x269   :  { %1348 = vmatpush.msrb.mxu2 %v5021_v9  ;;  %1368 = vmatpush.msrb.mxu3 %v5016_v8 }
 0x26b   :  { %1349 = vmatpush.msrb.mxu2 %v5032_v13  ;;  %1369 = vmatpush.msrb.mxu3 %v5027_v12 }
 0x26d   :  { %1350 = vmatpush.msrb.mxu2 %v5044_v16  ;;  %1370 = vmatpush.msrb.mxu3 %v5038_v15 }
 0x26f   :  { %1351 = vmatpush.msrb.mxu2 %v5060_v6  ;;  %1371 = vmatpush.msrb.mxu3 %v5054_v21 }
 0x271   :  { %1352 = vmatpush.msrb.mxu2 %v5076_v7  ;;  %1372 = vmatpush.msrb.mxu3 %v5070_v10 }
 0x273   :  { %1353 = vmatpush.msrb.mxu2 %v5094_v18  ;;  %1373 = vmatpush.msrb.mxu3 %v5086_v11 }
 0x275   :  { %1354 = vmatpush.msrb.mxu2 %v5114_v27  ;;  %1374 = vmatpush.msrb.mxu3 %v5106_v26 }
 0x2e9   :  { %v956_v38 = vpop.f32.mrf.mxu2  ;;  %v976_v24 = vpop.f32.mrf.mxu3 }
 0x2ea   :  { %v979_v56 = vadd.f32 %v956_v38, %v412_v45  ;;  %v980_v0 = vadd.f32 %v976_v24, %v775_v41 }
 0x2ec   :  { %v4520_v57 = vmul.f32 -1.442695, %v979_v56  ;;  %v4521_v32 = vmul.f32 -1.442695, %v980_v0 }
 0x2ee   :  { %4615 = vpow2.f32 %v4520_v57 }
 0x2ef   :  { %4617 = vpow2.f32 %v4521_v32 }
 0x2f4   :  { %v4616_v3 = vpop.eup %4615 }
 0x2f5   :  { %v4618_v46 = vpop.eup %4617  ;;  %v987_v63 = vadd.f32 1.0, %v4616_v3 }
 0x2f6   :  { %v988_v42 = vadd.f32 1.0, %v4618_v46 }
 0x2f7   :  { %4619 = vrcp.f32 %v987_v63  ;;  %v1000_v38 = vand.u32 2147483648, %v987_v63  ;;  %vm994_vm14 = vweird.f32 %v987_v63  ;;  %v998_v56 = vand.u32 2147483647, %v987_v63 }
 0x2f8   :  { %4621 = vrcp.f32 %v988_v42  ;;  %v1015_v29 = vand.u32 2147483648, %v988_v42  ;;  %v1013_v22 = vand.u32 2147483647, %v988_v42  ;;  %vm1009_vm12 = vweird.f32 %v988_v42 }
 0x2f9   :  { %v1001_v46 = vor.u32 1.1754944e-38, %v1000_v38  ;;  %vm999_vm2 = vcmp.eq.f32.partialorder %v998_v56, 8.507059e+37 }
 0x2fa   :  { %v1016_v24 = vor.u32 1.1754944e-38, %v1015_v29  ;;  %vm1014_vm15 = vcmp.eq.f32.partialorder %v1013_v22, 8.507059e+37  ;;  %v115_v29 = vadd.f32 %v5078_v14, %v5302_v43 }
 0x2fc   :  { %v189_v22 = vadd.f32 %v5080_v25, %v115_v29 }
 0x2fd   :  { %v4620_v33 = vpop.eup %4619 }
 0x2fe   :  { %v4622_v49 = vpop.eup %4621  ;;  %v990_v19 = vmul.f32 %v4620_v33, %v987_v63  ;;  %vm995_vm11 = vweird.f32 %v4620_v33 }
 0x2ff   :  { %v1005_v47 = vmul.f32 %v4622_v49, %v988_v42  ;;  %vm1010_vm10 = vweird.f32 %v4622_v49  ;;  %vm996_vm1 = vmor %vm994_vm14, %vm995_vm11 }
 0x300   :  { %v991_v50 = vsub.f32 1.0, %v990_v19  ;;  %vm1011_vm13 = vmor %vm1009_vm12, %vm1010_vm10 }
 0x301   :  { %v1006_v34 = vsub.f32 1.0, %v1005_v47 }
 0x302   :  { %v992_v58 = vmul.f32 %v4620_v33, %v991_v50 }
 0x303   :  { %v1007_v45 = vmul.f32 %v4622_v49, %v1006_v34 }
 0x304   :  { %v993_v23 = vadd.f32 %v4620_v33, %v992_v58 }
 0x305   :  { %v1008_v41 = vadd.f32 %v4622_v49, %v1007_v45 }
 0x306   :  { %v997_v32 = vsel %vm996_vm1, %v4620_v33, %v993_v23 }
 0x307   :  { %v1012_v0 = vsel %vm1011_vm13, %v4622_v49, %v1008_v41  ;;  %v1002_v47 = vsel %vm999_vm2, %v1001_v46, %v997_v32  ;;  %v243_v41 = vadd.f32 %v5151_v36, %v189_v22 }
 0x308   :  { %v1017_v57 = vsel %vm1014_vm15, %v1016_v24, %v1012_v0  ;;  %v1021_v42 = vmul.f32 %v1002_v47, %v5325_v30  ;;  %v478_v30 = vadd.f32 %v5260_v55, %v5294_v52 }
 0x309   :  { %v1019_v3 = vmul.f32 2.0, %v1017_v57  ;;  %v304_v24 = vadd.f32 %v5161_v37, %v243_v41 }
 0x30a   :  { %v552_v45 = vadd.f32 %v5262_v62, %v478_v30 }
 0x30b   :  { %v4522_v19 = vadd.f32 -1.0, %v1019_v3  ;;  %v366_v56 = vadd.f32 %v5220_v53, %v304_v24 }
 0x30c   :  { %v606_v23 = vadd.f32 %v5274_v51, %v552_v45 }
 0x30d   :  { %v1022_v50 = vmul.f32 %v4522_v19, %v1002_v47  ;;  %v416_v55 = vadd.f32 %v5222_v54, %v366_v56 }
 0x30e   :  { %v667_v38 = vadd.f32 %v5276_v59, %v606_v23 }
 0x30f   :  { %1024 = vrot.lane.b32.xlu1 %v1022_v50, %s4808_s0 }
 0x310   :  { %v729_v0 = vadd.f32 %v5348_v40, %v667_v38 }
 0x312   :  { %v779_v14 = vadd.f32 %v5350_v61, %v729_v0 }
 0x381   :  { %v1025_v34 = vpop.permute.xlu1 %1024 }
 0x382   :  { %v5386_v58 = vadd.f32 %v1025_v34, %v1021_v42 }
 0x384   :  { %4623 = vtanh.f32 %v5386_v58 }
 0x38a   :  { %v4624_v63 = vpop.eup %4623 }
 0x38b   :  { %v1029_v49 = vmul.f32 %v4624_v63, %v1017_v57 }
 0x38d   :  { %1031 = vrot.lane.b32.xlu1 %v1029_v49, %s4808_s0 }
 0x3ff   :  { %v1032_v33 = vpop.permute.xlu1 %1031 }
 0x400   :  { %1034 = vst.msk [vmem:[#allocation2 + $0x8] sm:$0xff] %vm835_vm9, %v1032_v33  ;;  %4523 = vmatmul.msk.f32.vlgmr.msra.gmra.mxu0 %vm835_vm9, %v1032_v33  ;;  %4524 = vmatmul.msk.f32.vlgmr.msra.gmra.mxu1 %vm835_vm9, %v1032_v33 }
 0x401   :  { %1447 = vmatpush.msra.mxu0 %v5010_v5  ;;  %1467 = vmatpush.msra.mxu1 %v5005_v4 }
 0x403   :  { %1448 = vmatpush.msra.mxu0 %v5021_v9  ;;  %1468 = vmatpush.msra.mxu1 %v5016_v8 }
 0x405   :  { %1449 = vmatpush.msra.mxu0 %v5032_v13  ;;  %1469 = vmatpush.msra.mxu1 %v5027_v12 }
 0x407   :  { %1450 = vmatpush.msra.mxu0 %v5044_v16  ;;  %1470 = vmatpush.msra.mxu1 %v5038_v15 }
 0x409   :  { %1451 = vmatpush.msra.mxu0 %v5060_v6  ;;  %1471 = vmatpush.msra.mxu1 %v5054_v21 }
 0x40b   :  { %1452 = vmatpush.msra.mxu0 %v5076_v7  ;;  %1472 = vmatpush.msra.mxu1 %v5070_v10 }
 0x40d   :  { %1453 = vmatpush.msra.mxu0 %v5094_v18  ;;  %1473 = vmatpush.msra.mxu1 %v5086_v11 }
 0x40f   :  { %1454 = vmatpush.msra.mxu0 %v5114_v27  ;;  %1474 = vmatpush.msra.mxu1 %v5106_v26 }
 0x47d   :  { %v1056_v57 = vpop.f32.mrf.mxu0  ;;  %v1076_v62 = vpop.f32.mrf.mxu1 }
 0x47e   :  { %v1079_v32 = vadd.f32 %v1056_v57, %v416_v55  ;;  %v1080_v25 = vadd.f32 %v1076_v62, %v779_v14 }
 0x480   :  { %v4525_v3 = vmul.f32 -1.442695, %v1079_v32  ;;  %v4526_v51 = vmul.f32 -1.442695, %v1080_v25 }
 0x482   :  { %4625 = vpow2.f32 %v4525_v3 }
 0x483   :  { %4627 = vpow2.f32 %v4526_v51 }
 0x488   :  { %v4626_v36 = vpop.eup %4625 }
 0x489   :  { %v4628_v59 = vpop.eup %4627  ;;  %v1087_v46 = vadd.f32 1.0, %v4626_v36 }
 0x48a   :  { %v1088_v37 = vadd.f32 1.0, %v4628_v59 }
 0x48b   :  { %4629 = vrcp.f32 %v1087_v46  ;;  %v1100_v30 = vand.u32 2147483648, %v1087_v46  ;;  %vm1094_vm7 = vweird.f32 %v1087_v46  ;;  %v1098_v45 = vand.u32 2147483647, %v1087_v46 }
 0x48c   :  { %4631 = vrcp.f32 %v1088_v37  ;;  %v1115_v42 = vand.u32 2147483648, %v1088_v37  ;;  %v1113_v63 = vand.u32 2147483647, %v1088_v37  ;;  %vm1109_vm5 = vweird.f32 %v1088_v37 }
 0x48d   :  { %v1101_v24 = vor.u32 1.1754944e-38, %v1100_v30  ;;  %vm1099_vm11 = vcmp.eq.f32.partialorder %v1098_v45, 8.507059e+37 }
 0x48e   :  { %v1116_v29 = vor.u32 1.1754944e-38, %v1115_v42  ;;  %vm1114_vm8 = vcmp.eq.f32.partialorder %v1113_v63, 8.507059e+37 }
 0x491   :  { %v4630_v53 = vpop.eup %4629 }
 0x492   :  { %v4632_v40 = vpop.eup %4631  ;;  %v1090_v19 = vmul.f32 %v4630_v53, %v1087_v46  ;;  %vm1095_vm4 = vweird.f32 %v4630_v53 }
 0x493   :  { %v1105_v54 = vmul.f32 %v4632_v40, %v1088_v37  ;;  %vm1110_vm3 = vweird.f32 %v4632_v40  ;;  %vm1096_vm10 = vmor %vm1094_vm7, %vm1095_vm4 }
 0x494   :  { %v1091_v47 = vsub.f32 1.0, %v1090_v19  ;;  %vm1111_vm6 = vmor %vm1109_vm5, %vm1110_vm3 }
 0x495   :  { %v1106_v61 = vsub.f32 1.0, %v1105_v54 }
 0x496   :  { %v1092_v50 = vmul.f32 %v4630_v53, %v1091_v47 }
 0x497   :  { %v1107_v34 = vmul.f32 %v4632_v40, %v1106_v61 }
 0x498   :  { %v1093_v49 = vadd.f32 %v4630_v53, %v1092_v50 }
 0x499   :  { %v1108_v33 = vadd.f32 %v4632_v40, %v1107_v34 }
 0x49a   :  { %v1097_v41 = vsel %vm1096_vm10, %v4630_v53, %v1093_v49 }
 0x49b   :  { %v1112_v22 = vsel %vm1111_vm6, %v4632_v40, %v1108_v33  ;;  %v1102_v0 = vsel %vm1099_vm11, %v1101_v24, %v1097_v41 }
 0x49c   :  { %v1117_v23 = vsel %vm1114_vm8, %v1116_v29, %v1112_v22  ;;  %v1121_v14 = vmul.f32 %v1102_v0, %v5386_v58 }
 0x49d   :  { %v1119_v38 = vmul.f32 2.0, %v1117_v23 }
 0x49f   :  { %v4527_v56 = vadd.f32 -1.0, %v1119_v38 }
 0x4a1   :  { %v1122_v55 = vmul.f32 %v4527_v56, %v1102_v0 }
 0x4a3   :  { %1124 = vrot.lane.b32.xlu2 %v1122_v55, %s4808_s0 }
 0x4fd   :  { %v1125_v57 = vpop.permute.xlu2 %1124 }
 0x4fe   :  { %v5425_v62 = vadd.f32 %v1125_v57, %v1121_v14 }
 0x500   :  { %4633 = vtanh.f32 %v5425_v62 }
 0x506   :  { %v4634_v32 = vpop.eup %4633 }
 0x507   :  { %v1129_v25 = vmul.f32 %v4634_v32, %v1117_v23 }
 0x509   :  { %1131 = vrot.lane.b32.xlu2 %v1129_v25, %s4808_s0 }
 0x563   :  { %v1132_v3 = vpop.permute.xlu2 %1131 }
 0x564   :  { %1134 = vst.msk [vmem:[#allocation2 + $0x10] sm:$0xff] %vm835_vm9, %v1132_v3  ;;  %4528 = vmatmul.msk.f32.vlgmr.msra.gmra.mxu2 %vm835_vm9, %v1132_v3  ;;  %4529 = vmatmul.msk.f32.vlgmr.msra.gmra.mxu3 %vm835_vm9, %v1132_v3 }
 0x565   :  { %1547 = vmatpush.msra.mxu2 %v5010_v5  ;;  %1567 = vmatpush.msra.mxu3 %v5005_v4  ;;  %v486_v4 = vadd.f32 %v5264_v1, %v5294_v52  ;;  %v123_v5 = vadd.f32 %v5096_v28, %v5302_v43  ;;  %v6892_v1 = vld [vmem:[#allocation27_spill] sm:$0xff] }
 0x567   :  { %1548 = vmatpush.msra.mxu2 %v5021_v9  ;;  %1568 = vmatpush.msra.mxu3 %v5016_v8  ;;  %v556_v8 = vadd.f32 %v5270_v48, %v486_v4  ;;  %v6886_v9 = vld [vmem:[#allocation9_spill] sm:$0xff] }
 0x569   :  { %1549 = vmatpush.msra.mxu2 %v5032_v13  ;;  %1569 = vmatpush.msra.mxu3 %v5027_v12  ;;  %v193_v12 = vadd.f32 %v6886_v9, %v123_v5  ;;  %v6887_v13 = vld [vmem:[#allocation40_spill] sm:$0xff]  ;;  %v6893_v9 = vld [vmem:[#allocation38_spill] sm:$0xff] }
 0x56b   :  { %1550 = vmatpush.msra.mxu2 %v5044_v16  ;;  %1570 = vmatpush.msra.mxu3 %v5038_v15  ;;  %v611_v15 = vadd.f32 %v6887_v13, %v556_v8  ;;  %v6888_v16 = vld [vmem:[#allocation16_spill] sm:$0xff] }
 0x56d   :  { %1551 = vmatpush.msra.mxu2 %v5060_v6  ;;  %1571 = vmatpush.msra.mxu3 %v5054_v21  ;;  %v248_v21 = vadd.f32 %v6888_v16, %v193_v12  ;;  %v6889_v6 = vld [vmem:[#allocation41_spill] sm:$0xff]  ;;  %v494_v12 = vadd.f32 %v6893_v9, %v5294_v52 }
 0x56f   :  { %1552 = vmatpush.msra.mxu2 %v5076_v7  ;;  %1572 = vmatpush.msra.mxu3 %v5070_v10  ;;  %v673_v10 = vadd.f32 %v6889_v6, %v611_v15  ;;  %v6890_v7 = vld [vmem:[#allocation19_spill] sm:$0xff] }
 0x570   :  { %v6895_v15 = vld [vmem:[#allocation39_spill] sm:$0xff] }
 0x571   :  { %1553 = vmatpush.msra.mxu2 %v5094_v18  ;;  %1573 = vmatpush.msra.mxu3 %v5086_v11  ;;  %v310_v11 = vadd.f32 %v6890_v7, %v248_v21  ;;  %v6891_v18 = vld [vmem:[#allocation26_spill] sm:$0xff]  ;;  %v560_v16 = vadd.f32 %v6895_v15, %v494_v12  ;;  %v6896_v21 = vld [vmem:[#allocation11_spill] sm:$0xff] }
 0x572   :  { %v6903_v15 = vld [vmem:[#allocation42_spill] sm:$0xff] }
 0x573   :  { %1554 = vmatpush.msra.mxu2 %v5114_v27  ;;  %1574 = vmatpush.msra.mxu3 %v5106_v26  ;;  %v370_v26 = vadd.f32 %v6891_v18, %v310_v11  ;;  %v733_v27 = vadd.f32 %v5352_v2, %v673_v10  ;;  %v6897_v10 = vld [vmem:[#allocation44_spill] sm:$0xff] }
 0x574   :  { %v616_v7 = vadd.f32 %v6897_v10, %v560_v16  ;;  %v6898_v11 = vld [vmem:[#allocation20_spill] sm:$0xff]  ;;  %v502_v16 = vadd.f32 %v6903_v15, %v5294_v52 }
 0x575   :  { %v420_v58 = vadd.f32 %v6892_v1, %v370_v26  ;;  %v783_v28 = vadd.f32 %v5354_v20, %v733_v27  ;;  %v6899_v26 = vld [vmem:[#allocation45_spill] sm:$0xff] }
 0x576   :  { %v679_v27 = vadd.f32 %v6899_v26, %v616_v7  ;;  %v6900_v1 = vld [vmem:[#allocation21_spill] sm:$0xff] }
 0x577   :  { %v6906_v7 = vld [vmem:[#allocation13_spill] sm:$0xff] }
 0x5e7   :  { %v1156_v51 = vpop.f32.mrf.mxu2  ;;  %v1176_v48 = vpop.f32.mrf.mxu3 }
 0x5e8   :  { %v1179_v36 = vadd.f32 %v1156_v51, %v420_v58  ;;  %v1180_v59 = vadd.f32 %v1176_v48, %v783_v28  ;;  %v6901_v28 = vld [vmem:[#allocation29_spill] sm:$0xff]  ;;  %v737_v48 = vadd.f32 %v5356_v60, %v679_v27  ;;  %v6908_v27 = vld [vmem:[#allocation22_spill] sm:$0xff] }
 0x5ea   :  { %v4530_v46 = vmul.f32 -1.442695, %v1179_v36  ;;  %v4531_v37 = vmul.f32 -1.442695, %v1180_v59  ;;  %v6902_v36 = vld [vmem:[#allocation30_spill] sm:$0xff] }
 0x5ec   :  { %4635 = vpow2.f32 %v4530_v46  ;;  %v787_v46 = vadd.f32 %v5358_v39, %v737_v48 }
 0x5ed   :  { %4637 = vpow2.f32 %v4531_v37 }
 0x5f2   :  { %v4636_v53 = vpop.eup %4635 }
 0x5f3   :  { %v4638_v40 = vpop.eup %4637  ;;  %v1187_v19 = vadd.f32 1.0, %v4636_v53 }
 0x5f4   :  { %v1188_v54 = vadd.f32 1.0, %v4638_v40 }
 0x5f5   :  { %4639 = vrcp.f32 %v1187_v19  ;;  %v1200_v45 = vand.u32 2147483648, %v1187_v19  ;;  %vm1194_vm1 = vweird.f32 %v1187_v19  ;;  %v1198_v23 = vand.u32 2147483647, %v1187_v19 }
 0x5f6   :  { %4641 = vrcp.f32 %v1188_v54  ;;  %v1215_v63 = vand.u32 2147483648, %v1188_v54  ;;  %v1213_v33 = vand.u32 2147483647, %v1188_v54  ;;  %vm1209_vm14 = vweird.f32 %v1188_v54 }
 0x5f7   :  { %v1201_v0 = vor.u32 1.1754944e-38, %v1200_v45  ;;  %vm1199_vm4 = vcmp.eq.f32.partialorder %v1198_v23, 8.507059e+37 }
 0x5f8   :  { %v1216_v22 = vor.u32 1.1754944e-38, %v1215_v63  ;;  %vm1214_vm2 = vcmp.eq.f32.partialorder %v1213_v33, 8.507059e+37 }
 0x5fb   :  { %v4640_v47 = vpop.eup %4639 }
 0x5fc   :  { %v4642_v2 = vpop.eup %4641  ;;  %v1190_v61 = vmul.f32 %v4640_v47, %v1187_v19  ;;  %vm1195_vm13 = vweird.f32 %v4640_v47 }
 0x5fd   :  { %v1205_v50 = vmul.f32 %v4642_v2, %v1188_v54  ;;  %vm1210_vm12 = vweird.f32 %v4642_v2  ;;  %vm1196_vm3 = vmor %vm1194_vm1, %vm1195_vm13 }
 0x5fe   :  { %v1191_v42 = vsub.f32 1.0, %v1190_v61  ;;  %vm1211_vm15 = vmor %vm1209_vm14, %vm1210_vm12 }
 0x5ff   :  { %v1206_v20 = vsub.f32 1.0, %v1205_v50 }
 0x600   :  { %v1192_v34 = vmul.f32 %v4640_v47, %v1191_v42 }
 0x601   :  { %v1207_v49 = vmul.f32 %v4642_v2, %v1206_v20 }
 0x602   :  { %v1193_v30 = vadd.f32 %v4640_v47, %v1192_v34 }
 0x603   :  { %v1208_v29 = vadd.f32 %v4642_v2, %v1207_v49 }
 0x604   :  { %v1197_v24 = vsel %vm1196_vm3, %v4640_v47, %v1193_v30 }
 0x605   :  { %v1212_v41 = vsel %vm1211_vm15, %v4642_v2, %v1208_v29  ;;  %v1202_v14 = vsel %vm1199_vm4, %v1201_v0, %v1197_v24 }
 0x606   :  { %v1217_v38 = vsel %vm1214_vm2, %v1216_v22, %v1212_v41  ;;  %v1221_v32 = vmul.f32 %v1202_v14, %v5425_v62  ;;  %v6894_v62 = vld [vmem:[#allocation10_spill] sm:$0xff] }
 0x607   :  { %v1219_v56 = vmul.f32 2.0, %v1217_v38  ;;  %v131_v13 = vadd.f32 %v6894_v62, %v5302_v43 }
 0x609   :  { %v4532_v55 = vadd.f32 -1.0, %v1219_v56  ;;  %v197_v6 = vadd.f32 %v6896_v21, %v131_v13 }
 0x60b   :  { %v1222_v57 = vmul.f32 %v4532_v55, %v1202_v14  ;;  %v253_v18 = vadd.f32 %v6898_v11, %v197_v6  ;;  %v6905_v6 = vld [vmem:[#allocation43_spill] sm:$0xff] }
 0x60c   :  { %v564_v10 = vadd.f32 %v6905_v6, %v502_v16 }
 0x60d   :  { %1224 = vrot.lane.b32.xlu0 %v1222_v57, %s4808_s0  ;;  %v316_v58 = vadd.f32 %v6900_v1, %v253_v18  ;;  %v6907_v18 = vld [vmem:[#allocation48_spill] sm:$0xff] }
 0x60e   :  { %v621_v26 = vadd.f32 %v6907_v18, %v564_v10 }
 0x60f   :  { %v374_v51 = vadd.f32 %v6901_v28, %v316_v58  ;;  %v6909_v58 = vld [vmem:[#allocation49_spill] sm:$0xff] }
 0x610   :  { %v685_v28 = vadd.f32 %v6909_v58, %v621_v26 }
 0x611   :  { %v424_v59 = vadd.f32 %v6902_v36, %v374_v51  ;;  %v6910_v51 = vld [vmem:[#allocation23_spill] sm:$0xff]  ;;  %v6911_v36 = vld [vmem:[#allocation32_spill] sm:$0xff] }
 0x67f   :  { %v1225_v25 = vpop.permute.xlu0 %1224 }
 0x680   :  { %v5464_v3 = vadd.f32 %v1225_v25, %v1221_v32 }
 0x682   :  { %4643 = vtanh.f32 %v5464_v3 }
 0x688   :  { %v4644_v4 = vpop.eup %4643 }
 0x689   :  { %v1229_v5 = vmul.f32 %v4644_v4, %v1217_v38 }
 0x68b   :  { %1231 = vrot.lane.b32.xlu1 %v1229_v5, %s4808_s0 }
 0x6fd   :  { %v1232_v8 = vpop.permute.xlu1 %1231 }
 0x6fe   :  { %1234 = vst.msk [vmem:[#allocation2 + $0x18] sm:$0xff] %vm835_vm9, %v1232_v8  ;;  %4533 = vmatmul.msk.f32.vlgmr.msrb.gmra.mxu0 %vm835_vm9, %v1232_v8  ;;  %4534 = vmatmul.msk.f32.vlgmr.msrb.gmra.mxu1 %vm835_vm9, %v1232_v8 }
 0x77b   :  { %v1256_v37 = vpop.f32.mrf.mxu0  ;;  %v1276_v53 = vpop.f32.mrf.mxu1 }
 0x77c   :  { %v1279_v40 = vadd.f32 %v1256_v37, %v424_v59  ;;  %v1280_v19 = vadd.f32 %v1276_v53, %v787_v46  ;;  %v741_v46 = vadd.f32 %v5360_v44, %v685_v28  ;;  %v6912_v37 = vld [vmem:[#allocation33_spill] sm:$0xff] }
 0x77e   :  { %v4535_v54 = vmul.f32 -1.442695, %v1279_v40  ;;  %v4536_v47 = vmul.f32 -1.442695, %v1280_v19  ;;  %v791_v40 = vadd.f32 %v5362_v17, %v741_v46 }
 0x780   :  { %4645 = vpow2.f32 %v4535_v54 }
 0x781   :  { %4647 = vpow2.f32 %v4536_v47 }
 0x786   :  { %v4646_v2 = vpop.eup %4645 }
 0x787   :  { %v4648_v61 = vpop.eup %4647  ;;  %v1287_v50 = vadd.f32 1.0, %v4646_v2 }
 0x788   :  { %v1288_v42 = vadd.f32 1.0, %v4648_v61 }
 0x789   :  { %4649 = vrcp.f32 %v1287_v50  ;;  %v1300_v41 = vand.u32 2147483648, %v1287_v50  ;;  %vm1294_vm10 = vweird.f32 %v1287_v50  ;;  %v1298_v24 = vand.u32 2147483647, %v1287_v50 }
 0x78a   :  { %4651 = vrcp.f32 %v1288_v42  ;;  %v1315_v30 = vand.u32 2147483648, %v1288_v42  ;;  %v1313_v45 = vand.u32 2147483647, %v1288_v42  ;;  %vm1309_vm7 = vweird.f32 %v1288_v42 }
 0x78b   :  { %v1301_v57 = vor.u32 1.1754944e-38, %v1300_v41  ;;  %vm1299_vm13 = vcmp.eq.f32.partialorder %v1298_v24, 8.507059e+37 }
 0x78c   :  { %v1316_v38 = vor.u32 1.1754944e-38, %v1315_v30  ;;  %vm1314_vm11 = vcmp.eq.f32.partialorder %v1313_v45, 8.507059e+37 }
 0x78f   :  { %v4650_v20 = vpop.eup %4649 }
 0x790   :  { %v4652_v60 = vpop.eup %4651  ;;  %v1290_v34 = vmul.f32 %v4650_v20, %v1287_v50  ;;  %vm1295_vm6 = vweird.f32 %v4650_v20 }
 0x791   :  { %v1305_v63 = vmul.f32 %v4652_v60, %v1288_v42  ;;  %vm1310_vm5 = vweird.f32 %v4652_v60  ;;  %vm1296_vm12 = vmor %vm1294_vm10, %vm1295_vm6 }
 0x792   :  { %v1291_v49 = vsub.f32 1.0, %v1290_v34  ;;  %vm1311_vm8 = vmor %vm1309_vm7, %vm1310_vm5 }
 0x793   :  { %v1306_v39 = vsub.f32 1.0, %v1305_v63 }
 0x794   :  { %v1292_v33 = vmul.f32 %v4650_v20, %v1291_v49 }
 0x795   :  { %v1307_v29 = vmul.f32 %v4652_v60, %v1306_v39 }
 0x796   :  { %v1293_v22 = vadd.f32 %v4650_v20, %v1292_v33 }
 0x797   :  { %v1308_v23 = vadd.f32 %v4652_v60, %v1307_v29 }
 0x798   :  { %v1297_v55 = vsel %vm1296_vm12, %v4650_v20, %v1293_v22 }
 0x799   :  { %v1312_v56 = vsel %vm1311_vm8, %v4652_v60, %v1308_v23  ;;  %v1302_v25 = vsel %vm1299_vm13, %v1301_v57, %v1297_v55 }
 0x79a   :  { %v1317_v0 = vsel %vm1314_vm11, %v1316_v38, %v1312_v56  ;;  %v1321_v5 = vmul.f32 %v1302_v25, %v5464_v3  ;;  %v6904_v3 = vld [vmem:[#allocation12_spill] sm:$0xff] }
 0x79b   :  { %v1319_v14 = vmul.f32 2.0, %v1317_v0  ;;  %v139_v21 = vadd.f32 %v6904_v3, %v5302_v43  ;;  %v1651_v3 = vld [vmem:[#allocation6 + $0x140] sm:$0xff] }
 0x79d   :  { %v4537_v32 = vadd.f32 -1.0, %v1319_v14  ;;  %v201_v11 = vadd.f32 %v6906_v7, %v139_v21  ;;  %v5515_v21 = vand.u32 4294901760, %v1651_v3 }
 0x79f   :  { %v1322_v4 = vmul.f32 %v4537_v32, %v1302_v25  ;;  %v258_v1 = vadd.f32 %v6908_v27, %v201_v11  ;;  %v5529_v11 = vsub.f32 %v1651_v3, %v5515_v21 }
 0x7a1   :  { %1324 = vrot.lane.b32.xlu2 %v1322_v4, %s4808_s0  ;;  %v322_v48 = vadd.f32 %v6910_v51, %v258_v1  ;;  %v1807_v1 = vand.u32 4294901760, %v5529_v11 }
 0x7a3   :  { %v378_v59 = vadd.f32 %v6911_v36, %v322_v48 }
 0x7a5   :  { %v428_v53 = vadd.f32 %v6912_v37, %v378_v59  ;;  %v1808_v59 = vsub.f32 %v5529_v11, %v1807_v1 }
 0x7a7   :  { %v1809_v37 = vand.u32 4294901760, %v1808_v59 }
 0x7fb   :  { %v1325_v8 = vpop.permute.xlu2 %1324 }
 0x7fc   :  { %v5487_v9 = vadd.f32 %v1325_v8, %v1321_v5  ;;  %v1657_v8 = vld [vmem:[#allocation6 + $0x170] sm:$0xff] }
 0x7fe   :  { %4653 = vtanh.f32 %v5487_v9 }
 0x804   :  { %v4654_v12 = vpop.eup %4653 }
 0x805   :  { %v1329_v62 = vmul.f32 %v4654_v12, %v1317_v0  ;;  %v1655_v12 = vld [vmem:[#allocation6 + $0x160] sm:$0xff] }
 0x806   :  { %v5511_v15 = vand.u32 4294901760, %v1655_v12 }
 0x807   :  { %1331 = vrot.lane.b32.xlu0 %v1329_v62, %s4808_s0  ;;  %v1653_v62 = vld [vmem:[#allocation6 + $0x150] sm:$0xff] }
 0x808   :  { %v5513_v16 = vand.u32 4294901760, %v1653_v62  ;;  %v5522_v10 = vsub.f32 %v1655_v12, %v5511_v15 }
 0x80a   :  { %v5525_v7 = vsub.f32 %v1653_v62, %v5513_v16  ;;  %v1795_v26 = vand.u32 4294901760, %v5522_v10  ;;  %v1637_v62 = vld [vmem:[#allocation2 + $0x10] sm:$0xff] }
 0x80c   :  { %v1801_v27 = vand.u32 4294901760, %v5525_v7  ;;  %v1796_v28 = vsub.f32 %v5522_v10, %v1795_v26 }
 0x80e   :  { %v1802_v51 = vsub.f32 %v5525_v7, %v1801_v27  ;;  %v1797_v36 = vand.u32 4294901760, %v1796_v28  ;;  %v1673_v28 = vsel %vm835_vm9, %v1637_v62, 0  ;;  %v6924_v62 = vld [vmem:[#allocation56_spill] sm:$0xff] }
 0x810   :  { %v1803_v46 = vand.u32 4294901760, %v1802_v51 }
 0x879   :  { %v1332_v13 = vpop.permute.xlu0 %1331 }
 0x87a   :  { %1334 = vst.msk [vmem:[#allocation2 + $0x20] sm:$0xff] %vm835_vm9, %v1332_v13  ;;  %4538 = vmatmul.msk.f32.vlgmr.msrb.gmra.mxu2 %vm835_vm9, %v1332_v13  ;;  %4539 = vmatmul.msk.f32.vlgmr.msrb.gmra.mxu3 %vm835_vm9, %v1332_v13  ;;  %v5509_v13 = vand.u32 4294901760, %v1657_v8 }
 0x87c   :  { %1699 = vmatpush.msrb.mxu0 %v5509_v13  ;;  %v5519_v6 = vsub.f32 %v1657_v8, %v5509_v13  ;;  %1950 = vmatpush.msrb.mxu3 %v5509_v13 }
 0x87e   :  { %v1789_v18 = vand.u32 4294901760, %v5519_v6  ;;  %1701 = vmatpush.msrb.mxu0 %v5511_v15  ;;  %1878 = vmatpush.msrb.mxu2 %v5519_v6 }
 0x87f   :  { %1952 = vmatpush.msrb.mxu3 %v5511_v15 }
 0x880   :  { %v1790_v58 = vsub.f32 %v5519_v6, %v1789_v18  ;;  %1703 = vmatpush.msrb.mxu0 %v5513_v16  ;;  %1881 = vmatpush.msrb.mxu2 %v5522_v10 }
 0x881   :  { %1954 = vmatpush.msrb.mxu3 %v5513_v16 }
 0x882   :  { %v1791_v48 = vand.u32 4294901760, %v1790_v58  ;;  %1705 = vmatpush.msrb.mxu0 %v5515_v21  ;;  %1884 = vmatpush.msrb.mxu2 %v5525_v7 }
 0x883   :  { %1956 = vmatpush.msrb.mxu3 %v5515_v21 }
 0x884   :  { %1792 = vmatpush.msrb.mxu1 %v1791_v48  ;;  %1887 = vmatpush.msrb.mxu2 %v5529_v11 }
 0x886   :  { %1798 = vmatpush.msrb.mxu1 %v1797_v36 }
 0x888   :  { %1804 = vmatpush.msrb.mxu1 %v1803_v46 }
 0x88a   :  { %1810 = vmatpush.msrb.mxu1 %v1809_v37 }
 0x8fd   :  { %v1356_v19 = vpop.f32.mrf.mxu2  ;;  %v1376_v54 = vpop.f32.mrf.mxu3 }
 0x8fe   :  { %v1379_v47 = vadd.f32 %v1356_v19, %v428_v53  ;;  %v1380_v2 = vadd.f32 %v1376_v54, %v791_v40 }
 0x900   :  { %v4540_v61 = vmul.f32 -1.442695, %v1379_v47  ;;  %v4541_v50 = vmul.f32 -1.442695, %v1380_v2  ;;  %v1649_v2 = vld [vmem:[#allocation6 + $0x130] sm:$0xff] }
 0x902   :  { %4655 = vpow2.f32 %v4540_v61  ;;  %v5562_v61 = vand.u32 4294901760, %v1649_v2 }
 0x903   :  { %4657 = vpow2.f32 %v4541_v50  ;;  %v1647_v50 = vld [vmem:[#allocation6 + $0x120] sm:$0xff] }
 0x904   :  { %1707 = vmatpush.msrb.mxu0 %v5562_v61  ;;  %1958 = vmatpush.msrb.mxu3 %v5562_v61 }
 0x908   :  { %v4656_v42 = vpop.eup %4655 }
 0x909   :  { %v4658_v20 = vpop.eup %4657  ;;  %v1387_v60 = vadd.f32 1.0, %v4656_v42  ;;  %v5566_v42 = vsub.f32 %v1649_v2, %v5562_v61 }
 0x90a   :  { %v1388_v34 = vadd.f32 1.0, %v4658_v20  ;;  %v5568_v20 = vand.u32 4294901760, %v1647_v50 }
 0x90b   :  { %4659 = vrcp.f32 %v1387_v60  ;;  %v1400_v38 = vand.u32 2147483648, %v1387_v60  ;;  %vm1394_vm3 = vweird.f32 %v1387_v60  ;;  %v1398_v56 = vand.u32 2147483647, %v1387_v60  ;;  %1890 = vmatpush.msrb.mxu2 %v5566_v42 }
 0x90c   :  { %4661 = vrcp.f32 %v1388_v34  ;;  %v1415_v29 = vand.u32 2147483648, %v1388_v34  ;;  %v1413_v22 = vand.u32 2147483647, %v1388_v34  ;;  %vm1409_vm1 = vweird.f32 %v1388_v34  ;;  %1709 = vmatpush.msrb.mxu0 %v5568_v20  ;;  %1960 = vmatpush.msrb.mxu3 %v5568_v20 }
 0x90d   :  { %v1401_v32 = vor.u32 1.1754944e-38, %v1400_v38  ;;  %vm1399_vm6 = vcmp.eq.f32.partialorder %v1398_v56, 8.507059e+37 }
 0x90e   :  { %v1416_v24 = vor.u32 1.1754944e-38, %v1415_v29  ;;  %vm1414_vm4 = vcmp.eq.f32.partialorder %v1413_v22, 8.507059e+37 }
 0x911   :  { %v4660_v63 = vpop.eup %4659 }
 0x912   :  { %v4662_v44 = vpop.eup %4661  ;;  %v1390_v49 = vmul.f32 %v4660_v63, %v1387_v60  ;;  %vm1395_vm15 = vweird.f32 %v4660_v63  ;;  %v1813_v60 = vand.u32 4294901760, %v5566_v42 }
 0x913   :  { %v1405_v39 = vmul.f32 %v4662_v44, %v1388_v34  ;;  %vm1410_vm14 = vweird.f32 %v4662_v44  ;;  %vm1396_vm5 = vmor %vm1394_vm3, %vm1395_vm15  ;;  %v5574_v34 = vsub.f32 %v1647_v50, %v5568_v20 }
 0x914   :  { %v1391_v33 = vsub.f32 1.0, %v1390_v49  ;;  %vm1411_vm2 = vmor %vm1409_vm1, %vm1410_vm14  ;;  %v1814_v49 = vsub.f32 %v5566_v42, %v1813_v60 }
 0x915   :  { %v1406_v17 = vsub.f32 1.0, %v1405_v39  ;;  %v1819_v39 = vand.u32 4294901760, %v5574_v34  ;;  %1893 = vmatpush.msrb.mxu2 %v5574_v34 }
 0x916   :  { %v1392_v30 = vmul.f32 %v4660_v63, %v1391_v33 }
 0x917   :  { %v1407_v45 = vmul.f32 %v4662_v44, %v1406_v17  ;;  %v1820_v29 = vsub.f32 %v5574_v34, %v1819_v39 }
 0x918   :  { %v1393_v23 = vadd.f32 %v4660_v63, %v1392_v30  ;;  %v1815_v30 = vand.u32 4294901760, %v1814_v49  ;;  %v6915_v49 = vld [vmem:[#allocation14_spill] sm:$0xff] }
 0x919   :  { %v1408_v41 = vadd.f32 %v4662_v44, %v1407_v45 }
 0x91a   :  { %v1397_v14 = vsel %vm1396_vm5, %v4660_v63, %v1393_v23  ;;  %1816 = vmatpush.msrb.mxu1 %v1815_v30  ;;  %v1821_v23 = vand.u32 4294901760, %v1820_v29  ;;  %v6917_v30 = vld [vmem:[#allocation15_spill] sm:$0xff] }
 0x91b   :  { %v1412_v0 = vsel %vm1411_vm2, %v4662_v44, %v1408_v41  ;;  %v1402_v4 = vsel %vm1399_vm6, %v1401_v32, %v1397_v14  ;;  %v1643_v44 = vld [vmem:[#allocation6 + $0x100] sm:$0xff]  ;;  %v1636_v32 = vld [vmem:[#allocation2 + $0x8] sm:$0xff] }
 0x91c   :  { %v1417_v55 = vsel %vm1414_vm4, %v1416_v24, %v1412_v0  ;;  %v1421_v53 = vmul.f32 %v1402_v4, %v5487_v9  ;;  %v1645_v9 = vld [vmem:[#allocation6 + $0x110] sm:$0xff]  ;;  %v1712_v17 = vand.u32 4294901760, %v1643_v44  ;;  %1822 = vmatpush.msrb.mxu1 %v1821_v23 }
 0x91d   :  { %v1419_v57 = vmul.f32 2.0, %v1417_v55  ;;  %v5576_v63 = vand.u32 4294901760, %v1645_v9 }
 0x91e   :  { %v1830_v22 = vsub.f32 %v1643_v44, %v1712_v17 }
 0x91f   :  { %v4542_v25 = vadd.f32 -1.0, %v1419_v57  ;;  %1711 = vmatpush.msrb.mxu0 %v5576_v63  ;;  %v1824_v33 = vsub.f32 %v1645_v9, %v5576_v63  ;;  %1962 = vmatpush.msrb.mxu3 %v5576_v63 }
 0x920   :  { %v1831_v38 = vand.u32 4294901760, %v1830_v22 }
 0x921   :  { %v1422_v5 = vmul.f32 %v4542_v25, %v1402_v4  ;;  %v1825_v45 = vand.u32 4294901760, %v1824_v33  ;;  %1713 = vmatpush.msrb.mxu0 %v1712_v17  ;;  %1896 = vmatpush.msrb.mxu2 %v1824_v33  ;;  %v1670_v4 = vsel %vm835_vm9, %v1636_v32, 0 }
 0x922   :  { %1964 = vmatpush.msrb.mxu3 %v1712_v17  ;;  %v1832_v56 = vsub.f32 %v1830_v22, %v1831_v38  ;;  %v5597_v8 = vand.u32 4294901760, %v1670_v4 }
 0x923   :  { %1424 = vrot.lane.b32.xlu1 %v1422_v5, %s4808_s0  ;;  %v1826_v41 = vsub.f32 %v1824_v33, %v1825_v45  ;;  %1899 = vmatpush.msrb.mxu2 %v1830_v22  ;;  %v6916_v33 = vld [vmem:[#allocation47_spill] sm:$0xff]  ;;  %v6918_v22 = vld [vmem:[#allocation24_spill] sm:$0xff] }
 0x924   :  { %v1833_v0 = vand.u32 4294901760, %v1832_v56  ;;  %v5608_v58 = vsub.f32 %v1670_v4, %v5597_v8  ;;  %v6923_v4 = vld [vmem:[#allocation35_spill] sm:$0xff] }
 0x925   :  { %v1827_v24 = vand.u32 4294901760, %v1826_v41  ;;  %v6919_v41 = vld [vmem:[#allocation51_spill] sm:$0xff] }
 0x927   :  { %1828 = vmatpush.msrb.mxu1 %v1827_v24  ;;  %v6920_v24 = vld [vmem:[#allocation25_spill] sm:$0xff] }
 0x929   :  { %1834 = vmatpush.msrb.mxu1 %v1833_v0  ;;  %v6921_v0 = vld [vmem:[#allocation34_spill] sm:$0xff] }
 0x995   :  { %v1425_v40 = vpop.permute.xlu1 %1424 }
 0x996   :  { %v5558_v19 = vadd.f32 %v1425_v40, %v1421_v53 }
 0x998   :  { %4663 = vtanh.f32 %v5558_v19 }
 0x99e   :  { %v4664_v54 = vpop.eup %4663 }
 0x99f   :  { %v1429_v47 = vmul.f32 %v4664_v54, %v1417_v55  ;;  %v1635_v55 = vld [vmem:[#allocation2] sm:$0xff] }
 0x9a0   :  { %v1667_v14 = vsel %vm835_vm9, %v1635_v55, 0 }
 0x9a1   :  { %1431 = vrot.lane.b32.xlu2 %v1429_v47, %s4808_s0  ;;  %v5588_v57 = vand.u32 4294901760, %v1667_v14 }
 0x9a3   :  { %v5591_v25 = vsub.f32 %v1667_v14, %v5588_v57  ;;  %v6922_v14 = vld [vmem:[#allocation55_spill] sm:$0xff] }
 0x9a5   :  { %v5595_v5 = vand.u32 4294901760, %v5591_v25 }
 0x9a7   :  { %v1717_v3 = vsub.f32 %v5591_v25, %v5595_v5 }
 0x9a9   :  { %v5617_v6 = vand.u32 4294901760, %v1717_v3 }
 0x9fb   :  { %v1432_v12 = vpop.permute.xlu2 %1431 }
 0x9fc   :  { %1434 = vst.msk [vmem:[#allocation2 + $0x28] sm:$0xff] %vm835_vm9, %v1432_v12  ;;  %4543 = vmatmul.msk.f32.vlgmr.msra.gmra.mxu0 %vm835_vm9, %v1432_v12  ;;  %4544 = vmatmul.msk.f32.vlgmr.msra.gmra.mxu1 %vm835_vm9, %v1432_v12 }
 0x9fd   :  { %2025 = vmatpush.msra.mxu0 %v1789_v18  ;;  %2096 = vmatpush.msra.mxu1 %v5509_v13  ;;  %v5620_v13 = vand.u32 4294901760, %v5608_v58  ;;  %v5622_v18 = vand.u32 4294901760, %v1673_v28 }
 0x9ff   :  { %2029 = vmatpush.msra.mxu0 %v1795_v26  ;;  %2098 = vmatpush.msra.mxu1 %v5511_v15  ;;  %v1638_v15 = vld [vmem:[#allocation2 + $0x18] sm:$0xff]  ;;  %v5633_v10 = vsub.f32 %v1673_v28, %v5622_v18 }
 0xa00   :  { %v1676_v7 = vsel %vm835_vm9, %v1638_v15, 0 }
 0xa01   :  { %2033 = vmatpush.msra.mxu0 %v1801_v27  ;;  %2100 = vmatpush.msra.mxu1 %v5513_v16  ;;  %v1725_v16 = vsub.f32 %v5608_v58, %v5620_v13  ;;  %v5641_v11 = vand.u32 4294901760, %v5633_v10  ;;  %v5643_v26 = vand.u32 4294901760, %v1676_v7  ;;  %v1639_v27 = vld [vmem:[#allocation2 + $0x20] sm:$0xff] }
 0xa02   :  { %v1679_v48 = vsel %vm835_vm9, %v1639_v27, 0 }
 0xa03   :  { %2037 = vmatpush.msra.mxu0 %v1807_v1  ;;  %2102 = vmatpush.msra.mxu1 %v5515_v21  ;;  %v5638_v21 = vand.u32 4294901760, %v1725_v16  ;;  %v1733_v1 = vsub.f32 %v5633_v10, %v5641_v11  ;;  %v5650_v51 = vsub.f32 %v1676_v7, %v5643_v26  ;;  %v5658_v46 = vand.u32 4294901760, %v1679_v48  ;;  %v1640_v37 = vld [vmem:[#allocation2 + $0x28] sm:$0xff] }
 0xa04   :  { %1719 = vmatmul.f32.vlgmr.msrb.gmra.mxu0 %v5617_v6  ;;  %1836 = vmatmul.f32.vlgmr.msrb.gmra.mxu1 %v5588_v57  ;;  %v1682_v54 = vsel %vm835_vm9, %v1640_v37, 0 }
 0xa05   :  { %2041 = vmatpush.msra.mxu0 %v1813_v60  ;;  %2104 = vmatpush.msra.mxu1 %v5562_v61  ;;  %6913 = vst [vmem:[#allocation9_spill] sm:$0xff] %v5650_v51  ;;  %v5653_v36 = vand.u32 4294901760, %v1733_v1  ;;  %v5656_v59 = vand.u32 4294901760, %v5650_v51  ;;  %v5665_v40 = vsub.f32 %v1679_v48, %v5658_v46  ;;  %v5673_v61 = vand.u32 4294901760, %v1682_v54 }
 0xa07   :  { %2045 = vmatpush.msra.mxu0 %v1819_v39  ;;  %2106 = vmatpush.msra.mxu1 %v5568_v20  ;;  %v1741_v53 = vsub.f32 %v5650_v51, %v5656_v59  ;;  %v5671_v2 = vand.u32 4294901760, %v5665_v40  ;;  %v5680_v42 = vsub.f32 %v1682_v54, %v5673_v61  ;;  %v147_v39 = vadd.f32 %v6915_v49, %v5302_v43 }
 0xa09   :  { %2049 = vmatpush.msra.mxu0 %v1825_v45  ;;  %2108 = vmatpush.msra.mxu1 %v5576_v63  ;;  %v5668_v47 = vand.u32 4294901760, %v1741_v53  ;;  %v1749_v50 = vsub.f32 %v5665_v40, %v5671_v2  ;;  %v5685_v9 = vand.u32 4294901760, %v5680_v42  ;;  %v6914_v63 = vld [vmem:[#allocation46_spill] sm:$0xff]  ;;  %v205_v29 = vadd.f32 %v6917_v30, %v147_v39 }
 0xa0a   :  { %v510_v44 = vadd.f32 %v6914_v63, %v5294_v52 }
 0xa0b   :  { %2110 = vmatpush.msra.mxu1 %v1712_v17  ;;  %2053 = vmatpush.msra.mxu0 %v1831_v38  ;;  %v5682_v20 = vand.u32 4294901760, %v1749_v50  ;;  %v1757_v60 = vsub.f32 %v5680_v42, %v5685_v9  ;;  %v263_v23 = vadd.f32 %v6918_v22, %v205_v29 }
 0xa0c   :  { %1727 = vmatmul.f32.gmra.mxu0 %v5638_v21  ;;  %1840 = vmatmul.f32.gmra.mxu1 %v5597_v8  ;;  %v568_v17 = vadd.f32 %v6916_v33, %v510_v44 }
 0xa0d   :  { %v5691_v34 = vand.u32 4294901760, %v1757_v60  ;;  %v328_v56 = vadd.f32 %v6920_v24, %v263_v23 }
 0xa0e   :  { %v626_v45 = vadd.f32 %v5309_v31, %v568_v17 }
 0xa0f   :  { %v382_v55 = vadd.f32 %v6921_v0, %v328_v56 }
 0xa10   :  { %v691_v38 = vadd.f32 %v6919_v41, %v626_v45 }
 0xa11   :  { %v432_v12 = vadd.f32 %v6923_v4, %v382_v55 }
 0xa12   :  { %v745_v32 = vadd.f32 %v6922_v14, %v691_v38 }
 0xa14   :  { %1735 = vmatmul.f32.gmra.mxu0 %v5653_v36  ;;  %1844 = vmatmul.f32.gmra.mxu1 %v5622_v18  ;;  %v795_v3 = vadd.f32 %v6924_v62, %v745_v32 }
 0xa1c   :  { %1743 = vmatmul.f32.gmra.mxu0 %v5668_v47  ;;  %1848 = vmatmul.f32.gmra.mxu1 %v5643_v26 }
 0xa24   :  { %1751 = vmatmul.f32.gmra.mxu0 %v5682_v20  ;;  %1852 = vmatmul.f32.gmra.mxu1 %v5658_v46 }
 0xa2c   :  { %1759 = vmatmul.f32.gmra.mxu0 %v5691_v34  ;;  %1856 = vmatmul.f32.gmra.mxu1 %v5673_v61 }
 0xa79   :  { %v1456_v28 = vpop.f32.mrf.mxu0  ;;  %v1476_v15 = vpop.f32.mrf.mxu1 }
 0xa7a   :  { %v1479_v16 = vadd.f32 %v1456_v28, %v432_v12  ;;  %v1480_v7 = vadd.f32 %v1476_v15, %v795_v3 }
 0xa7c   :  { %v4545_v27 = vmul.f32 -1.442695, %v1479_v16  ;;  %v4546_v31 = vmul.f32 -1.442695, %v1480_v7 }
 0xa7e   :  { %4665 = vpow2.f32 %v4545_v27 }
 0xa7f   :  { %4667 = vpow2.f32 %v4546_v31 }
 0xa84   :  { %v4666_v1 = vpop.eup %4665 }
 0xa85   :  { %v4668_v48 = vpop.eup %4667  ;;  %v1487_v37 = vadd.f32 1.0, %v4666_v1 }
 0xa86   :  { %v1488_v53 = vadd.f32 1.0, %v4668_v48 }
 0xa87   :  { %4669 = vrcp.f32 %v1487_v37  ;;  %v1500_v22 = vand.u32 2147483648, %v1487_v37  ;;  %vm1494_vm12 = vweird.f32 %v1487_v37  ;;  %v1498_v41 = vand.u32 2147483647, %v1487_v37 }
 0xa88   :  { %4671 = vrcp.f32 %v1488_v53  ;;  %v1515_v33 = vand.u32 2147483648, %v1488_v53  ;;  %v1513_v30 = vand.u32 2147483647, %v1488_v53  ;;  %vm1509_vm10 = vweird.f32 %v1488_v53 }
 0xa89   :  { %v1501_v55 = vor.u32 1.1754944e-38, %v1500_v22  ;;  %vm1499_vm15 = vcmp.eq.f32.partialorder %v1498_v41, 8.507059e+37 }
 0xa8a   :  { %v1516_v23 = vor.u32 1.1754944e-38, %v1515_v33  ;;  %vm1514_vm13 = vcmp.eq.f32.partialorder %v1513_v30, 8.507059e+37  ;;  %v6929_v33 = vld [vmem:[#allocation53_spill] sm:$0xff]  ;;  %v6930_v30 = vld [vmem:[#allocation28_spill] sm:$0xff] }
 0xa8d   :  { %v4670_v54 = vpop.eup %4669 }
 0xa8e   :  { %v4672_v50 = vpop.eup %4671  ;;  %v1490_v60 = vmul.f32 %v4670_v54, %v1487_v37  ;;  %vm1495_vm8 = vweird.f32 %v4670_v54 }
 0xa8f   :  { %v1505_v63 = vmul.f32 %v4672_v50, %v1488_v53  ;;  %vm1510_vm7 = vweird.f32 %v4672_v50  ;;  %vm1496_vm14 = vmor %vm1494_vm12, %vm1495_vm8  ;;  %v6925_v53 = vld [vmem:[#allocation50_spill] sm:$0xff] }
 0xa90   :  { %v1491_v44 = vsub.f32 1.0, %v1490_v60  ;;  %vm1511_vm11 = vmor %vm1509_vm10, %vm1510_vm7 }
 0xa91   :  { %v1506_v49 = vsub.f32 1.0, %v1505_v63  ;;  %v6927_v63 = vld [vmem:[#allocation52_spill] sm:$0xff] }
 0xa92   :  { %v1492_v39 = vmul.f32 %v4670_v54, %v1491_v44 }
 0xa93   :  { %v1507_v17 = vmul.f32 %v4672_v50, %v1506_v49  ;;  %v6928_v49 = vld [vmem:[#allocation18_spill] sm:$0xff] }
 0xa94   :  { %v1493_v29 = vadd.f32 %v4670_v54, %v1492_v39 }
 0xa95   :  { %v1508_v45 = vadd.f32 %v4672_v50, %v1507_v17 }
 0xa96   :  { %v1497_v56 = vsel %vm1496_vm14, %v4670_v54, %v1493_v29  ;;  %v518_v54 = vadd.f32 %v6925_v53, %v5294_v52  ;;  %v6934_v52 = vld [vmem:[#allocation37_spill] sm:$0xff] }
 0xa97   :  { %v1512_v38 = vsel %vm1511_vm11, %v4672_v50, %v1508_v45  ;;  %v1502_v32 = vsel %vm1499_vm15, %v1501_v55, %v1497_v56  ;;  %v6926_v50 = vld [vmem:[#allocation17_spill] sm:$0xff]  ;;  %v6931_v45 = vld [vmem:[#allocation54_spill] sm:$0xff] }
 0xa98   :  { %v1517_v24 = vsel %vm1514_vm13, %v1516_v23, %v1512_v38  ;;  %v1521_v12 = vmul.f32 %v1502_v32, %v5558_v19  ;;  %v155_v60 = vadd.f32 %v6926_v50, %v5302_v43  ;;  %v572_v44 = vadd.f32 %v6927_v63, %v518_v54  ;;  %v6932_v23 = vld [vmem:[#allocation31_spill] sm:$0xff]  ;;  %v6933_v38 = vld [vmem:[#allocation36_spill] sm:$0xff]  ;;  %v6935_v55 = vld [vmem:[#allocation57_spill] sm:$0xff] }
 0xa99   :  { %v1519_v0 = vmul.f32 2.0, %v1517_v24 }
 0xa9a   :  { %v209_v39 = vadd.f32 %v6928_v49, %v155_v60  ;;  %v631_v17 = vadd.f32 %v6929_v33, %v572_v44 }
 0xa9b   :  { %v4547_v14 = vadd.f32 -1.0, %v1519_v0 }
 0xa9c   :  { %v268_v29 = vadd.f32 %v6930_v30, %v209_v39  ;;  %v697_v22 = vadd.f32 %v6931_v45, %v631_v17 }
 0xa9d   :  { %v1522_v4 = vmul.f32 %v4547_v14, %v1502_v32 }
 0xa9e   :  { %v334_v41 = vadd.f32 %v6932_v23, %v268_v29  ;;  %v749_v56 = vadd.f32 %v5377_v35, %v697_v22 }
 0xa9f   :  { %1524 = vrot.lane.b32.xlu0 %v1522_v4, %s4808_s0 }
 0xaa0   :  { %v799_v43 = vadd.f32 %v6935_v55, %v749_v56  ;;  %v1658_v55 = vld [vmem:[#allocation6 + $0x178] sm:$0xff] }
 0xb11   :  { %v1525_v62 = vpop.permute.xlu0 %1524 }
 0xb12   :  { %v5711_v3 = vadd.f32 %v1525_v62, %v1521_v12 }
 0xb14   :  { %4673 = vtanh.f32 %v5711_v3 }
 0xb1a   :  { %v4674_v28 = vpop.eup %4673 }
 0xb1b   :  { %v1529_v15 = vmul.f32 %v4674_v28, %v1517_v24  ;;  %v386_v24 = vadd.f32 %v6933_v38, %v334_v41 }
 0xb1d   :  { %1531 = vrot.lane.b32.xlu1 %v1529_v15, %s4808_s0  ;;  %v436_v0 = vadd.f32 %v6934_v52, %v386_v24 }
 0xb8f   :  { %v1532_v16 = vpop.permute.xlu1 %1531 }
 0xb90   :  { %1534 = vst.msk [vmem:[#allocation2 + $0x30] sm:$0xff] %vm835_vm9, %v1532_v16  ;;  %4548 = vmatmul.msk.f32.vlgmr.msra.gmra.mxu2 %vm835_vm9, %v1532_v16  ;;  %4549 = vmatmul.msk.f32.vlgmr.msra.gmra.mxu3 %vm835_vm9, %v1532_v16 }
 0xb97   :  { %v1641_v7 = vld [vmem:[#allocation2 + $0x30] sm:$0xff] }
 0xb98   :  { %v1685_v27 = vsel %vm835_vm9, %v1641_v7, 0  ;;  %1902 = vmatmul.f32.vlgmr.msrb.gmra.mxu2 %v5591_v25  ;;  %1968 = vmatmul.f32.vlgmr.msrb.gmra.mxu3 %v5595_v5 }
 0xb99   :  { %v5721_v19 = vand.u32 4294901760, %v1685_v27 }
 0xb9b   :  { %1860 = vmatmul.f32.gmra.mxu1 %v5721_v19  ;;  %v5725_v31 = vsub.f32 %v1685_v27, %v5721_v19 }
 0xb9d   :  { %v5728_v1 = vand.u32 4294901760, %v5725_v31 }
 0xb9f   :  { %v1765_v48 = vsub.f32 %v5725_v31, %v5728_v1 }
 0xba0   :  { %1907 = vmatmul.f32.gmra.mxu2 %v5608_v58  ;;  %1974 = vmatmul.f32.gmra.mxu3 %v5620_v13 }
 0xba1   :  { %v5734_v37 = vand.u32 4294901760, %v1765_v48 }
 0xba3   :  { %1767 = vmatmul.f32.gmra.mxu0 %v5734_v37 }
 0xba8   :  { %1912 = vmatmul.f32.gmra.mxu2 %v5633_v10  ;;  %1980 = vmatmul.f32.gmra.mxu3 %v5641_v11 }
 0xbb0   :  { %1917 = vmatmul.f32.gmra.mxu2 %v5650_v51  ;;  %1986 = vmatmul.f32.gmra.mxu3 %v5656_v59 }
 0xbb8   :  { %1922 = vmatmul.f32.gmra.mxu2 %v5665_v40  ;;  %1992 = vmatmul.f32.gmra.mxu3 %v5671_v2 }
 0xbc0   :  { %1927 = vmatmul.f32.gmra.mxu2 %v5680_v42  ;;  %1998 = vmatmul.f32.gmra.mxu3 %v5685_v9 }
 0xbc8   :  { %1932 = vmatmul.f32.gmra.mxu2 %v5725_v31  ;;  %2004 = vmatmul.f32.gmra.mxu3 %v5728_v1 }
 0xc13   :  { %v1556_v14 = vpop.f32.mrf.mxu2  ;;  %v1576_v32 = vpop.f32.mrf.mxu3 }
 0xc14   :  { %v1579_v4 = vadd.f32 %v1556_v14, %v436_v0  ;;  %v1580_v12 = vadd.f32 %v1576_v32, %v799_v43  ;;  %v1656_v43 = vld [vmem:[#allocation6 + $0x168] sm:$0xff]  ;;  %v1654_v14 = vld [vmem:[#allocation6 + $0x158] sm:$0xff]  ;;  %v5765_v32 = vand.u32 4294901760, %v1658_v55 }
 0xc16   :  { %v4550_v62 = vmul.f32 -1.442695, %v1579_v4  ;;  %v4551_v28 = vmul.f32 -1.442695, %v1580_v12  ;;  %v5767_v4 = vand.u32 4294901760, %v1656_v43  ;;  %v5769_v12 = vand.u32 4294901760, %v1654_v14  ;;  %2153 = vmatpush.msra.mxu2 %v5765_v32  ;;  %2404 = vmatpush.msrb.mxu1 %v5765_v32 }
 0xc18   :  { %4675 = vpow2.f32 %v4550_v62  ;;  %v1652_v62 = vld [vmem:[#allocation6 + $0x148] sm:$0xff]  ;;  %2155 = vmatpush.msra.mxu2 %v5767_v4  ;;  %2406 = vmatpush.msrb.mxu1 %v5767_v4 }
 0xc19   :  { %4677 = vpow2.f32 %v4551_v28  ;;  %v1650_v28 = vld [vmem:[#allocation6 + $0x138] sm:$0xff] }
 0xc1a   :  { %2157 = vmatpush.msra.mxu2 %v5769_v12  ;;  %2408 = vmatpush.msrb.mxu1 %v5769_v12 }
 0xc1e   :  { %v4676_v15 = vpop.eup %4675 }
 0xc1f   :  { %v4678_v16 = vpop.eup %4677  ;;  %v1587_v7 = vadd.f32 1.0, %v4676_v15  ;;  %v5771_v15 = vand.u32 4294901760, %v1652_v62 }
 0xc20   :  { %v1588_v27 = vadd.f32 1.0, %v4678_v16  ;;  %v5773_v16 = vand.u32 4294901760, %v1650_v28 }
 0xc21   :  { %4679 = vrcp.f32 %v1587_v7  ;;  %v1600_v30 = vand.u32 2147483648, %v1587_v7  ;;  %vm1594_vm5 = vweird.f32 %v1587_v7  ;;  %v1598_v45 = vand.u32 2147483647, %v1587_v7  ;;  %2159 = vmatpush.msra.mxu2 %v5771_v15  ;;  %2410 = vmatpush.msrb.mxu1 %v5771_v15 }
 0xc22   :  { %4681 = vrcp.f32 %v1588_v27  ;;  %v1615_v44 = vand.u32 2147483648, %v1588_v27  ;;  %v1613_v39 = vand.u32 2147483647, %v1588_v27  ;;  %vm1609_vm3 = vweird.f32 %v1588_v27 }
 0xc23   :  { %v1601_v24 = vor.u32 1.1754944e-38, %v1600_v30  ;;  %vm1599_vm8 = vcmp.eq.f32.partialorder %v1598_v45, 8.507059e+37  ;;  %2161 = vmatpush.msra.mxu2 %v5773_v16  ;;  %2412 = vmatpush.msrb.mxu1 %v5773_v16 }
 0xc24   :  { %v1616_v29 = vor.u32 1.1754944e-38, %v1615_v44  ;;  %vm1614_vm6 = vcmp.eq.f32.partialorder %v1613_v39, 8.507059e+37 }
 0xc27   :  { %v4680_v48 = vpop.eup %4679 }
 0xc28   :  { %v4682_v35 = vpop.eup %4681  ;;  %v1590_v53 = vmul.f32 %v4680_v48, %v1587_v7  ;;  %vm1595_vm2 = vweird.f32 %v4680_v48  ;;  %v5777_v7 = vsub.f32 %v1658_v55, %v5765_v32 }
 0xc29   :  { %v1605_v54 = vmul.f32 %v4682_v35, %v1588_v27  ;;  %vm1610_vm1 = vweird.f32 %v4682_v35  ;;  %vm1596_vm7 = vmor %vm1594_vm5, %vm1595_vm2  ;;  %v5780_v27 = vsub.f32 %v1656_v43, %v5767_v4 }
 0xc2a   :  { %v1591_v50 = vsub.f32 1.0, %v1590_v53  ;;  %vm1611_vm4 = vmor %vm1609_vm3, %vm1610_vm1  ;;  %v5790_v53 = vsub.f32 %v1650_v28, %v5773_v16  ;;  %2332 = vmatpush.msrb.mxu0 %v5777_v7  ;;  %v1646_v28 = vld [vmem:[#allocation6 + $0x118] sm:$0xff] }
 0xc2b   :  { %v1606_v60 = vsub.f32 1.0, %v1605_v54  ;;  %v2243_v54 = vand.u32 4294901760, %v5777_v7 }
 0xc2c   :  { %v1592_v63 = vmul.f32 %v4680_v48, %v1591_v50  ;;  %v2249_v50 = vand.u32 4294901760, %v5780_v27  ;;  %2335 = vmatpush.msrb.mxu0 %v5780_v27 }
 0xc2d   :  { %v1607_v49 = vmul.f32 %v4682_v35, %v1606_v60  ;;  %v2244_v44 = vsub.f32 %v5777_v7, %v2243_v54  ;;  %v2164_v7 = vand.u32 4294901760, %v1646_v28 }
 0xc2e   :  { %v1593_v33 = vadd.f32 %v4680_v48, %v1592_v63 }
 0xc2f   :  { %v1608_v17 = vadd.f32 %v4682_v35, %v1607_v49  ;;  %v2250_v49 = vsub.f32 %v5780_v27, %v2249_v50 }
 0xc30   :  { %v1597_v41 = vsel %vm1596_vm7, %v4680_v48, %v1593_v33  ;;  %v5783_v48 = vsub.f32 %v1654_v14, %v5769_v12  ;;  %v2267_v33 = vand.u32 4294901760, %v5790_v53  ;;  %v1648_v14 = vld [vmem:[#allocation6 + $0x128] sm:$0xff] }
 0xc31   :  { %v1612_v22 = vsel %vm1611_vm4, %v4682_v35, %v1608_v17  ;;  %v1602_v52 = vsel %vm1599_vm8, %v1601_v24, %v1597_v41  ;;  %v5787_v35 = vsub.f32 %v1652_v62, %v5771_v15  ;;  %v2245_v17 = vand.u32 4294901760, %v2244_v44 }
 0xc32   :  { %v5761_v23 = vsel %vm1614_vm6, %v1616_v29, %v1612_v22  ;;  %v2255_v60 = vand.u32 4294901760, %v5783_v48  ;;  %v2251_v30 = vand.u32 4294901760, %v2250_v49  ;;  %2338 = vmatpush.msrb.mxu0 %v5783_v48  ;;  %v2268_v22 = vsub.f32 %v5790_v53, %v2267_v33 }
 0xc33   :  { %v1619_v38 = vmul.f32 2.0, %v5761_v23  ;;  %v2261_v63 = vand.u32 4294901760, %v5787_v35  ;;  %2246 = vmatpush.msra.mxu3 %v2245_v17  ;;  %v1621_v24 = vmul.f32 %v1602_v52, %v5711_v3  ;;  %v2162_v62 = vand.u32 4294901760, %v1648_v14 }
 0xc34   :  { %v2256_v39 = vsub.f32 %v5783_v48, %v2255_v60  ;;  %2341 = vmatpush.msrb.mxu0 %v5787_v35  ;;  %v2278_v49 = vsub.f32 %v1646_v28, %v2164_v7  ;;  %v2624_v28 = vld [vmem:[#allocation6 + $0x1d0] sm:$0xff] }
 0xc35   :  { %v4552_v56 = vadd.f32 -1.0, %v1619_v38  ;;  %v2262_v29 = vsub.f32 %v5787_v35, %v2261_v63  ;;  %2252 = vmatpush.msra.mxu3 %v2251_v30  ;;  %v2269_v38 = vand.u32 4294901760, %v2268_v22  ;;  %2163 = vmatpush.msra.mxu2 %v2162_v62  ;;  %v2272_v44 = vsub.f32 %v1648_v14, %v2162_v62  ;;  %v5904_v14 = vpop.f32.mrf.mxu1 }
 0xc36   :  { %v2257_v45 = vand.u32 4294901760, %v2256_v39  ;;  %2344 = vmatpush.msrb.mxu0 %v5790_v53  ;;  %2414 = vmatpush.msrb.mxu1 %v2162_v62  ;;  %v1644_v39 = vld [vmem:[#allocation6 + $0x108] sm:$0xff]  ;;  %v2628_v53 = vld [vmem:[#allocation6 + $0x1f0] sm:$0xff]  ;;  %6936 = vst [vmem:[#allocation40_spill] sm:$0xff] %v5904_v14 }
 0xc37   :  { %v1622_v0 = vmul.f32 %v4552_v56, %v1602_v52  ;;  %v2263_v41 = vand.u32 4294901760, %v2262_v29  ;;  %v2273_v17 = vand.u32 4294901760, %v2272_v44  ;;  %2165 = vmatpush.msra.mxu2 %v2164_v7  ;;  %v2166_v3 = vand.u32 4294901760, %v1644_v39 }
 0xc38   :  { %2258 = vmatpush.msra.mxu3 %v2257_v45  ;;  %2347 = vmatpush.msrb.mxu0 %v2272_v44  ;;  %v2279_v52 = vand.u32 4294901760, %v2278_v49 }
 0xc39   :  { %1624 = vrot.lane.b32.xlu2 %v1622_v0, %s4808_s0  ;;  %2416 = vmatpush.msrb.mxu1 %v2164_v7  ;;  %v2274_v30 = vsub.f32 %v2272_v44, %v2273_v17 }
 0xc3a   :  { %2264 = vmatpush.msra.mxu3 %v2263_v41  ;;  %2167 = vmatpush.msra.mxu2 %v2166_v3  ;;  %v2280_v29 = vsub.f32 %v2278_v49, %v2279_v52 }
 0xc3b   :  { %2350 = vmatpush.msrb.mxu0 %v2278_v49  ;;  %2418 = vmatpush.msrb.mxu1 %v2166_v3  ;;  %v2275_v45 = vand.u32 4294901760, %v2274_v30 }
 0xc3c   :  { %2270 = vmatpush.msra.mxu3 %v2269_v38  ;;  %2479 = vmatpush.msrb.mxu2 %v2243_v54  ;;  %v2281_v41 = vand.u32 4294901760, %v2280_v29  ;;  %v5876_v54 = vand.u32 4294901760, %v2628_v53 }
 0xc3d   :  { %v5932_v29 = vpop.f32.mrf.mxu1 }
 0xc3e   :  { %2483 = vmatpush.msrb.mxu2 %v2249_v50  ;;  %2276 = vmatpush.msra.mxu3 %v2275_v45  ;;  %v5879_v50 = vsub.f32 %v2628_v53, %v5876_v54  ;;  %6940 = vst [vmem:[#allocation26_spill] sm:$0xff] %v5932_v29 }
 0xc40   :  { %2487 = vmatpush.msrb.mxu2 %v2255_v60  ;;  %2282 = vmatpush.msra.mxu3 %v2281_v41  ;;  %v6827_v60 = vand.u32 4294901760, %v5879_v50 }
 0xc42   :  { %2491 = vmatpush.msrb.mxu2 %v2261_v63  ;;  %v2730_v63 = vsub.f32 %v5879_v50, %v6827_v60 }
 0xc44   :  { %2495 = vmatpush.msrb.mxu2 %v2267_v33  ;;  %v2626_v33 = vld [vmem:[#allocation6 + $0x1e0] sm:$0xff] }
 0xc46   :  { %2499 = vmatpush.msrb.mxu2 %v2273_v17  ;;  %v5922_v17 = vpop.f32.mrf.mxu0 }
 0xc47   :  { %6938 = vst [vmem:[#allocation41_spill] sm:$0xff] %v5922_v17 }
 0xc48   :  { %2503 = vmatpush.msrb.mxu2 %v2279_v52  ;;  %v5926_v52 = vpop.f32.mrf.mxu3 }
 0xc49   :  { %6939 = vst [vmem:[#allocation19_spill] sm:$0xff] %v5926_v52 }
 0xc93   :  { %v1625_v56 = vpop.permute.xlu2 %1624 }
 0xc94   :  { %v1627_v0 = vadd.f32 %v1625_v56, %v1621_v24  ;;  %v5892_v56 = vand.u32 4294901760, %v2626_v33 }
 0xc96   :  { %4683 = vtanh.f32 %v1627_v0  ;;  %v2731_v0 = vand.u32 4294901760, %v2730_v63 }
 0xc9c   :  { %v4684_v55 = vpop.eup %4683 }
 0xc9d   :  { %v1629_v43 = vmul.f32 %v4684_v55, %v5761_v23  ;;  %v2284_v23 = vsub.f32 %v1644_v39, %v2166_v3  ;;  %v5895_v55 = vsub.f32 %v2626_v33, %v5892_v56  ;;  %v5919_v39 = vpop.f32.mrf.mxu2  ;;  %v5958_v33 = vpop.f32.mrf.mxu1 }
 0xc9e   :  { %6937 = vst [vmem:[#allocation16_spill] sm:$0xff] %v5919_v39 }
 0xc9f   :  { %1631 = vrot.lane.b32.xlu0 %v1629_v43, %s4808_s0  ;;  %v2285_v22 = vand.u32 4294901760, %v2284_v23  ;;  %2353 = vmatpush.msrb.mxu0 %v2284_v23  ;;  %v6826_v43 = vand.u32 4294901760, %v5895_v55  ;;  %6944 = vst [vmem:[#allocation39_spill] sm:$0xff] %v5958_v33 }
 0xca1   :  { %v2286_v38 = vsub.f32 %v2284_v23, %v2285_v22  ;;  %2507 = vmatpush.msrb.mxu2 %v2285_v22  ;;  %v2622_v23 = vld [vmem:[#allocation6 + $0x1c0] sm:$0xff] }
 0xca2   :  { %v5934_v45 = vand.u32 4294901760, %v2622_v23 }
 0xca3   :  { %v2287_v24 = vand.u32 4294901760, %v2286_v38 }
 0xca4   :  { %v5937_v41 = vsub.f32 %v2622_v23, %v5934_v45 }
 0xca5   :  { %2288 = vmatpush.msra.mxu3 %v2287_v24  ;;  %v5946_v24 = vpop.f32.mrf.mxu2 }
 0xca6   :  { %v6824_v38 = vand.u32 4294901760, %v5937_v41  ;;  %6941 = vst [vmem:[#allocation27_spill] sm:$0xff] %v5946_v24 }
 0xca7   :  { %2550 = vmatpush.msrb.mxu3 %v5765_v32 }
 0xca9   :  { %2552 = vmatpush.msrb.mxu3 %v5767_v4 }
 0xcab   :  { %2554 = vmatpush.msrb.mxu3 %v5769_v12 }
 0xcad   :  { %2556 = vmatpush.msrb.mxu3 %v5771_v15 }
 0xcaf   :  { %2558 = vmatpush.msrb.mxu3 %v5773_v16 }
 0xcb1   :  { %2560 = vmatpush.msrb.mxu3 %v2162_v62  ;;  %v2736_v62 = vsub.f32 %v5895_v55, %v6826_v43  ;;  %v2614_v43 = vld [vmem:[#allocation6 + $0x180] sm:$0xff] }
 0xcb2   :  { %v5996_v39 = vand.u32 4294901760, %v2614_v43 }
 0xcb3   :  { %2562 = vmatpush.msrb.mxu3 %v2164_v7  ;;  %v5910_v7 = vand.u32 4294901760, %v2624_v28  ;;  %v2737_v44 = vand.u32 4294901760, %v2736_v62 }
 0xcb5   :  { %2564 = vmatpush.msrb.mxu3 %v2166_v3  ;;  %v5913_v49 = vsub.f32 %v2624_v28, %v5910_v7 }
 0xcb7   :  { %v6825_v3 = vand.u32 4294901760, %v5913_v49 }
 0xcb9   :  { %v2742_v30 = vsub.f32 %v5913_v49, %v6825_v3 }
 0xcbb   :  { %v2743_v22 = vand.u32 4294901760, %v2742_v30  ;;  %v5974_v30 = vpop.f32.mrf.mxu2 }
 0xcbc   :  { %6945 = vst [vmem:[#allocation11_spill] sm:$0xff] %v5974_v30  ;;  %v6956_v30 = vand.u32 4294901760, %v5913_v49 }
 0xd11   :  { %v1632_v27 = vpop.permute.xlu0 %1631 }
 0xd12   :  { %1634 = vst.msk [vmem:[#allocation2 + $0x38] sm:$0xff] %vm835_vm9, %v1632_v27  ;;  %v5948_v27 = vpop.f32.mrf.mxu0 }
 0xd13   :  { %6942 = vst [vmem:[#allocation38_spill] sm:$0xff] %v5948_v27  ;;  %v6954_v27 = vand.u32 4294901760, %v5895_v55 }
 0xd19   :  { %v1642_v32 = vld [vmem:[#allocation2 + $0x38] sm:$0xff] }
 0xd1a   :  { %v1688_v48 = vsel %vm835_vm9, %v1642_v32, 0  ;;  %v2748_v32 = vsub.f32 %v5937_v41, %v6824_v38 }
 0xd1b   :  { %v5841_v35 = vand.u32 4294901760, %v1688_v48 }
 0xd1c   :  { %v2749_v63 = vand.u32 4294901760, %v2748_v32 }
 0xd1d   :  { %1864 = vmatmul.f32.gmra.mxu1 %v5841_v35  ;;  %v5845_v4 = vsub.f32 %v1688_v48, %v5841_v35  ;;  %v2620_v48 = vld [vmem:[#allocation6 + $0x1b0] sm:$0xff] }
 0xd1e   :  { %v5956_v53 = vand.u32 4294901760, %v2620_v48 }
 0xd1f   :  { %1937 = vmatmul.f32.gmra.mxu2 %v5845_v4  ;;  %v5849_v12 = vand.u32 4294901760, %v5845_v4 }
 0xd21   :  { %2010 = vmatmul.f32.gmra.mxu3 %v5849_v12  ;;  %v1773_v15 = vsub.f32 %v5845_v4, %v5849_v12 }
 0xd23   :  { %v5854_v16 = vand.u32 4294901760, %v1773_v15  ;;  %v5954_v15 = vpop.f32.mrf.mxu3 }
 0xd24   :  { %6943 = vst [vmem:[#allocation10_spill] sm:$0xff] %v5954_v15  ;;  %v2770_v15 = vsub.f32 %v2614_v43, %v5996_v39  ;;  %v6953_v43 = vand.u32 4294901760, %v5879_v50 }
 0xd25   :  { %1775 = vmatmul.f32.gmra.mxu0 %v5854_v16  ;;  %2112 = vmatmul.f32.vlgmr.msra.gmra.mxu1 %v5588_v57 }
 0xd26   :  { %2732 = vmatpush.msra.mxu1 %v2731_v0  ;;  %v5961_v0 = vsub.f32 %v2620_v48, %v5956_v53  ;;  %v2771_v17 = vand.u32 4294901760, %v2770_v15 }
 0xd27   :  { %2173 = vmatmul.f32.vlgmr.msra.gmra.mxu2 %v5617_v6 }
 0xd28   :  { %2818 = vmatpush.msra.mxu2 %v5879_v50  ;;  %2738 = vmatpush.msra.mxu1 %v2737_v44  ;;  %v6823_v62 = vand.u32 4294901760, %v5961_v0  ;;  %v2618_v44 = vld [vmem:[#allocation6 + $0x1a0] sm:$0xff] }
 0xd29   :  { %2290 = vmatmul.f32.vlgmr.msra.gmra.mxu3 %v5588_v57  ;;  %v5976_v23 = vand.u32 4294901760, %v2618_v44 }
 0xd2a   :  { %2890 = vmatpush.msra.mxu3 %v5876_v54  ;;  %2821 = vmatpush.msra.mxu2 %v5895_v55  ;;  %v2754_v28 = vsub.f32 %v5961_v0, %v6823_v62  ;;  %v5987_v62 = vpop.f32.mrf.mxu1  ;;  %v6959_v55 = vand.u32 4294901760, %v5937_v41 }
 0xd2b   :  { %2744 = vmatpush.msra.mxu1 %v2743_v22  ;;  %v5978_v22 = vpop.f32.mrf.mxu0  ;;  %v5980_v48 = vpop.f32.mrf.mxu3  ;;  %6948 = vst [vmem:[#allocation45_spill] sm:$0xff] %v5987_v62 }
 0xd2c   :  { %2892 = vmatpush.msra.mxu3 %v5892_v56  ;;  %2824 = vmatpush.msra.mxu2 %v5913_v49  ;;  %6946 = vst [vmem:[#allocation44_spill] sm:$0xff] %v5978_v22  ;;  %v2755_v32 = vand.u32 4294901760, %v2754_v28  ;;  %v2616_v28 = vld [vmem:[#allocation6 + $0x190] sm:$0xff]  ;;  %v6961_v49 = vand.u32 4294901760, %v5961_v0 }
 0xd2d   :  { %2055 = vmatmul.f32.vlgmr.msra.gmra.mxu0 %v5588_v57  ;;  %2116 = vmatmul.f32.gmra.mxu1 %v5597_v8  ;;  %6947 = vst [vmem:[#allocation20_spill] sm:$0xff] %v5980_v48  ;;  %v2772_v48 = vsub.f32 %v2770_v15, %v2771_v17 }
 0xd2e   :  { %2639 = vmatpush.msra.mxu0 %v5876_v54  ;;  %2894 = vmatpush.msra.mxu3 %v5910_v7 }
 0xd2f   :  { %2181 = vmatmul.f32.gmra.mxu2 %v5638_v21  ;;  %2750 = vmatpush.msra.mxu1 %v2749_v63  ;;  %v2758_v63 = vsub.f32 %v2618_v44, %v5976_v23  ;;  %v5991_v44 = vand.u32 4294901760, %v2616_v28 }
 0xd30   :  { %2641 = vmatpush.msra.mxu0 %v5892_v56  ;;  %2896 = vmatpush.msra.mxu3 %v5934_v45 }
 0xd31   :  { %2294 = vmatmul.f32.gmra.mxu3 %v5597_v8  ;;  %2827 = vmatpush.msra.mxu2 %v5937_v41  ;;  %v2759_v38 = vand.u32 4294901760, %v2758_v63  ;;  %v2764_v52 = vsub.f32 %v2616_v28, %v5991_v44 }
 0xd32   :  { %2643 = vmatpush.msra.mxu0 %v5910_v7  ;;  %2898 = vmatpush.msra.mxu3 %v5956_v53  ;;  %v6009_v24 = vpop.f32.mrf.mxu1 }
 0xd33   :  { %2830 = vmatpush.msra.mxu2 %v5961_v0  ;;  %2756 = vmatpush.msra.mxu1 %v2755_v32  ;;  %v2760_v3 = vsub.f32 %v2758_v63, %v2759_v38  ;;  %v5998_v32 = vpop.f32.mrf.mxu2  ;;  %v6000_v14 = vpop.f32.mrf.mxu0  ;;  %6952 = vst [vmem:[#allocation42_spill] sm:$0xff] %v6009_v24 }
 0xd34   :  { %2645 = vmatpush.msra.mxu0 %v5934_v45  ;;  %2900 = vmatpush.msra.mxu3 %v5976_v23  ;;  %6949 = vst [vmem:[#allocation21_spill] sm:$0xff] %v5998_v32 }
 0xd35   :  { %2059 = vmatmul.f32.gmra.mxu0 %v5597_v8  ;;  %2120 = vmatmul.f32.gmra.mxu1 %v5622_v18  ;;  %v2761_v60 = vand.u32 4294901760, %v2760_v3  ;;  %6950 = vst [vmem:[#allocation29_spill] sm:$0xff] %v6000_v14  ;;  %v6005_v3 = vpop.f32.mrf.mxu3 }
 0xd36   :  { %2647 = vmatpush.msra.mxu0 %v5956_v53  ;;  %2833 = vmatpush.msra.mxu2 %v2758_v63  ;;  %v2765_v63 = vand.u32 4294901760, %v2764_v52  ;;  %6951 = vst [vmem:[#allocation30_spill] sm:$0xff] %v6005_v3 }
 0xd37   :  { %2189 = vmatmul.f32.gmra.mxu2 %v5653_v36  ;;  %2902 = vmatpush.msra.mxu3 %v5991_v44 }
 0xd38   :  { %2649 = vmatpush.msra.mxu0 %v5976_v23  ;;  %2762 = vmatpush.msra.mxu1 %v2761_v60  ;;  %v2766_v28 = vsub.f32 %v2764_v52, %v2765_v63  ;;  %v2773_v60 = vand.u32 4294901760, %v2772_v48 }
 0xd39   :  { %2298 = vmatmul.f32.gmra.mxu3 %v5622_v18  ;;  %2836 = vmatpush.msra.mxu2 %v2764_v52 }
 0xd3a   :  { %2651 = vmatpush.msra.mxu0 %v5991_v44  ;;  %2904 = vmatpush.msra.mxu3 %v5996_v39  ;;  %v2767_v29 = vand.u32 4294901760, %v2766_v28 }
 0xd3b   :  { %2839 = vmatpush.msra.mxu2 %v2770_v15  ;;  %v6019_v52 = vpop.f32.mrf.mxu2  ;;  %v6023_v28 = vpop.f32.mrf.mxu0 }
 0xd3c   :  { %2653 = vmatpush.msra.mxu0 %v5996_v39  ;;  %2768 = vmatpush.msra.mxu1 %v2767_v29  ;;  %6955 = vst [vmem:[#allocation12_spill] sm:$0xff] %v6019_v52  ;;  %v6033_v29 = vpop.f32.mrf.mxu1 }
 0xd3d   :  { %2063 = vmatmul.f32.gmra.mxu0 %v5622_v18  ;;  %2124 = vmatmul.f32.gmra.mxu1 %v5643_v26  ;;  %6957 = vst [vmem:[#allocation43_spill] sm:$0xff] %v6023_v28  ;;  %v6027_v50 = vpop.f32.mrf.mxu3  ;;  %v2617_v28 = vld [vmem:[#allocation6 + $0x198] sm:$0xff] }
 0xd3e   :  { %2774 = vmatpush.msra.mxu1 %v2773_v60  ;;  %6958 = vst [vmem:[#allocation13_spill] sm:$0xff] %v6027_v50 }
 0xd3f   :  { %2197 = vmatmul.f32.gmra.mxu2 %v5668_v47  ;;  %6960 = vst [vmem:[#allocation48_spill] sm:$0xff] %v6033_v29 }
 0xd41   :  { %2302 = vmatmul.f32.gmra.mxu3 %v5643_v26 }
 0xd45   :  { %2067 = vmatmul.f32.gmra.mxu0 %v5643_v26  ;;  %2128 = vmatmul.f32.gmra.mxu1 %v5658_v46 }
 0xd47   :  { %2205 = vmatmul.f32.gmra.mxu2 %v5682_v20 }
 0xd49   :  { %2306 = vmatmul.f32.gmra.mxu3 %v5658_v46 }
 0xd4d   :  { %2071 = vmatmul.f32.gmra.mxu0 %v5658_v46  ;;  %2132 = vmatmul.f32.gmra.mxu1 %v5673_v61 }
 0xd4f   :  { %2213 = vmatmul.f32.gmra.mxu2 %v5691_v34 }
 0xd51   :  { %2310 = vmatmul.f32.gmra.mxu3 %v5673_v61 }
 0xd55   :  { %2075 = vmatmul.f32.gmra.mxu0 %v5673_v61  ;;  %2136 = vmatmul.f32.gmra.mxu1 %v5721_v19 }
 0xd57   :  { %2221 = vmatmul.f32.gmra.mxu2 %v5734_v37 }
 0xd59   :  { %2314 = vmatmul.f32.gmra.mxu3 %v5721_v19 }
 0xd5d   :  { %2079 = vmatmul.f32.gmra.mxu0 %v5721_v19  ;;  %2140 = vmatmul.f32.gmra.mxu1 %v5841_v35 }
 0xd5f   :  { %2229 = vmatmul.f32.gmra.mxu2 %v5854_v16 }
 0xd61   :  { %2318 = vmatmul.f32.gmra.mxu3 %v5841_v35 }
 0xd65   :  { %2083 = vmatmul.f32.gmra.mxu0 %v5841_v35  ;;  %2422 = vmatmul.f32.vlgmr.msrb.gmra.mxu1 %v5595_v5 }
 0xd66   :  { %3036 = vmatpush.msrb.mxu1 %v5876_v54  ;;  %v2629_v54 = vld [vmem:[#allocation6 + $0x1f8] sm:$0xff] }
 0xd67   :  { %2509 = vmatmul.f32.vlgmr.msrb.gmra.mxu2 %v5588_v57 }
 0xd68   :  { %3038 = vmatpush.msrb.mxu1 %v5892_v56  ;;  %v6044_v56 = vpop.f32.mrf.mxu2 }
 0xd69   :  { %2566 = vmatmul.f32.vlgmr.msrb.gmra.mxu3 %v5588_v57  ;;  %6962 = vst [vmem:[#allocation22_spill] sm:$0xff] %v6044_v56 }
 0xd6a   :  { %3040 = vmatpush.msrb.mxu1 %v5910_v7  ;;  %v6051_v7 = vpop.f32.mrf.mxu0 }
 0xd6b   :  { %6963 = vst [vmem:[#allocation49_spill] sm:$0xff] %v6051_v7 }
 0xd6c   :  { %3042 = vmatpush.msrb.mxu1 %v5934_v45  ;;  %v6056_v45 = vpop.f32.mrf.mxu3 }
 0xd6d   :  { %2356 = vmatmul.f32.vlgmr.msrb.gmra.mxu0 %v5591_v25  ;;  %2428 = vmatmul.f32.gmra.mxu1 %v5620_v13  ;;  %6965 = vst [vmem:[#allocation32_spill] sm:$0xff] %v6056_v45 }
 0xd6e   :  { %2965 = vmatpush.msrb.mxu0 %v6953_v43  ;;  %3044 = vmatpush.msrb.mxu1 %v5956_v53  ;;  %v2627_v53 = vld [vmem:[#allocation6 + $0x1e8] sm:$0xff] }
 0xd6f   :  { %2513 = vmatmul.f32.gmra.mxu2 %v5597_v8 }
 0xd70   :  { %2969 = vmatpush.msrb.mxu0 %v6954_v27  ;;  %v6040_v27 = vand.u32 4294901760, %v2629_v54  ;;  %3046 = vmatpush.msrb.mxu1 %v5976_v23 }
 0xd71   :  { %2570 = vmatmul.f32.gmra.mxu3 %v5597_v8 }
 0xd72   :  { %2973 = vmatpush.msrb.mxu0 %v6956_v30  ;;  %3093 = vmatpush.msrb.mxu2 %v6040_v27  ;;  %v6048_v41 = vsub.f32 %v2629_v54, %v6040_v27  ;;  %v6066_v30 = vand.u32 4294901760, %v2627_v53  ;;  %v6074_v48 = vpop.f32.mrf.mxu0 }
 0xd73   :  { %3048 = vmatpush.msrb.mxu1 %v5991_v44  ;;  %6966 = vst [vmem:[#allocation33_spill] sm:$0xff] %v6074_v48  ;;  %v6077_v44 = vpop.f32.mrf.mxu2 }
 0xd74   :  { %2977 = vmatpush.msrb.mxu0 %v6959_v55  ;;  %v6829_v15 = vand.u32 4294901760, %v6048_v41  ;;  %3095 = vmatpush.msrb.mxu2 %v6066_v30  ;;  %v6072_v23 = vsub.f32 %v2627_v53, %v6066_v30  ;;  %6967 = vst [vmem:[#allocation46_spill] sm:$0xff] %v6077_v44  ;;  %v6080_v60 = vpop.f32.mrf.mxu3  ;;  %v2625_v55 = vld [vmem:[#allocation6 + $0x1d8] sm:$0xff] }
 0xd75   :  { %2361 = vmatmul.f32.gmra.mxu0 %v5608_v58  ;;  %2434 = vmatmul.f32.gmra.mxu1 %v5641_v11  ;;  %6968 = vst [vmem:[#allocation14_spill] sm:$0xff] %v6080_v60  ;;  %v2615_v60 = vld [vmem:[#allocation6 + $0x188] sm:$0xff] }
 0xd76   :  { %2981 = vmatpush.msrb.mxu0 %v6961_v49  ;;  %v3184_v0 = vsub.f32 %v6048_v41, %v6829_v15  ;;  %3050 = vmatpush.msrb.mxu1 %v5996_v39  ;;  %v6828_v43 = vand.u32 4294901760, %v6072_v23  ;;  %v1660_v49 = vld [vmem:[#allocation6 + $0x211] ss:$8 sm:$0x3] }
 0xd77   :  { %2517 = vmatmul.f32.gmra.mxu2 %v5622_v18 }
 0xd78   :  { %2985 = vmatpush.msrb.mxu0 %v2759_v38  ;;  %v6054_v38 = vpop.f32.mrf.mxu1  ;;  %v3190_v39 = vsub.f32 %v6072_v23, %v6828_v43 }
 0xd79   :  { %2574 = vmatmul.f32.gmra.mxu3 %v5622_v18  ;;  %6964 = vst [vmem:[#allocation23_spill] sm:$0xff] %v6054_v38  ;;  %v6978_v38 = vand.u32 4294901760, %v6048_v41 }
 0xd7a   :  { %2989 = vmatpush.msrb.mxu0 %v2765_v63  ;;  %v3191_v54 = vand.u32 4294901760, %v3190_v39 }
 0xd7c   :  { %2993 = vmatpush.msrb.mxu0 %v2771_v17  ;;  %v3185_v17 = vand.u32 4294901760, %v3184_v0  ;;  %v6087_v0 = vand.u32 4294901760, %v2625_v55 }
 0xd7d   :  { %2366 = vmatmul.f32.gmra.mxu0 %v5633_v10  ;;  %2440 = vmatmul.f32.gmra.mxu1 %v5656_v59 }
 0xd7e   :  { %3186 = vmatpush.msrb.mxu3 %v3185_v17  ;;  %3097 = vmatpush.msrb.mxu2 %v6087_v0  ;;  %v6092_v53 = vsub.f32 %v2625_v55, %v6087_v0  ;;  %v6094_v17 = vperm.slane %v1660_v49, 0  ;;  %v2623_v55 = vld [vmem:[#allocation6 + $0x1c8] sm:$0xff] }
 0xd7f   :  { %2521 = vmatmul.f32.gmra.mxu2 %v5643_v26  ;;  %v6106_v50 = vand.u32 4294901760, %v2623_v55 }
 0xd80   :  { %3192 = vmatpush.msrb.mxu3 %v3191_v54  ;;  %6969 = vst [vmem:[#allocation47_spill] sm:$0xff] %v6094_v17  ;;  %v6830_v33 = vand.u32 4294901760, %v6092_v53 }
 0xd81   :  { %2578 = vmatmul.f32.gmra.mxu3 %v5643_v26  ;;  %3099 = vmatpush.msrb.mxu2 %v6106_v50 }
 0xd82   :  { %v3196_v54 = vsub.f32 %v6092_v53, %v6830_v33 }
 0xd84   :  { %v3197_v62 = vand.u32 4294901760, %v3196_v54 }
 0xd85   :  { %2371 = vmatmul.f32.gmra.mxu0 %v5650_v51  ;;  %2446 = vmatmul.f32.gmra.mxu1 %v5671_v2 }
 0xd86   :  { %3198 = vmatpush.msrb.mxu3 %v3197_v62 }
 0xd87   :  { %2525 = vmatmul.f32.gmra.mxu2 %v5658_v46 }
 0xd89   :  { %2582 = vmatmul.f32.gmra.mxu3 %v5658_v46 }
 0xd8d   :  { %2376 = vmatmul.f32.gmra.mxu0 %v5665_v40  ;;  %2452 = vmatmul.f32.gmra.mxu1 %v5685_v9 }
 0xd8f   :  { %2529 = vmatmul.f32.gmra.mxu2 %v5673_v61 }
 0xd91   :  { %2586 = vmatmul.f32.gmra.mxu3 %v5673_v61 }
 0xd95   :  { %2381 = vmatmul.f32.gmra.mxu0 %v5680_v42  ;;  %2458 = vmatmul.f32.gmra.mxu1 %v5728_v1 }
 0xd97   :  { %2533 = vmatmul.f32.gmra.mxu2 %v5721_v19 }
 0xd99   :  { %2590 = vmatmul.f32.gmra.mxu3 %v5721_v19 }
 0xd9a   :  { %v1865_v63 = vpop.f32.mrf.mxu1 }
 0xd9d   :  { %2386 = vmatmul.f32.gmra.mxu0 %v5725_v31  ;;  %2464 = vmatmul.f32.gmra.mxu1 %v5849_v12 }
 0xd9f   :  { %2537 = vmatmul.f32.gmra.mxu2 %v5841_v35 }
 0xda1   :  { %2594 = vmatmul.f32.gmra.mxu3 %v5841_v35 }
 0xda2   :  { %v1776_v43 = vpop.f32.mrf.mxu0  ;;  %v1938_v15 = vpop.f32.mrf.mxu2 }
 0xda3   :  { %v1777_v39 = vadd.f32 %v1776_v43, %v6094_v17  ;;  %v6099_v3 = vpop.f32.mrf.mxu1  ;;  %v6110_v43 = vperm.slane %v1660_v49, 1 }
 0xda4   :  { %6970 = vst [vmem:[#allocation15_spill] sm:$0xff] %v6099_v3  ;;  %v2011_v22 = vpop.f32.mrf.mxu3 }
 0xda5   :  { %v1866_v32 = vadd.f32 %v1865_v63, %v1777_v39  ;;  %2391 = vmatmul.f32.gmra.mxu0 %v5845_v4  ;;  %2776 = vmatmul.f32.vlgmr.msra.gmra.mxu1 %v5588_v57  ;;  %v6114_v63 = vsub.f32 %v2623_v55, %v6106_v50  ;;  %v2621_v55 = vld [vmem:[#allocation6 + $0x1b8] sm:$0xff] }
 0xda6   :  { %3344 = vmatpush.msra.mxu1 %v6040_v27 }
 0xda7   :  { %v1939_v14 = vadd.f32 %v1938_v15, %v1866_v32  ;;  %2842 = vmatmul.f32.vlgmr.msra.gmra.mxu2 %v5591_v25  ;;  %v6831_v32 = vand.u32 4294901760, %v6114_v63 }
 0xda8   :  { %3346 = vmatpush.msra.mxu1 %v6066_v30 }
 0xda9   :  { %v6116_v39 = vadd.f32 %v2011_v22, %v1939_v14  ;;  %2908 = vmatmul.f32.vlgmr.msra.gmra.mxu3 %v5595_v5  ;;  %v3202_v14 = vsub.f32 %v6114_v63, %v6831_v32 }
 0xdaa   :  { %v6120_v54 = vpop.f32.mrf.mxu0  ;;  %v2174_v33 = vpop.f32.mrf.mxu2  ;;  %3348 = vmatpush.msra.mxu1 %v6087_v0 }
 0xdab   :  { %6971 = vst [vmem:[#allocation24_spill] sm:$0xff] %v6120_v54  ;;  %v6123_v15 = vpop.f32.mrf.mxu1  ;;  %v2175_v62 = vadd.f32 %v2174_v33, %v6110_v43  ;;  %v3203_v3 = vand.u32 4294901760, %v3202_v14  ;;  %v6134_v54 = vand.u32 4294901760, %v2621_v55 }
 0xdac   :  { %6972 = vst [vmem:[#allocation51_spill] sm:$0xff] %v6123_v15  ;;  %v2291_v49 = vpop.f32.mrf.mxu3  ;;  %3350 = vmatpush.msra.mxu1 %v6106_v50 }
 0xdad   :  { %v6130_v22 = vadd.f32 %v2291_v49, %v2175_v62  ;;  %2659 = vmatmul.f32.vlgmr.msra.gmra.mxu0 %v5617_v6  ;;  %2780 = vmatmul.f32.gmra.mxu1 %v5597_v8  ;;  %v6141_v33 = vsub.f32 %v2621_v55, %v6134_v54 }
 0xdae   :  { %3272 = vmatpush.msra.mxu0 %v6048_v41  ;;  %3204 = vmatpush.msrb.mxu3 %v3203_v3  ;;  %v6980_v41 = vand.u32 4294901760, %v6092_v53 }
 0xdaf   :  { %2847 = vmatmul.f32.gmra.mxu2 %v5608_v58  ;;  %v6832_v14 = vand.u32 4294901760, %v6141_v33  ;;  %3352 = vmatpush.msra.mxu1 %v6134_v54 }
 0xdb0   :  { %3101 = vmatpush.msrb.mxu2 %v6134_v54  ;;  %3275 = vmatpush.msra.mxu0 %v6072_v23 }
 0xdb1   :  { %2914 = vmatmul.f32.gmra.mxu3 %v5620_v13  ;;  %v3208_v55 = vsub.f32 %v6141_v33, %v6832_v14 }
 0xdb2   :  { %v6145_v62 = vpop.f32.mrf.mxu0  ;;  %v2182_v49 = vpop.f32.mrf.mxu2  ;;  %3278 = vmatpush.msra.mxu0 %v6092_v53 }
 0xdb3   :  { %6973 = vst [vmem:[#allocation25_spill] sm:$0xff] %v6145_v62  ;;  %v6149_v32 = vpop.f32.mrf.mxu1  ;;  %v2183_v3 = vadd.f32 %v2182_v49, %v6110_v43  ;;  %v2619_v62 = vld [vmem:[#allocation6 + $0x1a8] sm:$0xff]  ;;  %v3209_v24 = vand.u32 4294901760, %v3208_v55 }
 0xdb4   :  { %6974 = vst [vmem:[#allocation34_spill] sm:$0xff] %v6149_v32  ;;  %v2295_v15 = vpop.f32.mrf.mxu3  ;;  %v6160_v45 = vand.u32 4294901760, %v2619_v62  ;;  %3281 = vmatpush.msra.mxu0 %v6114_v63 }
 0xdb5   :  { %v6156_v52 = vadd.f32 %v2295_v15, %v2183_v3  ;;  %2667 = vmatmul.f32.gmra.mxu0 %v5638_v21  ;;  %2784 = vmatmul.f32.gmra.mxu1 %v5622_v18 }
 0xdb6   :  { %3210 = vmatpush.msrb.mxu3 %v3209_v24  ;;  %3103 = vmatpush.msrb.mxu2 %v6160_v45  ;;  %v6166_v49 = vsub.f32 %v2619_v62, %v6160_v45 }
 0xdb7   :  { %2852 = vmatmul.f32.gmra.mxu2 %v5633_v10  ;;  %3284 = vmatpush.msra.mxu0 %v6141_v33 }
 0xdb8   :  { %v3213_v55 = vand.u32 4294901760, %v6166_v49  ;;  %3354 = vmatpush.msra.mxu1 %v6160_v45 }
 0xdb9   :  { %2920 = vmatmul.f32.gmra.mxu3 %v5641_v11  ;;  %3287 = vmatpush.msra.mxu0 %v6166_v49 }
 0xdba   :  { %v6170_v15 = vpop.f32.mrf.mxu0  ;;  %v2190_v3 = vpop.f32.mrf.mxu2  ;;  %v3214_v62 = vsub.f32 %v6166_v49, %v3213_v55 }
 0xdbb   :  { %6975 = vst [vmem:[#allocation55_spill] sm:$0xff] %v6170_v15  ;;  %v6174_v14 = vpop.f32.mrf.mxu1  ;;  %v2191_v24 = vadd.f32 %v2190_v3, %v6110_v43  ;;  %v6183_v15 = vand.u32 4294901760, %v2617_v28 }
 0xdbc   :  { %6976 = vst [vmem:[#allocation35_spill] sm:$0xff] %v6174_v14  ;;  %v2299_v32 = vpop.f32.mrf.mxu3  ;;  %v3215_v29 = vand.u32 4294901760, %v3214_v62  ;;  %v6187_v14 = vand.u32 4294901760, %v2615_v60 }
 0xdbd   :  { %v6179_v56 = vadd.f32 %v2299_v32, %v2191_v24  ;;  %2675 = vmatmul.f32.gmra.mxu0 %v5653_v36  ;;  %2788 = vmatmul.f32.gmra.mxu1 %v5643_v26  ;;  %v3218_v3 = vsub.f32 %v2617_v28, %v6183_v15 }
 0xdbe   :  { %3356 = vmatpush.msra.mxu1 %v6183_v15  ;;  %3216 = vmatpush.msrb.mxu3 %v3215_v29  ;;  %v3224_v49 = vsub.f32 %v2615_v60, %v6187_v14 }
 0xdbf   :  { %2857 = vmatmul.f32.gmra.mxu2 %v5650_v51  ;;  %v3219_v32 = vand.u32 4294901760, %v3218_v3  ;;  %3290 = vmatpush.msra.mxu0 %v3218_v3  ;;  %v6979_v51 = vand.u32 4294901760, %v6072_v23 }
 0xdc0   :  { %3105 = vmatpush.msrb.mxu2 %v6183_v15  ;;  %3358 = vmatpush.msra.mxu1 %v6187_v14  ;;  %v3225_v44 = vand.u32 4294901760, %v3224_v49 }
 0xdc1   :  { %2926 = vmatmul.f32.gmra.mxu3 %v5656_v59  ;;  %v3220_v29 = vsub.f32 %v3218_v3, %v3219_v32  ;;  %3293 = vmatpush.msra.mxu0 %v3224_v49 }
 0xdc2   :  { %v6193_v24 = vpop.f32.mrf.mxu0  ;;  %v2198_v62 = vpop.f32.mrf.mxu2  ;;  %3107 = vmatpush.msrb.mxu2 %v6187_v14  ;;  %v3226_v17 = vsub.f32 %v3224_v49, %v3225_v44 }
 0xdc3   :  { %6977 = vst [vmem:[#allocation56_spill] sm:$0xff] %v6193_v24  ;;  %v6197_v28 = vpop.f32.mrf.mxu1  ;;  %v2199_v7 = vadd.f32 %v2198_v62, %v6110_v43  ;;  %v3221_v24 = vand.u32 4294901760, %v3220_v29 }
 0xdc4   :  { %3419 = vmatpush.msra.mxu2 %v6978_v38  ;;  %v2303_v48 = vpop.f32.mrf.mxu3  ;;  %v3227_v3 = vand.u32 4294901760, %v3226_v17  ;;  %v6982_v17 = vand.u32 4294901760, %v6141_v33 }
 0xdc5   :  { %v6202_v60 = vadd.f32 %v2303_v48, %v2199_v7  ;;  %2683 = vmatmul.f32.gmra.mxu0 %v5668_v47  ;;  %2792 = vmatmul.f32.gmra.mxu1 %v5658_v46  ;;  %v6981_v48 = vand.u32 4294901760, %v6114_v63 }
 0xdc6   :  { %3423 = vmatpush.msra.mxu2 %v6979_v51  ;;  %3222 = vmatpush.msrb.mxu3 %v3221_v24 }
 0xdc7   :  { %2862 = vmatmul.f32.gmra.mxu2 %v5665_v40 }
 0xdc8   :  { %3427 = vmatpush.msra.mxu2 %v6980_v41  ;;  %3228 = vmatpush.msrb.mxu3 %v3227_v3 }
 0xdc9   :  { %2932 = vmatmul.f32.gmra.mxu3 %v5671_v2 }
 0xdca   :  { %v6212_v7 = vpop.f32.mrf.mxu0  ;;  %v2206_v38 = vpop.f32.mrf.mxu2  ;;  %3431 = vmatpush.msra.mxu2 %v6981_v48  ;;  %3490 = vmatpush.msra.mxu3 %v6040_v27 }
 0xdcb   :  { %v6216_v49 = vpop.f32.mrf.mxu1  ;;  %v2207_v51 = vadd.f32 %v2206_v38, %v6110_v43 }
 0xdcc   :  { %v2307_v23 = vpop.f32.mrf.mxu3  ;;  %3435 = vmatpush.msra.mxu2 %v6982_v17  ;;  %3492 = vmatpush.msra.mxu3 %v6066_v30 }
 0xdcd   :  { %v6222_v53 = vadd.f32 %v2307_v23, %v2207_v51  ;;  %2691 = vmatmul.f32.gmra.mxu0 %v5682_v20  ;;  %2796 = vmatmul.f32.gmra.mxu1 %v5673_v61 }
 0xdce   :  { %3439 = vmatpush.msra.mxu2 %v3213_v55  ;;  %3494 = vmatpush.msra.mxu3 %v6087_v0 }
 0xdcf   :  { %2867 = vmatmul.f32.gmra.mxu2 %v5680_v42 }
 0xdd0   :  { %3443 = vmatpush.msra.mxu2 %v3219_v32  ;;  %3496 = vmatpush.msra.mxu3 %v6106_v50 }
 0xdd1   :  { %2938 = vmatmul.f32.gmra.mxu3 %v5685_v9 }
 0xdd2   :  { %v6230_v27 = vpop.f32.mrf.mxu0  ;;  %v2214_v63 = vpop.f32.mrf.mxu2  ;;  %3447 = vmatpush.msra.mxu2 %v3225_v44  ;;  %3498 = vmatpush.msra.mxu3 %v6134_v54 }
 0xdd3   :  { %v6233_v33 = vpop.f32.mrf.mxu1  ;;  %v2215_v24 = vadd.f32 %v2214_v63, %v6110_v43 }
 0xdd4   :  { %v2311_v62 = vpop.f32.mrf.mxu3  ;;  %3500 = vmatpush.msra.mxu3 %v6160_v45 }
 0xdd5   :  { %v6237_v30 = vadd.f32 %v2311_v62, %v2215_v24  ;;  %2699 = vmatmul.f32.gmra.mxu0 %v5691_v34  ;;  %2800 = vmatmul.f32.gmra.mxu1 %v5721_v19 }
 0xdd6   :  { %3502 = vmatpush.msra.mxu3 %v6183_v15 }
 0xdd7   :  { %2872 = vmatmul.f32.gmra.mxu2 %v5725_v31 }
 0xdd8   :  { %3504 = vmatpush.msra.mxu3 %v6187_v14 }
 0xdd9   :  { %2944 = vmatmul.f32.gmra.mxu3 %v5728_v1 }
 0xdda   :  { %v6245_v50 = vpop.f32.mrf.mxu0  ;;  %v2222_v44 = vpop.f32.mrf.mxu2 }
 0xddb   :  { %v2141_v0 = vpop.f32.mrf.mxu1  ;;  %v2223_v54 = vadd.f32 %v2222_v44, %v6110_v43 }
 0xddc   :  { %v2315_v55 = vpop.f32.mrf.mxu3 }
 0xddd   :  { %v6249_v32 = vadd.f32 %v2315_v55, %v2223_v54  ;;  %2707 = vmatmul.f32.gmra.mxu0 %v5734_v37  ;;  %2804 = vmatmul.f32.gmra.mxu1 %v5841_v35 }
 0xddf   :  { %2877 = vmatmul.f32.gmra.mxu2 %v5845_v4 }
 0xde1   :  { %2950 = vmatmul.f32.gmra.mxu3 %v5849_v12 }
 0xde2   :  { %v2084_v45 = vpop.f32.mrf.mxu0  ;;  %v2230_v15 = vpop.f32.mrf.mxu2 }
 0xde3   :  { %v2085_v29 = vadd.f32 %v2084_v45, %v6116_v39  ;;  %v2231_v14 = vadd.f32 %v2230_v15, %v6110_v43  ;;  %v2423_v3 = vpop.f32.mrf.mxu1 }
 0xde4   :  { %v2319_v41 = vpop.f32.mrf.mxu3 }
 0xde5   :  { %v6257_v38 = vadd.f32 %v2141_v0, %v2085_v29  ;;  %v6259_v48 = vadd.f32 %v2319_v41, %v2231_v14  ;;  %2715 = vmatmul.f32.gmra.mxu0 %v5854_v16  ;;  %3052 = vmatmul.f32.vlgmr.msrb.gmra.mxu1 %v5588_v57 }
 0xde7   :  { %3113 = vmatmul.f32.vlgmr.msrb.gmra.mxu2 %v5617_v6 }
 0xde9   :  { %3230 = vmatmul.f32.vlgmr.msrb.gmra.mxu3 %v5588_v57 }
 0xdea   :  { %v2357_v51 = vpop.f32.mrf.mxu0  ;;  %v2510_v23 = vpop.f32.mrf.mxu2 }
 0xdeb   :  { %v2358_v39 = vadd.f32 %v2357_v51, %v6130_v22  ;;  %v2429_v17 = vpop.f32.mrf.mxu1 }
 0xdec   :  { %v2567_v43 = vpop.f32.mrf.mxu3 }
 0xded   :  { %v2424_v63 = vadd.f32 %v2423_v3, %v2358_v39  ;;  %2995 = vmatmul.f32.vlgmr.msrb.gmra.mxu0 %v5588_v57  ;;  %3056 = vmatmul.f32.gmra.mxu1 %v5597_v8 }
 0xdef   :  { %v2511_v24 = vadd.f32 %v2510_v23, %v2424_v63  ;;  %3121 = vmatmul.f32.gmra.mxu2 %v5638_v21 }
 0xdf1   :  { %v6269_v62 = vadd.f32 %v2567_v43, %v2511_v24  ;;  %3234 = vmatmul.f32.gmra.mxu3 %v5597_v8 }
 0xdf2   :  { %v2362_v6 = vpop.f32.mrf.mxu0  ;;  %v2514_v44 = vpop.f32.mrf.mxu2 }
 0xdf3   :  { %6983 = vst [vmem:[#allocation50_spill] sm:$0xff] %v6269_v62  ;;  %v2363_v0 = vadd.f32 %v2362_v6, %v6156_v52  ;;  %v2435_v54 = vpop.f32.mrf.mxu1 }
 0xdf4   :  { %v2571_v22 = vpop.f32.mrf.mxu3 }
 0xdf5   :  { %v2430_v55 = vadd.f32 %v2429_v17, %v2363_v0  ;;  %2999 = vmatmul.f32.gmra.mxu0 %v5597_v8  ;;  %3060 = vmatmul.f32.gmra.mxu1 %v5622_v18 }
 0xdf7   :  { %v2515_v45 = vadd.f32 %v2514_v44, %v2430_v55  ;;  %3129 = vmatmul.f32.gmra.mxu2 %v5653_v36 }
 0xdf9   :  { %v6276_v15 = vadd.f32 %v2571_v22, %v2515_v45  ;;  %3238 = vmatmul.f32.gmra.mxu3 %v5622_v18  ;;  %v6297_v45 = vld [vmem:[#allocation6 + $0xf8] sm:$0xff] }
 0xdfa   :  { %v2367_v21 = vpop.f32.mrf.mxu0  ;;  %v2518_v29 = vpop.f32.mrf.mxu2  ;;  %6987 = vst [vmem:[#allocation53_spill] sm:$0xff] %v6297_v45  ;;  %3604 = vmatpush.msrb.mxu1 %v6297_v45  ;;  %3706 = vmatpush.msrb.mxu3 %v6297_v45 }
 0xdfb   :  { %6984 = vst [vmem:[#allocation17_spill] sm:$0xff] %v6276_v15  ;;  %v2368_v14 = vadd.f32 %v2367_v21, %v6179_v56  ;;  %v2441_v3 = vpop.f32.mrf.mxu1 }
 0xdfc   :  { %v2575_v52 = vpop.f32.mrf.mxu3 }
 0xdfd   :  { %v2436_v41 = vadd.f32 %v2435_v54, %v2368_v14  ;;  %3003 = vmatmul.f32.gmra.mxu0 %v5622_v18  ;;  %3064 = vmatmul.f32.gmra.mxu1 %v5643_v26 }
 0xdff   :  { %v2519_v51 = vadd.f32 %v2518_v29, %v2436_v41  ;;  %3137 = vmatmul.f32.gmra.mxu2 %v5668_v47 }
 0xe01   :  { %v6283_v23 = vadd.f32 %v2575_v52, %v2519_v51  ;;  %3242 = vmatmul.f32.gmra.mxu3 %v5643_v26  ;;  %v6312_v51 = vld [vmem:[#allocation6 + $0xe8] sm:$0xff] }
 0xe02   :  { %v2372_v36 = vpop.f32.mrf.mxu0  ;;  %v2522_v39 = vpop.f32.mrf.mxu2  ;;  %3605 = vmatpush.msrb.mxu1 %v6312_v51  ;;  %3707 = vmatpush.msrb.mxu3 %v6312_v51 }
 0xe03   :  { %6985 = vst [vmem:[#allocation52_spill] sm:$0xff] %v6283_v23  ;;  %v2373_v17 = vadd.f32 %v2372_v36, %v6202_v60  ;;  %v2447_v43 = vpop.f32.mrf.mxu1 }
 0xe04   :  { %v2579_v56 = vpop.f32.mrf.mxu3 }
 0xe05   :  { %v2442_v63 = vadd.f32 %v2441_v3, %v2373_v17  ;;  %3007 = vmatmul.f32.gmra.mxu0 %v5643_v26  ;;  %3068 = vmatmul.f32.gmra.mxu1 %v5658_v46 }
 0xe07   :  { %v2523_v24 = vadd.f32 %v2522_v39, %v2442_v63  ;;  %3145 = vmatmul.f32.gmra.mxu2 %v5682_v20 }
 0xe09   :  { %v6290_v6 = vadd.f32 %v2579_v56, %v2523_v24  ;;  %3246 = vmatmul.f32.gmra.mxu3 %v5658_v46 }
 0xe0a   :  { %v2377_v47 = vpop.f32.mrf.mxu0  ;;  %v2526_v44 = vpop.f32.mrf.mxu2 }
 0xe0b   :  { %6986 = vst [vmem:[#allocation18_spill] sm:$0xff] %v6290_v6  ;;  %v2378_v0 = vadd.f32 %v2377_v47, %v6222_v53  ;;  %v2453_v54 = vpop.f32.mrf.mxu1  ;;  %v6327_v47 = vld [vmem:[#allocation6 + $0xd8] sm:$0xff] }
 0xe0c   :  { %v2583_v60 = vpop.f32.mrf.mxu3  ;;  %3606 = vmatpush.msrb.mxu1 %v6327_v47  ;;  %3708 = vmatpush.msrb.mxu3 %v6327_v47 }
 0xe0d   :  { %v2448_v22 = vadd.f32 %v2447_v43, %v2378_v0  ;;  %3011 = vmatmul.f32.gmra.mxu0 %v5658_v46  ;;  %3072 = vmatmul.f32.gmra.mxu1 %v5673_v61 }
 0xe0f   :  { %v2527_v55 = vadd.f32 %v2526_v44, %v2448_v22  ;;  %3153 = vmatmul.f32.gmra.mxu2 %v5691_v34  ;;  %v6307_v34 = vld [vmem:[#allocation6 + $0xf0] sm:$0xff] }
 0xe10   :  { %3584 = vmatpush.msrb.mxu0 %v6307_v34  ;;  %3686 = vmatpush.msrb.mxu2 %v6307_v34 }
 0xe11   :  { %v6301_v20 = vadd.f32 %v2583_v60, %v2527_v55  ;;  %3250 = vmatmul.f32.gmra.mxu3 %v5673_v61 }
 0xe12   :  { %v2382_v53 = vpop.f32.mrf.mxu0  ;;  %v2530_v21 = vpop.f32.mrf.mxu2 }
 0xe13   :  { %v2383_v29 = vadd.f32 %v2382_v53, %v6237_v30  ;;  %v2459_v14 = vpop.f32.mrf.mxu1 }
 0xe14   :  { %v2587_v3 = vpop.f32.mrf.mxu3 }
 0xe15   :  { %v2454_v52 = vadd.f32 %v2453_v54, %v2383_v29  ;;  %3015 = vmatmul.f32.gmra.mxu0 %v5673_v61  ;;  %3076 = vmatmul.f32.gmra.mxu1 %v5721_v19 }
 0xe17   :  { %v2531_v41 = vadd.f32 %v2530_v21, %v2454_v52  ;;  %3161 = vmatmul.f32.gmra.mxu2 %v5734_v37  ;;  %v6322_v37 = vld [vmem:[#allocation6 + $0xe0] sm:$0xff]  ;;  %v6344_v21 = vld [vmem:[#allocation6 + $0xc8] sm:$0xff] }
 0xe18   :  { %3585 = vmatpush.msrb.mxu0 %v6322_v37  ;;  %3687 = vmatpush.msrb.mxu2 %v6322_v37  ;;  %v6361_v52 = vld [vmem:[#allocation6 + $0xc0] sm:$0xff] }
 0xe19   :  { %v6316_v30 = vadd.f32 %v2587_v3, %v2531_v41  ;;  %3254 = vmatmul.f32.gmra.mxu3 %v5721_v19  ;;  %3607 = vmatpush.msrb.mxu1 %v6344_v21 }
 0xe1a   :  { %v2387_v36 = vpop.f32.mrf.mxu0  ;;  %v2534_v39 = vpop.f32.mrf.mxu2  ;;  %3709 = vmatpush.msrb.mxu3 %v6344_v21 }
 0xe1b   :  { %v2388_v17 = vadd.f32 %v2387_v36, %v6249_v32  ;;  %v2465_v43 = vpop.f32.mrf.mxu1 }
 0xe1c   :  { %v2591_v56 = vpop.f32.mrf.mxu3 }
 0xe1d   :  { %v2460_v63 = vadd.f32 %v2459_v14, %v2388_v17  ;;  %3019 = vmatmul.f32.gmra.mxu0 %v5721_v19  ;;  %3080 = vmatmul.f32.gmra.mxu1 %v5841_v35 }
 0xe1f   :  { %v2535_v24 = vadd.f32 %v2534_v39, %v2460_v63  ;;  %3169 = vmatmul.f32.gmra.mxu2 %v5854_v16  ;;  %v6339_v16 = vld [vmem:[#allocation6 + $0xd0] sm:$0xff] }
 0xe20   :  { %3586 = vmatpush.msrb.mxu0 %v6339_v16  ;;  %3688 = vmatpush.msrb.mxu2 %v6339_v16  ;;  %v6381_v39 = vld [vmem:[#allocation6 + $0xb0] sm:$0xff] }
 0xe21   :  { %v6331_v32 = vadd.f32 %v2591_v56, %v2535_v24  ;;  %3258 = vmatmul.f32.gmra.mxu3 %v5841_v35  ;;  %v6401_v56 = vld [vmem:[#allocation6 + $0xa0] sm:$0xff] }
 0xe22   :  { %v2392_v44 = vpop.f32.mrf.mxu0  ;;  %v2538_v0 = vpop.f32.mrf.mxu2  ;;  %3587 = vmatpush.msrb.mxu0 %v6361_v52  ;;  %3689 = vmatpush.msrb.mxu2 %v6361_v52 }
 0xe23   :  { %v2393_v54 = vadd.f32 %v2392_v44, %v6259_v48  ;;  %v6335_v60 = vpop.f32.mrf.mxu1  ;;  %v6988_v44 = vld [vmem:[#allocation9_spill] sm:$0xff] }
 0xe24   :  { %v2595_v22 = vpop.f32.mrf.mxu3  ;;  %3588 = vmatpush.msrb.mxu0 %v6381_v39  ;;  %3690 = vmatpush.msrb.mxu2 %v6381_v39 }
 0xe25   :  { %v2466_v55 = vadd.f32 %v2465_v43, %v2393_v54  ;;  %3023 = vmatmul.f32.gmra.mxu0 %v5841_v35  ;;  %3362 = vmatmul.f32.vlgmr.msra.gmra.mxu1 %v5595_v5 }
 0xe26   :  { %3589 = vmatpush.msrb.mxu0 %v6401_v56  ;;  %3691 = vmatpush.msrb.mxu2 %v6401_v56 }
 0xe27   :  { %v2539_v53 = vadd.f32 %v2538_v0, %v2466_v55  ;;  %3449 = vmatmul.f32.vlgmr.msra.gmra.mxu2 %v5588_v57  ;;  %v6421_v0 = vld [vmem:[#allocation6 + $0x90] sm:$0xff] }
 0xe28   :  { %3590 = vmatpush.msrb.mxu0 %v6421_v0  ;;  %3692 = vmatpush.msrb.mxu2 %v6421_v0 }
 0xe29   :  { %v6348_v48 = vadd.f32 %v2595_v22, %v2539_v53  ;;  %3506 = vmatmul.f32.vlgmr.msra.gmra.mxu3 %v5588_v57  ;;  %v6366_v57 = vld [vmem:[#allocation6 + $0xb8] sm:$0xff]  ;;  %v6440_v53 = vld [vmem:[#allocation6 + $0x80] sm:$0xff] }
 0xe2a   :  { %v6351_v5 = vpop.f32.mrf.mxu0  ;;  %v6353_v29 = vpop.f32.mrf.mxu2  ;;  %3608 = vmatpush.msrb.mxu1 %v6366_v57  ;;  %3710 = vmatpush.msrb.mxu3 %v6366_v57 }
 0xe2b   :  { %v6355_v14 = vpop.f32.mrf.mxu1  ;;  %3591 = vmatpush.msrb.mxu0 %v6440_v53  ;;  %3693 = vmatpush.msrb.mxu2 %v6440_v53 }
 0xe2c   :  { %v6357_v3 = vpop.f32.mrf.mxu3 }
 0xe2d   :  { %3296 = vmatmul.f32.vlgmr.msra.gmra.mxu0 %v5591_v25  ;;  %3368 = vmatmul.f32.gmra.mxu1 %v5620_v13 }
 0xe2e   :  { %3788 = vmatpush.msra.mxu0 %v6307_v34  ;;  %3890 = vmatpush.msra.mxu2 %v6307_v34 }
 0xe2f   :  { %3453 = vmatmul.f32.gmra.mxu2 %v5597_v8 }
 0xe30   :  { %3789 = vmatpush.msra.mxu0 %v6322_v37  ;;  %3891 = vmatpush.msra.mxu2 %v6322_v37 }
 0xe31   :  { %3510 = vmatmul.f32.gmra.mxu3 %v5597_v8  ;;  %v6386_v8 = vld [vmem:[#allocation6 + $0xa8] sm:$0xff] }
 0xe32   :  { %v6371_v41 = vpop.f32.mrf.mxu0  ;;  %v6373_v25 = vpop.f32.mrf.mxu2  ;;  %3609 = vmatpush.msrb.mxu1 %v6386_v8  ;;  %3711 = vmatpush.msrb.mxu3 %v6386_v8 }
 0xe33   :  { %v6375_v13 = vpop.f32.mrf.mxu1  ;;  %3790 = vmatpush.msra.mxu0 %v6339_v16  ;;  %3892 = vmatpush.msra.mxu2 %v6339_v16 }
 0xe34   :  { %v6377_v36 = vpop.f32.mrf.mxu3 }
 0xe35   :  { %3301 = vmatmul.f32.gmra.mxu0 %v5608_v58  ;;  %3374 = vmatmul.f32.gmra.mxu1 %v5641_v11 }
 0xe36   :  { %3791 = vmatpush.msra.mxu0 %v6361_v52  ;;  %3893 = vmatpush.msra.mxu2 %v6361_v52 }
 0xe37   :  { %3457 = vmatmul.f32.gmra.mxu2 %v5622_v18 }
 0xe38   :  { %3792 = vmatpush.msra.mxu0 %v6381_v39  ;;  %3894 = vmatpush.msra.mxu2 %v6381_v39 }
 0xe39   :  { %3514 = vmatmul.f32.gmra.mxu3 %v5622_v18  ;;  %v6406_v18 = vld [vmem:[#allocation6 + $0x98] sm:$0xff] }
 0xe3a   :  { %v6391_v17 = vpop.f32.mrf.mxu0  ;;  %v6393_v58 = vpop.f32.mrf.mxu2  ;;  %3610 = vmatpush.msrb.mxu1 %v6406_v18  ;;  %3712 = vmatpush.msrb.mxu3 %v6406_v18 }
 0xe3b   :  { %v6395_v11 = vpop.f32.mrf.mxu1  ;;  %3793 = vmatpush.msra.mxu0 %v6401_v56  ;;  %3895 = vmatpush.msra.mxu2 %v6401_v56 }
 0xe3c   :  { %v6397_v43 = vpop.f32.mrf.mxu3 }
 0xe3d   :  { %3306 = vmatmul.f32.gmra.mxu0 %v5633_v10  ;;  %3380 = vmatmul.f32.gmra.mxu1 %v5656_v59 }
 0xe3e   :  { %3794 = vmatpush.msra.mxu0 %v6421_v0  ;;  %3896 = vmatpush.msra.mxu2 %v6421_v0 }
 0xe3f   :  { %3461 = vmatmul.f32.gmra.mxu2 %v5643_v26 }
 0xe40   :  { %3795 = vmatpush.msra.mxu0 %v6440_v53  ;;  %3897 = vmatpush.msra.mxu2 %v6440_v53 }
 0xe41   :  { %3518 = vmatmul.f32.gmra.mxu3 %v5643_v26  ;;  %v6426_v26 = vld [vmem:[#allocation6 + $0x88] sm:$0xff] }
 0xe42   :  { %v6411_v63 = vpop.f32.mrf.mxu0  ;;  %v6413_v10 = vpop.f32.mrf.mxu2  ;;  %3611 = vmatpush.msrb.mxu1 %v6426_v26  ;;  %3713 = vmatpush.msrb.mxu3 %v6426_v26 }
 0xe43   :  { %v6415_v59 = vpop.f32.mrf.mxu1 }
 0xe44   :  { %v6417_v24 = vpop.f32.mrf.mxu3  ;;  %3808 = vmatpush.msra.mxu1 %v6297_v45  ;;  %3910 = vmatpush.msra.mxu3 %v6297_v45 }
 0xe45   :  { %3311 = vmatmul.f32.gmra.mxu0 %v6988_v44  ;;  %3386 = vmatmul.f32.gmra.mxu1 %v5671_v2 }
 0xe46   :  { %3809 = vmatpush.msra.mxu1 %v6312_v51  ;;  %3911 = vmatpush.msra.mxu3 %v6312_v51 }
 0xe47   :  { %3465 = vmatmul.f32.gmra.mxu2 %v5658_v46 }
 0xe48   :  { %3810 = vmatpush.msra.mxu1 %v6327_v47  ;;  %3912 = vmatpush.msra.mxu3 %v6327_v47 }
 0xe49   :  { %3522 = vmatmul.f32.gmra.mxu3 %v5658_v46 }
 0xe4a   :  { %v6432_v54 = vpop.f32.mrf.mxu0  ;;  %v6434_v2 = vpop.f32.mrf.mxu2  ;;  %3811 = vmatpush.msra.mxu1 %v6344_v21  ;;  %3913 = vmatpush.msra.mxu3 %v6344_v21 }
 0xe4b   :  { %v2797_v22 = vpop.f32.mrf.mxu1 }
 0xe4c   :  { %v6438_v55 = vpop.f32.mrf.mxu3  ;;  %3812 = vmatpush.msra.mxu1 %v6366_v57  ;;  %3914 = vmatpush.msra.mxu3 %v6366_v57 }
 0xe4d   :  { %3316 = vmatmul.f32.gmra.mxu0 %v5665_v40  ;;  %3392 = vmatmul.f32.gmra.mxu1 %v5685_v9 }
 0xe4e   :  { %3813 = vmatpush.msra.mxu1 %v6386_v8  ;;  %3915 = vmatpush.msra.mxu3 %v6386_v8 }
 0xe4f   :  { %3469 = vmatmul.f32.gmra.mxu2 %v5673_v61 }
 0xe50   :  { %3814 = vmatpush.msra.mxu1 %v6406_v18  ;;  %3916 = vmatpush.msra.mxu3 %v6406_v18 }
 0xe51   :  { %3526 = vmatmul.f32.gmra.mxu3 %v5673_v61 }
 0xe52   :  { %v2700_v46 = vpop.f32.mrf.mxu0  ;;  %v2868_v40 = vpop.f32.mrf.mxu2  ;;  %3815 = vmatpush.msra.mxu1 %v6426_v26  ;;  %3917 = vmatpush.msra.mxu3 %v6426_v26 }
 0xe53   :  { %v2798_v9 = vadd.f32 %v2797_v22, %v2700_v46  ;;  %v2801_v44 = vpop.f32.mrf.mxu1 }
 0xe54   :  { %v2939_v62 = vpop.f32.mrf.mxu3 }
 0xe55   :  { %v2869_v61 = vadd.f32 %v2868_v40, %v2798_v9  ;;  %3321 = vmatmul.f32.gmra.mxu0 %v5680_v42  ;;  %3398 = vmatmul.f32.gmra.mxu1 %v5728_v1 }
 0xe57   :  { %v6463_v22 = vadd.f32 %v2939_v62, %v2869_v61  ;;  %3473 = vmatmul.f32.gmra.mxu2 %v5721_v19 }
 0xe59   :  { %3530 = vmatmul.f32.gmra.mxu3 %v5721_v19 }
 0xe5a   :  { %v2708_v42 = vpop.f32.mrf.mxu0  ;;  %v2873_v1 = vpop.f32.mrf.mxu2 }
 0xe5b   :  { %v2802_v62 = vadd.f32 %v2801_v44, %v2708_v42  ;;  %v2805_v46 = vpop.f32.mrf.mxu1  ;;  %v2778_v44 = vadd.f32 %v6335_v60, %v6351_v5  ;;  %v6992_v5 = vld [vmem:[#allocation23_spill] sm:$0xff] }
 0xe5c   :  { %v2945_v40 = vpop.f32.mrf.mxu3 }
 0xe5d   :  { %v2874_v9 = vadd.f32 %v2873_v1, %v2802_v62  ;;  %3326 = vmatmul.f32.gmra.mxu0 %v5725_v31  ;;  %3404 = vmatmul.f32.gmra.mxu1 %v5849_v12  ;;  %v6989_v62 = vld [vmem:[#allocation47_spill] sm:$0xff]  ;;  %v2844_v15 = vadd.f32 %v6353_v29, %v2778_v44 }
 0xe5f   :  { %v6480_v19 = vadd.f32 %v2945_v40, %v2874_v9  ;;  %3477 = vmatmul.f32.gmra.mxu2 %v5841_v35  ;;  %v6990_v40 = vld [vmem:[#allocation33_spill] sm:$0xff] }
 0xe60   :  { %v1769_v9 = vadd.f32 %v6990_v40, %v6989_v62  ;;  %v2782_v40 = vadd.f32 %v6355_v14, %v6371_v41  ;;  %v6995_v14 = vld [vmem:[#allocation14_spill] sm:$0xff] }
 0xe61   :  { %3534 = vmatmul.f32.gmra.mxu3 %v5841_v35  ;;  %v6991_v35 = vmov 0.0  }
 0xe62   :  { %v2716_v31 = vpop.f32.mrf.mxu0  ;;  %v2878_v61 = vpop.f32.mrf.mxu2 }
 0xe63   :  { %v2806_v12 = vadd.f32 %v2805_v46, %v2716_v31  ;;  %v3053_v42 = vpop.f32.mrf.mxu1  ;;  %v1862_v46 = vadd.f32 %v6992_v5, %v1769_v9  ;;  %v2910_v31 = vadd.f32 %v6357_v3, %v2844_v15  ;;  %v2849_v9 = vadd.f32 %v6373_v25, %v2782_v40  ;;  %v6996_v5 = vld [vmem:[#allocation48_spill] sm:$0xff] }
 0xe64   :  { %v2951_v1 = vpop.f32.mrf.mxu3 }
 0xe65   :  { %v2879_v23 = vadd.f32 %v2878_v61, %v2806_v12  ;;  %3331 = vmatmul.f32.gmra.mxu0 %v5845_v4  ;;  %3612 = vmatmul.f32.vlgmr.msrb.gmra.mxu1 %v6991_v35  ;;  %v6993_v4 = vld [vmem:[#allocation46_spill] sm:$0xff] }
 0xe66   :  { %4012 = vmatpush.msrb.mxu1 %v6297_v45  ;;  %v1934_v44 = vadd.f32 %v6993_v4, %v1862_v46 }
 0xe67   :  { %v6497_v60 = vadd.f32 %v2951_v1, %v2879_v23  ;;  %v6994_v23 = vld [vmem:[#allocation49_spill] sm:$0xff] }
 0xe68   :  { %4013 = vmatpush.msrb.mxu1 %v6312_v51  ;;  %v1761_v1 = vadd.f32 %v6994_v23, %v6989_v62 }
 0xe6a   :  { %v2996_v6 = vpop.f32.mrf.mxu0  ;;  %v3114_v29 = vpop.f32.mrf.mxu2  ;;  %4014 = vmatpush.msrb.mxu1 %v6327_v47  ;;  %v1858_v25 = vadd.f32 %v6996_v5, %v1761_v1  ;;  %v6999_v1 = vld [vmem:[#allocation32_spill] sm:$0xff] }
 0xe6b   :  { %v2997_v61 = vadd.f32 %v2996_v6, %v2910_v31  ;;  %v3057_v12 = vpop.f32.mrf.mxu1  ;;  %v2006_v6 = vadd.f32 %v6995_v14, %v1934_v44  ;;  %v6998_v44 = vld [vmem:[#allocation43_spill] sm:$0xff]  ;;  %v7000_v14 = vld [vmem:[#allocation42_spill] sm:$0xff] }
 0xe6c   :  { %v3231_v45 = vpop.f32.mrf.mxu3  ;;  %4015 = vmatpush.msrb.mxu1 %v6344_v21 }
 0xe6d   :  { %v3054_v15 = vadd.f32 %v3053_v42, %v2997_v61  ;;  %v6510_v3 = vadd.f32 %v3231_v45, %v3114_v29  ;;  %3592 = vmatmul.f32.vlgmr.msrb.gmra.mxu0 %v6991_v35  ;;  %v2081_v45 = vadd.f32 %v6245_v50, %v2006_v6  ;;  %v2916_v42 = vadd.f32 %v6377_v36, %v2849_v9 }
 0xe6e   :  { %3992 = vmatpush.msrb.mxu0 %v6307_v34  ;;  %4016 = vmatpush.msrb.mxu1 %v6366_v57  ;;  %v2786_v35 = vadd.f32 %v6375_v13, %v6391_v17  ;;  %v1753_v61 = vadd.f32 %v6998_v44, %v6989_v62 }
 0xe6f   :  { %v6517_v41 = vadd.f32 %v3054_v15, %v6257_v38  ;;  %v6997_v38 = vld [vmem:[#allocation22_spill] sm:$0xff]  ;;  %v2138_v50 = vadd.f32 %v6233_v33, %v2081_v45  ;;  %v2790_v33 = vadd.f32 %v6395_v11, %v6411_v63  ;;  %v7001_v45 = vld [vmem:[#allocation12_spill] sm:$0xff]  ;;  %v7003_v63 = vld [vmem:[#allocation13_spill] sm:$0xff] }
 0xe70   :  { %3993 = vmatpush.msrb.mxu0 %v6322_v37  ;;  %4017 = vmatpush.msrb.mxu1 %v6386_v8  ;;  %v1929_v40 = vadd.f32 %v6997_v38, %v1858_v25  ;;  %v2854_v13 = vadd.f32 %v6393_v58, %v2786_v35  ;;  %v1854_v6 = vadd.f32 %v7000_v14, %v1753_v61  ;;  %v7005_v14 = vld [vmem:[#allocation21_spill] sm:$0xff] }
 0xe72   :  { %v3000_v46 = vpop.f32.mrf.mxu0  ;;  %v3122_v31 = vpop.f32.mrf.mxu2  ;;  %3994 = vmatpush.msrb.mxu0 %v6339_v16  ;;  %4018 = vmatpush.msrb.mxu1 %v6406_v18  ;;  %v2000_v9 = vadd.f32 %v6999_v1, %v1929_v40  ;;  %v2922_v25 = vadd.f32 %v6397_v43, %v2854_v13  ;;  %v2859_v43 = vadd.f32 %v6413_v10, %v2790_v33 }
 0xe73   :  { %v3001_v29 = vadd.f32 %v3000_v46, %v2916_v42  ;;  %v3061_v4 = vpop.f32.mrf.mxu1  ;;  %v1924_v42 = vadd.f32 %v7001_v45, %v1854_v6  ;;  %v2794_v1 = vadd.f32 %v6415_v59, %v6432_v54  ;;  %v7008_v54 = vld [vmem:[#allocation39_spill] sm:$0xff] }
 0xe74   :  { %v3235_v23 = vpop.f32.mrf.mxu3  ;;  %3995 = vmatpush.msrb.mxu0 %v6361_v52  ;;  %4019 = vmatpush.msrb.mxu1 %v6426_v26  ;;  %v2077_v5 = vadd.f32 %v6230_v27, %v2000_v9 }
 0xe75   :  { %v3058_v36 = vadd.f32 %v3057_v12, %v3001_v29  ;;  %v6535_v17 = vadd.f32 %v3235_v23, %v3122_v31  ;;  %v7002_v31 = vld [vmem:[#allocation29_spill] sm:$0xff]  ;;  %v1994_v44 = vadd.f32 %v7003_v63, %v1924_v42 }
 0xe76   :  { %3996 = vmatpush.msrb.mxu0 %v6381_v39  ;;  %v1745_v38 = vadd.f32 %v7002_v31, %v6989_v62  ;;  %v2134_v27 = vadd.f32 %v6216_v49, %v2077_v5  ;;  %v7004_v23 = vld [vmem:[#allocation45_spill] sm:$0xff]  ;;  %v7006_v5 = vld [vmem:[#allocation44_spill] sm:$0xff] }
 0xe77   :  { %v6539_v15 = vadd.f32 %v3058_v36, %v2138_v50  ;;  %v2073_v13 = vadd.f32 %v6212_v7, %v1994_v44  ;;  %v2928_v36 = vadd.f32 %v6417_v24, %v2859_v43  ;;  %v7007_v24 = vld [vmem:[#allocation30_spill] sm:$0xff]  ;;  %v7009_v31 = vld [vmem:[#allocation56_spill] sm:$0xff] }
 0xe78   :  { %3997 = vmatpush.msrb.mxu0 %v6401_v56  ;;  %v1850_v50 = vadd.f32 %v7004_v23, %v1745_v38 }
 0xe7a   :  { %v3004_v58 = vpop.f32.mrf.mxu0  ;;  %v3130_v12 = vpop.f32.mrf.mxu2  ;;  %3998 = vmatpush.msrb.mxu0 %v6421_v0  ;;  %v1919_v10 = vadd.f32 %v7005_v14, %v1850_v50  ;;  %v7012_v50 = vld [vmem:[#allocation35_spill] sm:$0xff] }
 0xe7b   :  { %v3005_v35 = vadd.f32 %v3004_v58, %v2922_v25  ;;  %v3065_v46 = vpop.f32.mrf.mxu1  ;;  %v1737_v25 = vadd.f32 %v7006_v5, %v6989_v62  ;;  %v2130_v58 = vadd.f32 %v6197_v28, %v2073_v13 }
 0xe7c   :  { %v3239_v40 = vpop.f32.mrf.mxu3  ;;  %3999 = vmatpush.msrb.mxu0 %v6440_v53  ;;  %v1988_v42 = vadd.f32 %v7007_v24, %v1919_v10 }
 0xe7d   :  { %v3062_v29 = vadd.f32 %v3061_v4, %v3005_v35  ;;  %v6554_v11 = vadd.f32 %v3239_v40, %v3130_v12  ;;  %v2864_v12 = vadd.f32 %v6434_v2, %v2794_v1  ;;  %v1846_v35 = vadd.f32 %v7008_v54, %v1737_v25 }
 0xe7e   :  { %v2069_v38 = vadd.f32 %v7009_v31, %v1988_v42 }
 0xe7f   :  { %v6557_v61 = vadd.f32 %v3062_v29, %v2134_v27  ;;  %v2934_v40 = vadd.f32 %v6438_v55, %v2864_v12  ;;  %v7010_v29 = vld [vmem:[#allocation11_spill] sm:$0xff]  ;;  %v7014_v55 = vld [vmem:[#allocation26_spill] sm:$0xff] }
 0xe80   :  { %v1914_v63 = vadd.f32 %v7010_v29, %v1846_v35  ;;  %v2126_v13 = vadd.f32 %v7012_v50, %v2069_v38  ;;  %v7018_v35 = vld [vmem:[#allocation34_spill] sm:$0xff]  ;;  %v7022_v50 = vld [vmem:[#allocation16_spill] sm:$0xff] }
 0xe82   :  { %v3008_v9 = vpop.f32.mrf.mxu0  ;;  %v3138_v49 = vpop.f32.mrf.mxu2 }
 0xe83   :  { %v3009_v4 = vadd.f32 %v3008_v9, %v2928_v36  ;;  %v3069_v6 = vpop.f32.mrf.mxu1  ;;  %v7013_v9 = vld [vmem:[#allocation20_spill] sm:$0xff] }
 0xe84   :  { %v3243_v33 = vpop.f32.mrf.mxu3 }
 0xe85   :  { %v3066_v7 = vadd.f32 %v3065_v46, %v3009_v4  ;;  %v6569_v45 = vadd.f32 %v3243_v33, %v3138_v49  ;;  %v7011_v46 = vld [vmem:[#allocation38_spill] sm:$0xff]  ;;  %v1982_v49 = vadd.f32 %v7013_v9, %v1914_v63  ;;  %v7015_v4 = vld [vmem:[#allocation55_spill] sm:$0xff]  ;;  %v7020_v63 = vld [vmem:[#allocation40_spill] sm:$0xff] }
 0xe86   :  { %v1729_v23 = vadd.f32 %v7011_v46, %v6989_v62 }
 0xe87   :  { %v6572_v59 = vadd.f32 %v3066_v7, %v2130_v58  ;;  %v2065_v5 = vadd.f32 %v7015_v4, %v1982_v49  ;;  %v7016_v58 = vld [vmem:[#allocation27_spill] sm:$0xff] }
 0xe88   :  { %v1842_v10 = vadd.f32 %v7014_v55, %v1729_v23  ;;  %v7023_v49 = vld [vmem:[#allocation51_spill] sm:$0xff] }
 0xe89   :  { %v2122_v31 = vadd.f32 %v7018_v35, %v2065_v5  ;;  %v7024_v4 = vld [vmem:[#allocation19_spill] sm:$0xff] }
 0xe8a   :  { %v3012_v27 = vpop.f32.mrf.mxu0  ;;  %v3146_v43 = vpop.f32.mrf.mxu2  ;;  %v1909_v12 = vadd.f32 %v7016_v58, %v1842_v10 }
 0xe8b   :  { %v3013_v28 = vadd.f32 %v3012_v27, %v2934_v40  ;;  %v3073_v44 = vpop.f32.mrf.mxu1  ;;  %v7019_v27 = vld [vmem:[#allocation10_spill] sm:$0xff] }
 0xe8c   :  { %v3247_v2 = vpop.f32.mrf.mxu3 }
 0xe8d   :  { %v3070_v36 = vadd.f32 %v3069_v6, %v3013_v28  ;;  %v6581_v1 = vadd.f32 %v3247_v2, %v3146_v43  ;;  %v7017_v6 = vld [vmem:[#allocation41_spill] sm:$0xff]  ;;  %v1976_v43 = vadd.f32 %v7019_v27, %v1909_v12 }
 0xe8e   :  { %v1721_v54 = vadd.f32 %v7017_v6, %v6989_v62  ;;  %v7021_v2 = vld [vmem:[#allocation25_spill] sm:$0xff] }
 0xe8f   :  { %v6584_v14 = vadd.f32 %v3070_v36, %v2126_v13  ;;  %v2061_v46 = vadd.f32 %v7021_v2, %v1976_v43 }
 0xe90   :  { %v1838_v28 = vadd.f32 %v7020_v63, %v1721_v54  ;;  %v7026_v54 = vld [vmem:[#allocation15_spill] sm:$0xff] }
 0xe92   :  { %v3016_v25 = vpop.f32.mrf.mxu0  ;;  %v3154_v33 = vpop.f32.mrf.mxu2  ;;  %v1904_v13 = vadd.f32 %v7022_v50, %v1838_v28 }
 0xe93   :  { %v3017_v7 = vadd.f32 %v3016_v25, %v6463_v22  ;;  %v3077_v24 = vpop.f32.mrf.mxu1 }
 0xe94   :  { %v3251_v42 = vpop.f32.mrf.mxu3  ;;  %v1970_v5 = vadd.f32 %v7024_v4, %v1904_v13 }
 0xe95   :  { %v3074_v38 = vadd.f32 %v3073_v44, %v3017_v7  ;;  %v6593_v40 = vadd.f32 %v3251_v42, %v3154_v33  ;;  %v2118_v44 = vadd.f32 %v7023_v49, %v2061_v46  ;;  %v7025_v33 = vld [vmem:[#allocation24_spill] sm:$0xff] }
 0xe96   :  { %v2057_v58 = vadd.f32 %v7025_v33, %v1970_v5 }
 0xe97   :  { %v6596_v29 = vadd.f32 %v3074_v38, %v2122_v31 }
 0xe98   :  { %v2114_v35 = vadd.f32 %v7026_v54, %v2057_v58 }
 0xe9a   :  { %v3020_v23 = vpop.f32.mrf.mxu0  ;;  %v3162_v22 = vpop.f32.mrf.mxu2 }
 0xe9b   :  { %v3021_v36 = vadd.f32 %v3020_v23, %v6480_v19  ;;  %v3081_v62 = vpop.f32.mrf.mxu1 }
 0xe9c   :  { %v3255_v9 = vpop.f32.mrf.mxu3 }
 0xe9d   :  { %v3078_v55 = vadd.f32 %v3077_v24, %v3021_v36  ;;  %v6603_v10 = vadd.f32 %v3255_v9, %v3162_v22 }
 0xe9f   :  { %v6606_v25 = vadd.f32 %v3078_v55, %v2118_v44 }
 0xea2   :  { %v3024_v12 = vpop.f32.mrf.mxu0  ;;  %v6609_v7 = vpop.f32.mrf.mxu2 }
 0xea3   :  { %v3025_v42 = vadd.f32 %v3024_v12, %v6497_v60  ;;  %v3363_v6 = vpop.f32.mrf.mxu1 }
 0xea4   :  { %v6612_v19 = vpop.f32.mrf.mxu3 }
 0xea5   :  { %v3082_v31 = vadd.f32 %v3081_v62, %v3025_v42 }
 0xea7   :  { %v6615_v24 = vadd.f32 %v3082_v31, %v2114_v35 }
 0xeaa   :  { %v3297_v38 = vpop.f32.mrf.mxu0  ;;  %v3450_v27 = vpop.f32.mrf.mxu2 }
 0xeab   :  { %v3298_v43 = vadd.f32 %v3297_v38, %v6510_v3  ;;  %v3369_v63 = vpop.f32.mrf.mxu1 }
 0xeac   :  { %v3507_v28 = vpop.f32.mrf.mxu3 }
 0xead   :  { %v3364_v2 = vadd.f32 %v3363_v6, %v3298_v43 }
 0xeaf   :  { %v3451_v46 = vadd.f32 %v3450_v27, %v3364_v2 }
 0xeb1   :  { %v3508_v23 = vadd.f32 %v3507_v28, %v3451_v46 }
 0xeb2   :  { %v3302_v22 = vpop.f32.mrf.mxu0  ;;  %v3454_v50 = vpop.f32.mrf.mxu2 }
 0xeb3   :  { %v3303_v60 = vadd.f32 %v3302_v22, %v6535_v17  ;;  %v3375_v13 = vpop.f32.mrf.mxu1  ;;  %v6620_v36 = vadd.f32 %v3508_v23, %v6348_v48 }
 0xeb4   :  { %v3511_v62 = vpop.f32.mrf.mxu3 }
 0xeb5   :  { %v3370_v9 = vadd.f32 %v3369_v63, %v3303_v60 }
 0xeb7   :  { %v3455_v49 = vadd.f32 %v3454_v50, %v3370_v9 }
 0xeb9   :  { %v3512_v44 = vadd.f32 %v3511_v62, %v3455_v49  ;;  %v7027_v62 = vld [vmem:[#allocation18_spill] sm:$0xff] }
 0xeba   :  { %v3307_v55 = vpop.f32.mrf.mxu0  ;;  %v3458_v4 = vpop.f32.mrf.mxu2 }
 0xebb   :  { %v3308_v3 = vadd.f32 %v3307_v55, %v6554_v11  ;;  %v3381_v5 = vpop.f32.mrf.mxu1  ;;  %v6624_v33 = vadd.f32 %v3512_v44, %v6331_v32 }
 0xebc   :  { %v3515_v58 = vpop.f32.mrf.mxu3 }
 0xebd   :  { %v3376_v12 = vadd.f32 %v3375_v13, %v3308_v3 }
 0xebf   :  { %v3459_v42 = vadd.f32 %v3458_v4, %v3376_v12 }
 0xec1   :  { %v3516_v17 = vadd.f32 %v3515_v58, %v3459_v42 }
 0xec2   :  { %v3312_v6 = vpop.f32.mrf.mxu0  ;;  %v3462_v54 = vpop.f32.mrf.mxu2 }
 0xec3   :  { %v3313_v48 = vadd.f32 %v3312_v6, %v6569_v45  ;;  %v6628_v35 = vadd.f32 %v3516_v17, %v6316_v30  ;;  %v3387_v31 = vpop.f32.mrf.mxu1 }
 0xec4   :  { %v3519_v38 = vpop.f32.mrf.mxu3 }
 0xec5   :  { %v3382_v27 = vadd.f32 %v3381_v5, %v3313_v48  ;;  %v7028_v5 = vld [vmem:[#allocation52_spill] sm:$0xff] }
 0xec7   :  { %v3463_v43 = vadd.f32 %v3462_v54, %v3382_v27  ;;  %v7029_v27 = vld [vmem:[#allocation17_spill] sm:$0xff] }
 0xec9   :  { %v3520_v11 = vadd.f32 %v3519_v38, %v3463_v43 }
 0xeca   :  { %v3317_v63 = vpop.f32.mrf.mxu0  ;;  %v3466_v28 = vpop.f32.mrf.mxu2 }
 0xecb   :  { %v3318_v32 = vadd.f32 %v3317_v63, %v6581_v1  ;;  %v6632_v2 = vadd.f32 %v3520_v11, %v6301_v20  ;;  %v3393_v22 = vpop.f32.mrf.mxu1 }
 0xecc   :  { %v3523_v46 = vpop.f32.mrf.mxu3 }
 0xecd   :  { %v3388_v23 = vadd.f32 %v3387_v31, %v3318_v32 }
 0xecf   :  { %v3467_v50 = vadd.f32 %v3466_v28, %v3388_v23 }
 0xed1   :  { %v3524_v45 = vadd.f32 %v3523_v46, %v3467_v50  ;;  %v7030_v50 = vld [vmem:[#allocation50_spill] sm:$0xff] }
 0xed2   :  { %v3322_v60 = vpop.f32.mrf.mxu0  ;;  %v3470_v30 = vpop.f32.mrf.mxu2 }
 0xed3   :  { %v3323_v13 = vadd.f32 %v3322_v60, %v6593_v40  ;;  %v6636_v9 = vadd.f32 %v3524_v45, %v7027_v62  ;;  %v3399_v4 = vpop.f32.mrf.mxu1  ;;  %v3260_v40 = vadd.f32 %v6612_v19, %v6609_v7 }
 0xed4   :  { %v3527_v49 = vpop.f32.mrf.mxu3 }
 0xed5   :  { %v3394_v44 = vadd.f32 %v3393_v22, %v3323_v13 }
 0xed7   :  { %v3471_v55 = vadd.f32 %v3470_v30, %v3394_v44 }
 0xed9   :  { %v3528_v1 = vadd.f32 %v3527_v49, %v3471_v55 }
 0xeda   :  { %v3327_v3 = vpop.f32.mrf.mxu0  ;;  %v3474_v12 = vpop.f32.mrf.mxu2 }
 0xedb   :  { %v3328_v20 = vadd.f32 %v3327_v3, %v6603_v10  ;;  %v6640_v58 = vadd.f32 %v3528_v1, %v7028_v5  ;;  %v3405_v48 = vpop.f32.mrf.mxu1 }
 0xedc   :  { %v3531_v17 = vpop.f32.mrf.mxu3 }
 0xedd   :  { %v3400_v42 = vadd.f32 %v3399_v4, %v3328_v20 }
 0xedf   :  { %v3475_v6 = vadd.f32 %v3474_v12, %v3400_v42 }
 0xee1   :  { %v3532_v54 = vadd.f32 %v3531_v17, %v3475_v6 }
 0xee2   :  { %v3332_v31 = vpop.f32.mrf.mxu0  ;;  %v3478_v63 = vpop.f32.mrf.mxu2 }
 0xee3   :  { %v3333_v38 = vadd.f32 %v3332_v31, %v3260_v40  ;;  %v6645_v43 = vadd.f32 %v3532_v54, %v7029_v27  ;;  %v3613_v23 = vpop.f32.mrf.mxu1 }
 0xee4   :  { %v3535_v28 = vpop.f32.mrf.mxu3 }
 0xee5   :  { %v3406_v11 = vadd.f32 %v3405_v48, %v3333_v38 }
 0xee7   :  { %v3479_v10 = vadd.f32 %v3478_v63, %v3406_v11 }
 0xee9   :  { %v3536_v32 = vadd.f32 %v3535_v28, %v3479_v10 }
 0xeea   :  { %v3593_v46 = vpop.f32.mrf.mxu0 }
 0xeeb   :  { %v3616_v22 = vadd.f32 %v3593_v46, %v6615_v24  ;;  %v3575_v45 = vadd.f32 %v3536_v32, %v7030_v50 }
 0xeed   :  { %v4553_v60 = vmul.f32 -1.442695, %v3616_v22  ;;  %v3617_v7 = vadd.f32 %v3613_v23, %v3575_v45 }
 0xeef   :  { %4685 = vpow2.f32 %v4553_v60  ;;  %v4554_v19 = vmul.f32 -1.442695, %v3617_v7  ;;  %v7031_v7 = vld [vmem:[#allocation53_spill] sm:$0xff] }
 0xef1   :  { %4687 = vpow2.f32 %v4554_v19 }
 0xef5   :  { %v4686_v30 = vpop.eup %4685 }
 0xef6   :  { %v3624_v13 = vadd.f32 1.0, %v4686_v30 }
 0xef7   :  { %v4688_v62 = vpop.eup %4687 }
 0xef8   :  { %4689 = vrcp.f32 %v3624_v13  ;;  %v3625_v49 = vadd.f32 1.0, %v4688_v62  ;;  %v3637_v40 = vand.u32 2147483648, %v3624_v13  ;;  %vm3631_vm14 = vweird.f32 %v3624_v13 }
 0xef9   :  { %v3635_v48 = vand.u32 2147483647, %v3624_v13 }
 0xefa   :  { %4691 = vrcp.f32 %v3625_v49  ;;  %v3652_v5 = vand.u32 2147483648, %v3625_v49  ;;  %v3650_v42 = vand.u32 2147483647, %v3625_v49  ;;  %vm3646_vm12 = vweird.f32 %v3625_v49 }
 0xefb   :  { %v3638_v63 = vor.u32 1.1754944e-38, %v3637_v40  ;;  %vm3636_vm2 = vcmp.eq.f32.partialorder %v3635_v48, 8.507059e+37 }
 0xefc   :  { %v3653_v54 = vor.u32 1.1754944e-38, %v3652_v5  ;;  %vm3651_vm15 = vcmp.eq.f32.partialorder %v3650_v42, 8.507059e+37 }
 0xefe   :  { %v4690_v44 = vpop.eup %4689 }
 0xeff   :  { %v3627_v55 = vmul.f32 %v4690_v44, %v3624_v13  ;;  %vm3632_vm11 = vweird.f32 %v4690_v44 }
 0xf00   :  { %v4692_v4 = vpop.eup %4691  ;;  %vm3633_vm1 = vmor %vm3631_vm14, %vm3632_vm11 }
 0xf01   :  { %v3642_v1 = vmul.f32 %v4692_v4, %v3625_v49  ;;  %v3628_v3 = vsub.f32 1.0, %v3627_v55  ;;  %vm3647_vm10 = vweird.f32 %v4692_v4 }
 0xf02   :  { %vm3648_vm13 = vmor %vm3646_vm12, %vm3647_vm10 }
 0xf03   :  { %v3643_v20 = vsub.f32 1.0, %v3642_v1  ;;  %v3629_v24 = vmul.f32 %v4690_v44, %v3628_v3 }
 0xf05   :  { %v3644_v12 = vmul.f32 %v4692_v4, %v3643_v20  ;;  %v3630_v17 = vadd.f32 %v4690_v44, %v3629_v24 }
 0xf07   :  { %v3645_v6 = vadd.f32 %v4692_v4, %v3644_v12  ;;  %v3634_v27 = vsel %vm3633_vm1, %v4690_v44, %v3630_v17 }
 0xf08   :  { %v3639_v28 = vsel %vm3636_vm2, %v3638_v63, %v3634_v27 }
 0xf09   :  { %v3649_v31 = vsel %vm3648_vm13, %v4692_v4, %v3645_v6  ;;  %v3658_v46 = vmul.f32 0.0, %v3639_v28 }
 0xf0a   :  { %v3654_v38 = vsel %vm3651_vm15, %v3653_v54, %v3649_v31 }
 0xf0b   :  { %v3656_v11 = vmul.f32 2.0, %v3654_v38 }
 0xf0d   :  { %v4555_v10 = vadd.f32 -1.0, %v3656_v11 }
 0xf0f   :  { %v3659_v32 = vmul.f32 %v4555_v10, %v3639_v28 }
 0xf11   :  { %3661 = vrot.lane.b32.xlu1 %v3659_v32, %s4808_s0 }
 0xf83   :  { %v3662_v23 = vpop.permute.xlu1 %3661 }
 0xf84   :  { %v6650_v22 = vadd.f32 %v3662_v23, %v3658_v46 }
 0xf86   :  { %4693 = vtanh.f32 %v6650_v22 }
 0xf8c   :  { %v4694_v50 = vpop.eup %4693 }
 0xf8d   :  { %v6653_v45 = vmul.f32 %v4694_v50, %v3654_v38 }
 0xf8f   :  { %3674 = vrot.lane.b32.xlu2 %v6653_v45, %s4808_s0 }
 0xfe9   :  { %v3675_v60 = vpop.permute.xlu2 %3674 }
 0xfea   :  { %4556 = vmatmul.msk.f32.vlgmr.msrb.gmra.mxu2 %vm835_vm9, %v3675_v60  ;;  %4557 = vmatmul.msk.f32.vlgmr.msrb.gmra.mxu3 %vm835_vm9, %v3675_v60 }
 0xfeb   :  { %4094 = vmatpush.msrb.mxu2 %v6307_v34  ;;  %4114 = vmatpush.msrb.mxu3 %v7031_v7 }
 0xfed   :  { %4095 = vmatpush.msrb.mxu2 %v6322_v37  ;;  %4115 = vmatpush.msrb.mxu3 %v6312_v51 }
 0xfef   :  { %4096 = vmatpush.msrb.mxu2 %v6339_v16  ;;  %4116 = vmatpush.msrb.mxu3 %v6327_v47 }
 0xff1   :  { %4097 = vmatpush.msrb.mxu2 %v6361_v52  ;;  %4117 = vmatpush.msrb.mxu3 %v6344_v21 }
 0xff3   :  { %4098 = vmatpush.msrb.mxu2 %v6381_v39  ;;  %4118 = vmatpush.msrb.mxu3 %v6366_v57 }
 0xff5   :  { %4099 = vmatpush.msrb.mxu2 %v6401_v56  ;;  %4119 = vmatpush.msrb.mxu3 %v6386_v8 }
 0xff7   :  { %4100 = vmatpush.msrb.mxu2 %v6421_v0  ;;  %4120 = vmatpush.msrb.mxu3 %v6406_v18 }
 0xff9   :  { %4101 = vmatpush.msrb.mxu2 %v6440_v53  ;;  %4121 = vmatpush.msrb.mxu3 %v6426_v26 }
0x106d   :  { %v3695_v34 = vpop.f32.mrf.mxu2  ;;  %v3715_v19 = vpop.f32.mrf.mxu3 }
0x106e   :  { %v3718_v30 = vadd.f32 %v3695_v34, %v6606_v25  ;;  %v3719_v13 = vadd.f32 %v3715_v19, %v6645_v43 }
0x1070   :  { %v4558_v62 = vmul.f32 -1.442695, %v3718_v30  ;;  %v4559_v49 = vmul.f32 -1.442695, %v3719_v13  ;;  %v6685_v13 = vld [vmem:[#allocation6 + $0xf0] sm:$0xff] }
0x1072   :  { %4695 = vpow2.f32 %v4558_v62  ;;  %v6688_v62 = vld [vmem:[#allocation6 + $0xf8] sm:$0xff] }
0x1073   :  { %4697 = vpow2.f32 %v4559_v49 }
0x1078   :  { %v4696_v44 = vpop.eup %4695 }
0x1079   :  { %v4698_v55 = vpop.eup %4697  ;;  %v3726_v4 = vadd.f32 1.0, %v4696_v44 }
0x107a   :  { %v3727_v1 = vadd.f32 1.0, %v4698_v55 }
0x107b   :  { %4699 = vrcp.f32 %v3726_v4  ;;  %v3739_v48 = vand.u32 2147483648, %v3726_v4  ;;  %vm3733_vm7 = vweird.f32 %v3726_v4  ;;  %v3737_v38 = vand.u32 2147483647, %v3726_v4 }
0x107c   :  { %4701 = vrcp.f32 %v3727_v1  ;;  %v3754_v25 = vand.u32 2147483648, %v3727_v1  ;;  %v3752_v43 = vand.u32 2147483647, %v3727_v1  ;;  %vm3748_vm5 = vweird.f32 %v3727_v1 }
0x107d   :  { %v3740_v28 = vor.u32 1.1754944e-38, %v3739_v48  ;;  %vm3738_vm11 = vcmp.eq.f32.partialorder %v3737_v38, 8.507059e+37 }
0x107e   :  { %v3755_v31 = vor.u32 1.1754944e-38, %v3754_v25  ;;  %vm3753_vm8 = vcmp.eq.f32.partialorder %v3752_v43, 8.507059e+37 }
0x1081   :  { %v4700_v3 = vpop.eup %4699 }
0x1082   :  { %v4702_v20 = vpop.eup %4701  ;;  %v3729_v24 = vmul.f32 %v4700_v3, %v3726_v4  ;;  %vm3734_vm4 = vweird.f32 %v4700_v3 }
0x1083   :  { %v3744_v5 = vmul.f32 %v4702_v20, %v3727_v1  ;;  %vm3749_vm3 = vweird.f32 %v4702_v20  ;;  %vm3735_vm10 = vmor %vm3733_vm7, %vm3734_vm4 }
0x1084   :  { %v3730_v12 = vsub.f32 1.0, %v3729_v24  ;;  %vm3750_vm6 = vmor %vm3748_vm5, %vm3749_vm3 }
0x1085   :  { %v3745_v42 = vsub.f32 1.0, %v3744_v5 }
0x1086   :  { %v3731_v17 = vmul.f32 %v4700_v3, %v3730_v12 }
0x1087   :  { %v3746_v6 = vmul.f32 %v4702_v20, %v3745_v42 }
0x1088   :  { %v3732_v40 = vadd.f32 %v4700_v3, %v3731_v17 }
0x1089   :  { %v3747_v54 = vadd.f32 %v4702_v20, %v3746_v6 }
0x108a   :  { %v3736_v63 = vsel %vm3735_vm10, %v4700_v3, %v3732_v40 }
0x108b   :  { %v3751_v27 = vsel %vm3750_vm6, %v4702_v20, %v3747_v54  ;;  %v3741_v46 = vsel %vm3738_vm11, %v3740_v28, %v3736_v63 }
0x108c   :  { %v3756_v11 = vsel %vm3753_vm8, %v3755_v31, %v3751_v27  ;;  %v3760_v50 = vmul.f32 %v3741_v46, %v6650_v22 }
0x108d   :  { %v3758_v10 = vmul.f32 2.0, %v3756_v11 }
0x108f   :  { %v4560_v32 = vadd.f32 -1.0, %v3758_v10 }
0x1091   :  { %v3761_v23 = vmul.f32 %v4560_v32, %v3741_v46  ;;  %v4767_v32 = vld [vmem:[#allocation6 + $0xe0] sm:$0xff]  ;;  %v4768_v46 = vld [vmem:[#allocation6 + $0xe8] sm:$0xff] }
0x1093   :  { %3763 = vrot.lane.b32.xlu0 %v3761_v23, %s4808_s0  ;;  %v4769_v23 = vld [vmem:[#allocation6 + $0xd0] sm:$0xff] }
0x1105   :  { %v3764_v60 = vpop.permute.xlu0 %3763 }
0x1106   :  { %v6679_v7 = vadd.f32 %v3764_v60, %v3760_v50  ;;  %v4770_v50 = vld [vmem:[#allocation6 + $0xd8] sm:$0xff]  ;;  %v4771_v60 = vld [vmem:[#allocation6 + $0xc0] sm:$0xff] }
0x1108   :  { %4703 = vtanh.f32 %v6679_v7 }
0x110e   :  { %v4704_v34 = vpop.eup %4703 }
0x110f   :  { %v3768_v19 = vmul.f32 %v4704_v34, %v3756_v11  ;;  %v4773_v34 = vld [vmem:[#allocation6 + $0xb0] sm:$0xff] }
0x1111   :  { %3776 = vrot.lane.b32.xlu1 %v3768_v19, %s4808_s0  ;;  %v4774_v19 = vld [vmem:[#allocation6 + $0xb8] sm:$0xff] }
0x1183   :  { %v3777_v30 = vpop.permute.xlu1 %3776 }
0x1184   :  { %4561 = vmatmul.msk.f32.vlgmr.msra.gmra.mxu0 %vm835_vm9, %v3777_v30  ;;  %4562 = vmatmul.msk.f32.vlgmr.msra.gmra.mxu1 %vm835_vm9, %v3777_v30  ;;  %v4775_v30 = vld [vmem:[#allocation6 + $0xa0] sm:$0xff] }
0x1185   :  { %4196 = vmatpush.msra.mxu0 %v6685_v13  ;;  %4216 = vmatpush.msra.mxu1 %v6688_v62 }
0x1187   :  { %4197 = vmatpush.msra.mxu0 %v6322_v37  ;;  %4217 = vmatpush.msra.mxu1 %v6312_v51 }
0x1189   :  { %4198 = vmatpush.msra.mxu0 %v6339_v16  ;;  %4218 = vmatpush.msra.mxu1 %v6327_v47 }
0x118b   :  { %4199 = vmatpush.msra.mxu0 %v6361_v52  ;;  %4219 = vmatpush.msra.mxu1 %v6344_v21 }
0x118d   :  { %4200 = vmatpush.msra.mxu0 %v6381_v39  ;;  %4220 = vmatpush.msra.mxu1 %v6366_v57 }
0x118f   :  { %4201 = vmatpush.msra.mxu0 %v6401_v56  ;;  %4221 = vmatpush.msra.mxu1 %v6386_v8 }
0x1191   :  { %4202 = vmatpush.msra.mxu0 %v6421_v0  ;;  %4222 = vmatpush.msra.mxu1 %v6406_v18 }
0x1193   :  { %4203 = vmatpush.msra.mxu0 %v6440_v53  ;;  %4223 = vmatpush.msra.mxu1 %v6426_v26 }
0x1201   :  { %v3797_v51 = vpop.f32.mrf.mxu0  ;;  %v3817_v37 = vpop.f32.mrf.mxu1 }
0x1202   :  { %v3820_v47 = vadd.f32 %v3797_v51, %v6596_v29  ;;  %v3821_v16 = vadd.f32 %v3817_v37, %v6640_v58 }
0x1204   :  { %v4563_v21 = vmul.f32 -1.442695, %v3820_v47  ;;  %v4564_v52 = vmul.f32 -1.442695, %v3821_v16 }
0x1206   :  { %4705 = vpow2.f32 %v4563_v21 }
0x1207   :  { %4707 = vpow2.f32 %v4564_v52 }
0x120c   :  { %v4706_v57 = vpop.eup %4705 }
0x120d   :  { %v4708_v39 = vpop.eup %4707  ;;  %v3828_v8 = vadd.f32 1.0, %v4706_v57 }
0x120e   :  { %v3829_v56 = vadd.f32 1.0, %v4708_v39 }
0x120f   :  { %4709 = vrcp.f32 %v3828_v8  ;;  %v3841_v5 = vand.u32 2147483648, %v3828_v8  ;;  %vm3835_vm1 = vweird.f32 %v3828_v8  ;;  %v3839_v42 = vand.u32 2147483647, %v3828_v8 }
0x1210   :  { %4711 = vrcp.f32 %v3829_v56  ;;  %v3856_v29 = vand.u32 2147483648, %v3829_v56  ;;  %v3854_v58 = vand.u32 2147483647, %v3829_v56  ;;  %vm3850_vm14 = vweird.f32 %v3829_v56 }
0x1211   :  { %v3842_v40 = vor.u32 1.1754944e-38, %v3841_v5  ;;  %vm3840_vm4 = vcmp.eq.f32.partialorder %v3839_v42, 8.507059e+37 }
0x1212   :  { %v3857_v12 = vor.u32 1.1754944e-38, %v3856_v29  ;;  %vm3855_vm2 = vcmp.eq.f32.partialorder %v3854_v58, 8.507059e+37 }
0x1215   :  { %v4710_v18 = vpop.eup %4709 }
0x1216   :  { %v4712_v22 = vpop.eup %4711  ;;  %v3831_v49 = vmul.f32 %v4710_v18, %v3828_v8  ;;  %vm3836_vm13 = vweird.f32 %v4710_v18 }
0x1217   :  { %v3846_v44 = vmul.f32 %v4712_v22, %v3829_v56  ;;  %vm3851_vm12 = vweird.f32 %v4712_v22  ;;  %vm3837_vm3 = vmor %vm3835_vm1, %vm3836_vm13 }
0x1218   :  { %v3832_v55 = vsub.f32 1.0, %v3831_v49  ;;  %vm3852_vm15 = vmor %vm3850_vm14, %vm3851_vm12 }
0x1219   :  { %v3847_v4 = vsub.f32 1.0, %v3846_v44 }
0x121a   :  { %v3833_v1 = vmul.f32 %v4710_v18, %v3832_v55 }
0x121b   :  { %v3848_v3 = vmul.f32 %v4712_v22, %v3847_v4 }
0x121c   :  { %v3834_v20 = vadd.f32 %v4710_v18, %v3833_v1 }
0x121d   :  { %v3849_v24 = vadd.f32 %v4712_v22, %v3848_v3 }
0x121e   :  { %v3838_v6 = vsel %vm3837_vm3, %v4710_v18, %v3834_v20 }
0x121f   :  { %v3853_v17 = vsel %vm3852_vm15, %v4712_v22, %v3849_v24  ;;  %v3843_v48 = vsel %vm3840_vm4, %v3842_v40, %v3838_v6 }
0x1220   :  { %v3858_v25 = vsel %vm3855_vm2, %v3857_v12, %v3853_v17  ;;  %v3862_v38 = vmul.f32 %v3843_v48, %v6679_v7  ;;  %v4772_v7 = vld [vmem:[#allocation6 + $0xc8] sm:$0xff] }
0x1221   :  { %v3860_v43 = vmul.f32 2.0, %v3858_v25 }
0x1223   :  { %v4565_v54 = vadd.f32 -1.0, %v3860_v43 }
0x1225   :  { %v3863_v31 = vmul.f32 %v4565_v54, %v3843_v48 }
0x1227   :  { %3865 = vrot.lane.b32.xlu2 %v3863_v31, %s4808_s0 }
0x1281   :  { %v3866_v27 = vpop.permute.xlu2 %3865 }
0x1282   :  { %v6709_v11 = vadd.f32 %v3866_v27, %v3862_v38 }
0x1284   :  { %4713 = vtanh.f32 %v6709_v11 }
0x128a   :  { %v4714_v63 = vpop.eup %4713 }
0x128b   :  { %v3870_v10 = vmul.f32 %v4714_v63, %v3858_v25 }
0x128d   :  { %3878 = vrot.lane.b32.xlu0 %v3870_v10, %s4808_s0 }
0x12ff   :  { %v3879_v28 = vpop.permute.xlu0 %3878 }
0x1300   :  { %4566 = vmatmul.msk.f32.vlgmr.msra.gmra.mxu2 %vm835_vm9, %v3879_v28  ;;  %4567 = vmatmul.msk.f32.vlgmr.msra.gmra.mxu3 %vm835_vm9, %v3879_v28 }
0x1301   :  { %4298 = vmatpush.msra.mxu2 %v6685_v13  ;;  %4318 = vmatpush.msra.mxu3 %v6688_v62  ;;  %v4776_v13 = vld [vmem:[#allocation6 + $0xa8] sm:$0xff]  ;;  %v4777_v62 = vld [vmem:[#allocation6 + $0x98] sm:$0xff] }
0x1303   :  { %4299 = vmatpush.msra.mxu2 %v4767_v32  ;;  %4319 = vmatpush.msra.mxu3 %v4768_v46 }
0x1305   :  { %4300 = vmatpush.msra.mxu2 %v4769_v23  ;;  %4320 = vmatpush.msra.mxu3 %v4770_v50 }
0x1307   :  { %4301 = vmatpush.msra.mxu2 %v4771_v60  ;;  %4321 = vmatpush.msra.mxu3 %v4772_v7 }
0x1309   :  { %4302 = vmatpush.msra.mxu2 %v4773_v34  ;;  %4322 = vmatpush.msra.mxu3 %v4774_v19 }
0x130b   :  { %4303 = vmatpush.msra.mxu2 %v4775_v30  ;;  %4323 = vmatpush.msra.mxu3 %v4776_v13 }
0x130d   :  { %4304 = vmatpush.msra.mxu2 %v6421_v0  ;;  %4324 = vmatpush.msra.mxu3 %v4777_v62 }
0x130f   :  { %4305 = vmatpush.msra.mxu2 %v6440_v53  ;;  %4325 = vmatpush.msra.mxu3 %v6426_v26 }
0x1383   :  { %v3899_v51 = vpop.f32.mrf.mxu2  ;;  %v3919_v37 = vpop.f32.mrf.mxu3 }
0x1384   :  { %v3922_v47 = vadd.f32 %v3899_v51, %v6584_v14  ;;  %v3923_v16 = vadd.f32 %v3919_v37, %v6636_v9 }
0x1386   :  { %v4568_v21 = vmul.f32 -1.442695, %v3922_v47  ;;  %v4569_v52 = vmul.f32 -1.442695, %v3923_v16 }
0x1388   :  { %4715 = vpow2.f32 %v4568_v21 }
0x1389   :  { %4717 = vpow2.f32 %v4569_v52 }
0x138e   :  { %v4716_v57 = vpop.eup %4715 }
0x138f   :  { %v4718_v39 = vpop.eup %4717  ;;  %v3930_v8 = vadd.f32 1.0, %v4716_v57 }
0x1390   :  { %v3931_v0 = vadd.f32 1.0, %v4718_v39 }
0x1391   :  { %4719 = vrcp.f32 %v3930_v8  ;;  %v3943_v29 = vand.u32 2147483648, %v3930_v8  ;;  %vm3937_vm10 = vweird.f32 %v3930_v8  ;;  %v3941_v58 = vand.u32 2147483647, %v3930_v8 }
0x1392   :  { %4721 = vrcp.f32 %v3931_v0  ;;  %v3958_v14 = vand.u32 2147483648, %v3931_v0  ;;  %v3956_v9 = vand.u32 2147483647, %v3931_v0  ;;  %vm3952_vm7 = vweird.f32 %v3931_v0 }
0x1393   :  { %v3944_v42 = vor.u32 1.1754944e-38, %v3943_v29  ;;  %vm3942_vm13 = vcmp.eq.f32.partialorder %v3941_v58, 8.507059e+37 }
0x1394   :  { %v3959_v3 = vor.u32 1.1754944e-38, %v3958_v14  ;;  %vm3957_vm11 = vcmp.eq.f32.partialorder %v3956_v9, 8.507059e+37 }
0x1397   :  { %v4720_v56 = vpop.eup %4719 }
0x1398   :  { %v4722_v53 = vpop.eup %4721  ;;  %v3933_v18 = vmul.f32 %v4720_v56, %v3930_v8  ;;  %vm3938_vm6 = vweird.f32 %v4720_v56 }
0x1399   :  { %v3948_v26 = vmul.f32 %v4722_v53, %v3931_v0  ;;  %vm3953_vm5 = vweird.f32 %v4722_v53  ;;  %vm3939_vm12 = vmor %vm3937_vm10, %vm3938_vm6 }
0x139a   :  { %v3934_v22 = vsub.f32 1.0, %v3933_v18  ;;  %vm3954_vm8 = vmor %vm3952_vm7, %vm3953_vm5 }
0x139b   :  { %v3949_v49 = vsub.f32 1.0, %v3948_v26 }
0x139c   :  { %v3935_v44 = vmul.f32 %v4720_v56, %v3934_v22 }
0x139d   :  { %v3950_v55 = vmul.f32 %v4722_v53, %v3949_v49 }
0x139e   :  { %v3936_v4 = vadd.f32 %v4720_v56, %v3935_v44 }
0x139f   :  { %v3951_v1 = vadd.f32 %v4722_v53, %v3950_v55 }
0x13a0   :  { %v3940_v5 = vsel %vm3939_vm12, %v4720_v56, %v3936_v4 }
0x13a1   :  { %v3955_v20 = vsel %vm3954_vm8, %v4722_v53, %v3951_v1  ;;  %v3945_v25 = vsel %vm3942_vm13, %v3944_v42, %v3940_v5 }
0x13a2   :  { %v3960_v24 = vsel %vm3957_vm11, %v3959_v3, %v3955_v20  ;;  %v3964_v43 = vmul.f32 %v3945_v25, %v6709_v11 }
0x13a3   :  { %v3962_v12 = vmul.f32 2.0, %v3960_v24 }
0x13a5   :  { %v4570_v17 = vadd.f32 -1.0, %v3962_v12 }
0x13a7   :  { %v3965_v6 = vmul.f32 %v4570_v17, %v3945_v25 }
0x13a9   :  { %3967 = vrot.lane.b32.xlu1 %v3965_v6, %s4808_s0 }
0x141b   :  { %v3968_v40 = vpop.permute.xlu1 %3967 }
0x141c   :  { %v3970_v54 = vadd.f32 %v3968_v40, %v3964_v43 }
0x141e   :  { %4723 = vtanh.f32 %v3970_v54 }
0x1424   :  { %v4724_v48 = vpop.eup %4723 }
0x1425   :  { %v3972_v31 = vmul.f32 %v4724_v48, %v3960_v24 }
0x1427   :  { %3980 = vrot.lane.b32.xlu2 %v3972_v31, %s4808_s0 }
0x1481   :  { %v3981_v38 = vpop.permute.xlu2 %3980 }
0x1482   :  { %4571 = vmatmul.msk.f32.vlgmr.msrb.gmra.mxu0 %vm835_vm9, %v3981_v38  ;;  %4572 = vmatmul.msk.f32.vlgmr.msrb.gmra.mxu1 %vm835_vm9, %v3981_v38 }
0x14ff   :  { %v4001_v27 = vpop.f32.mrf.mxu0  ;;  %v4021_v63 = vpop.f32.mrf.mxu1 }
0x1500   :  { %v4024_v10 = vadd.f32 %v4001_v27, %v6572_v59  ;;  %v4025_v28 = vadd.f32 %v4021_v63, %v6632_v2 }
0x1502   :  { %v4573_v32 = vmul.f32 -1.442695, %v4024_v10  ;;  %v4574_v11 = vmul.f32 -1.442695, %v4025_v28 }
0x1504   :  { %4725 = vpow2.f32 %v4573_v32 }
0x1505   :  { %4727 = vpow2.f32 %v4574_v11 }
0x150a   :  { %v4726_v46 = vpop.eup %4725 }
0x150b   :  { %v4728_v23 = vpop.eup %4727  ;;  %v4032_v50 = vadd.f32 1.0, %v4726_v46 }
0x150c   :  { %v4033_v60 = vadd.f32 1.0, %v4728_v23 }
0x150d   :  { %4729 = vrcp.f32 %v4032_v50  ;;  %v4045_v21 = vand.u32 2147483648, %v4032_v50  ;;  %vm4039_vm3 = vweird.f32 %v4032_v50  ;;  %v4043_v57 = vand.u32 2147483647, %v4032_v50 }
0x150e   :  { %4731 = vrcp.f32 %v4033_v60  ;;  %v4060_v59 = vand.u32 2147483648, %v4033_v60  ;;  %v4058_v2 = vand.u32 2147483647, %v4033_v60  ;;  %vm4054_vm1 = vweird.f32 %v4033_v60 }
0x150f   :  { %v4046_v53 = vor.u32 1.1754944e-38, %v4045_v21  ;;  %vm4044_vm6 = vcmp.eq.f32.partialorder %v4043_v57, 8.507059e+37 }
0x1510   :  { %v4061_v52 = vor.u32 1.1754944e-38, %v4060_v59  ;;  %vm4059_vm4 = vcmp.eq.f32.partialorder %v4058_v2, 8.507059e+37 }
0x1513   :  { %v4730_v7 = vpop.eup %4729 }
0x1514   :  { %v4732_v34 = vpop.eup %4731  ;;  %v4035_v19 = vmul.f32 %v4730_v7, %v4032_v50  ;;  %vm4040_vm15 = vweird.f32 %v4730_v7 }
0x1515   :  { %v4050_v30 = vmul.f32 %v4732_v34, %v4033_v60  ;;  %vm4055_vm14 = vweird.f32 %v4732_v34  ;;  %vm4041_vm5 = vmor %vm4039_vm3, %vm4040_vm15 }
0x1516   :  { %v4036_v13 = vsub.f32 1.0, %v4035_v19  ;;  %vm4056_vm2 = vmor %vm4054_vm1, %vm4055_vm14 }
0x1517   :  { %v4051_v62 = vsub.f32 1.0, %v4050_v30 }
0x1518   :  { %v4037_v51 = vmul.f32 %v4730_v7, %v4036_v13 }
0x1519   :  { %v4052_v37 = vmul.f32 %v4732_v34, %v4051_v62 }
0x151a   :  { %v4038_v47 = vadd.f32 %v4730_v7, %v4037_v51 }
0x151b   :  { %v4053_v16 = vadd.f32 %v4732_v34, %v4052_v37 }
0x151c   :  { %v4042_v0 = vsel %vm4041_vm5, %v4730_v7, %v4038_v47 }
0x151d   :  { %v4057_v39 = vsel %vm4056_vm2, %v4732_v34, %v4053_v16  ;;  %v4047_v26 = vsel %vm4044_vm6, %v4046_v53, %v4042_v0 }
0x151e   :  { %v4062_v8 = vsel %vm4059_vm4, %v4061_v52, %v4057_v39  ;;  %v4066_v49 = vmul.f32 %v4047_v26, %v3970_v54 }
0x151f   :  { %v4064_v56 = vmul.f32 2.0, %v4062_v8 }
0x1521   :  { %v4575_v18 = vadd.f32 -1.0, %v4064_v56 }
0x1523   :  { %v4067_v22 = vmul.f32 %v4575_v18, %v4047_v26 }
0x1525   :  { %4069 = vrot.lane.b32.xlu0 %v4067_v22, %s4808_s0 }
0x1597   :  { %v4070_v44 = vpop.permute.xlu0 %4069 }
0x1598   :  { %v4072_v14 = vadd.f32 %v4070_v44, %v4066_v49 }
0x159a   :  { %4733 = vtanh.f32 %v4072_v14 }
0x15a0   :  { %v4734_v55 = vpop.eup %4733 }
0x15a1   :  { %v4074_v9 = vmul.f32 %v4734_v55, %v4062_v8 }
0x15a3   :  { %4082 = vrot.lane.b32.xlu1 %v4074_v9, %s4808_s0 }
0x1615   :  { %v4083_v4 = vpop.permute.xlu1 %4082 }
0x1616   :  { %4576 = vmatmul.msk.f32.vlgmr.msrb.gmra.mxu2 %vm835_vm9, %v4083_v4  ;;  %4577 = vmatmul.msk.f32.vlgmr.msrb.gmra.mxu3 %vm835_vm9, %v4083_v4 }
0x1699   :  { %v4103_v1 = vpop.f32.mrf.mxu2  ;;  %v4123_v29 = vpop.f32.mrf.mxu3 }
0x169a   :  { %v4126_v3 = vadd.f32 %v4103_v1, %v6557_v61  ;;  %v4127_v58 = vadd.f32 %v4123_v29, %v6628_v35 }
0x169c   :  { %v4578_v20 = vmul.f32 -1.442695, %v4126_v3  ;;  %v4579_v24 = vmul.f32 -1.442695, %v4127_v58 }
0x169e   :  { %4735 = vpow2.f32 %v4578_v20 }
0x169f   :  { %4737 = vpow2.f32 %v4579_v24 }
0x16a4   :  { %v4736_v5 = vpop.eup %4735 }
0x16a5   :  { %v4738_v12 = vpop.eup %4737  ;;  %v4134_v42 = vadd.f32 1.0, %v4736_v5 }
0x16a6   :  { %v4135_v17 = vadd.f32 1.0, %v4738_v12 }
0x16a7   :  { %4739 = vrcp.f32 %v4134_v42  ;;  %v4147_v10 = vand.u32 2147483648, %v4134_v42  ;;  %vm4141_vm12 = vweird.f32 %v4134_v42  ;;  %v4145_v32 = vand.u32 2147483647, %v4134_v42 }
0x16a8   :  { %4741 = vrcp.f32 %v4135_v17  ;;  %v4162_v61 = vand.u32 2147483648, %v4135_v17  ;;  %v4160_v35 = vand.u32 2147483647, %v4135_v17  ;;  %vm4156_vm10 = vweird.f32 %v4135_v17 }
0x16a9   :  { %v4148_v60 = vor.u32 1.1754944e-38, %v4147_v10  ;;  %vm4146_vm15 = vcmp.eq.f32.partialorder %v4145_v32, 8.507059e+37 }
0x16aa   :  { %v4163_v28 = vor.u32 1.1754944e-38, %v4162_v61  ;;  %vm4161_vm13 = vcmp.eq.f32.partialorder %v4160_v35, 8.507059e+37  ;;  %v4388_v61 = vld [vmem:[%s6819_s3 + $0x38] sm:$0xff]  ;;  %v4386_v35 = vld [vmem:[%s6819_s3 + $0x28] sm:$0xff] }
0x16ad   :  { %v4740_v25 = vpop.eup %4739 }
0x16ae   :  { %v4742_v6 = vpop.eup %4741  ;;  %v4137_v43 = vmul.f32 %v4740_v25, %v4134_v42  ;;  %vm4142_vm8 = vweird.f32 %v4740_v25 }
0x16af   :  { %v4152_v40 = vmul.f32 %v4742_v6, %v4135_v17  ;;  %vm4157_vm7 = vweird.f32 %v4742_v6  ;;  %vm4143_vm14 = vmor %vm4141_vm12, %vm4142_vm8 }
0x16b0   :  { %v4138_v54 = vsub.f32 1.0, %v4137_v43  ;;  %vm4158_vm11 = vmor %vm4156_vm10, %vm4157_vm7  ;;  %vm4426_vm10 = vcmask 261120  }
0x16b1   :  { %v4153_v48 = vsub.f32 1.0, %v4152_v40 }
0x16b2   :  { %v4139_v31 = vmul.f32 %v4740_v25, %v4138_v54 }
0x16b3   :  { %v4154_v38 = vmul.f32 %v4742_v6, %v4153_v48 }
0x16b4   :  { %v4140_v27 = vadd.f32 %v4740_v25, %v4139_v31  ;;  %v4389_v31 = vld [vmem:[%s6819_s3 + $0x40] sm:$0xff] }
0x16b5   :  { %v4155_v63 = vadd.f32 %v4742_v6, %v4154_v38  ;;  %4441 = vmatpush.msrb.mxu1 %v4389_v31  ;;  %v4387_v38 = vld [vmem:[%s6819_s3 + $0x30] sm:$0xff] }
0x16b6   :  { %v4144_v23 = vsel %vm4143_vm14, %v4740_v25, %v4140_v27 }
0x16b7   :  { %v4159_v11 = vsel %vm4158_vm11, %v4742_v6, %v4155_v63  ;;  %v4149_v34 = vsel %vm4146_vm15, %v4148_v60, %v4144_v23  ;;  %4442 = vmatpush.msrb.mxu1 %v4388_v61  ;;  %v4381_v23 = vld [vmem:[%s6819_s3] sm:$0xff] }
0x16b8   :  { %v4164_v46 = vsel %vm4161_vm13, %v4163_v28, %v4159_v11  ;;  %v4168_v30 = vmul.f32 %v4149_v34, %v4072_v14  ;;  %4418 = vmatpush.msrb.mxu0 %v4381_v23 }
0x16b9   :  { %v4166_v50 = vmul.f32 2.0, %v4164_v46  ;;  %4443 = vmatpush.msrb.mxu1 %v4387_v38  ;;  %v4603_v38 = vld [vmem:[%s6819_s3 + $0x68] ss:$0 sm:$0xff] }
0x16bb   :  { %v4580_v7 = vadd.f32 -1.0, %v4166_v50  ;;  %4444 = vmatpush.msrb.mxu1 %v4386_v35  ;;  %v4398_v50 = vld [vmem:[%s6817_s1] sm:$0xff] }
0x16bd   :  { %v4169_v19 = vmul.f32 %v4580_v7, %v4149_v34 }
0x16bf   :  { %4171 = vrot.lane.b32.xlu2 %v4169_v19, %s4808_s0 }
0x1719   :  { %v4172_v13 = vpop.permute.xlu2 %4171 }
0x171a   :  { %v4174_v62 = vadd.f32 %v4172_v13, %v4168_v30 }
0x171c   :  { %4743 = vtanh.f32 %v4174_v62 }
0x1722   :  { %v4744_v51 = vpop.eup %4743 }
0x1723   :  { %v4176_v59 = vmul.f32 %v4744_v51, %v4164_v46 }
0x1725   :  { %4184 = vrot.lane.b32.xlu0 %v4176_v59, %s4808_s0 }
0x1797   :  { %v4185_v37 = vpop.permute.xlu0 %4184 }
0x1798   :  { %4581 = vmatmul.msk.f32.vlgmr.msra.gmra.mxu0 %vm835_vm9, %v4185_v37  ;;  %4582 = vmatmul.msk.f32.vlgmr.msra.gmra.mxu1 %vm835_vm9, %v4185_v37 }
0x17a0   :  { %4591 = vmatmul.msk.f32.vlgmr.msrb.gmra.mxu0 %vm50_vm0, %v4398_v50 }
0x1815   :  { %v4205_v2 = vpop.f32.mrf.mxu0  ;;  %v4225_v47 = vpop.f32.mrf.mxu1 }
0x1816   :  { %v4228_v16 = vadd.f32 %v4205_v2, %v6539_v15  ;;  %v4229_v21 = vadd.f32 %v4225_v47, %v6624_v33 }
0x1818   :  { %v4583_v52 = vmul.f32 -1.442695, %v4228_v16  ;;  %v4584_v57 = vmul.f32 -1.442695, %v4229_v21 }
0x181a   :  { %4745 = vpow2.f32 %v4583_v52 }
0x181b   :  { %4747 = vpow2.f32 %v4584_v57 }
0x1820   :  { %v4746_v39 = vpop.eup %4745 }
0x1821   :  { %v4748_v8 = vpop.eup %4747  ;;  %v4236_v0 = vadd.f32 1.0, %v4746_v39 }
0x1822   :  { %v4237_v56 = vadd.f32 1.0, %v4748_v8 }
0x1823   :  { %4749 = vrcp.f32 %v4236_v0  ;;  %v4249_v1 = vand.u32 2147483648, %v4236_v0  ;;  %vm4243_vm5 = vweird.f32 %v4236_v0  ;;  %v4247_v3 = vand.u32 2147483647, %v4236_v0 }
0x1824   :  { %4751 = vrcp.f32 %v4237_v56  ;;  %v4264_v15 = vand.u32 2147483648, %v4237_v56  ;;  %v4262_v33 = vand.u32 2147483647, %v4237_v56  ;;  %vm4258_vm3 = vweird.f32 %v4237_v56 }
0x1825   :  { %v4250_v12 = vor.u32 1.1754944e-38, %v4249_v1  ;;  %vm4248_vm8 = vcmp.eq.f32.partialorder %v4247_v3, 8.507059e+37 }
0x1826   :  { %v4265_v29 = vor.u32 1.1754944e-38, %v4264_v15  ;;  %vm4263_vm6 = vcmp.eq.f32.partialorder %v4262_v33, 8.507059e+37  ;;  %v4393_v15 = vld [vmem:[%s6819_s3 + $0x60] sm:$0xff]  ;;  %v4383_v33 = vld [vmem:[%s6819_s3 + $0x10] sm:$0xff] }
0x1827   :  { %4489 = vmatpush.msrb.mxu3 %v4393_v15 }
0x1829   :  { %v4750_v53 = vpop.eup %4749 }
0x182a   :  { %v4752_v18 = vpop.eup %4751  ;;  %v4239_v26 = vmul.f32 %v4750_v53, %v4236_v0  ;;  %vm4244_vm2 = vweird.f32 %v4750_v53 }
0x182b   :  { %v4254_v22 = vmul.f32 %v4752_v18, %v4237_v56  ;;  %vm4259_vm1 = vweird.f32 %v4752_v18  ;;  %vm4245_vm7 = vmor %vm4243_vm5, %vm4244_vm2  ;;  %vm4508_vm2 = vcmask 7168  }
0x182c   :  { %v4240_v49 = vsub.f32 1.0, %v4239_v26  ;;  %vm4260_vm4 = vmor %vm4258_vm3, %vm4259_vm1 }
0x182d   :  { %v4255_v44 = vsub.f32 1.0, %v4254_v22 }
0x182e   :  { %v4241_v14 = vmul.f32 %v4750_v53, %v4240_v49 }
0x182f   :  { %v4256_v55 = vmul.f32 %v4752_v18, %v4255_v44  ;;  %v4385_v44 = vld [vmem:[%s6819_s3 + $0x20] sm:$0xff] }
0x1830   :  { %v4242_v9 = vadd.f32 %v4750_v53, %v4241_v14  ;;  %v4384_v14 = vld [vmem:[%s6819_s3 + $0x18] sm:$0xff]  ;;  %4466 = vmatpush.msrb.mxu2 %v4385_v44 }
0x1831   :  { %v4257_v4 = vadd.f32 %v4752_v18, %v4256_v55  ;;  %v4392_v55 = vld [vmem:[%s6819_s3 + $0x58] sm:$0xff] }
0x1832   :  { %v4246_v24 = vsel %vm4245_vm7, %v4750_v53, %v4242_v9  ;;  %v4391_v9 = vld [vmem:[%s6819_s3 + $0x50] sm:$0xff]  ;;  %4467 = vmatpush.msrb.mxu2 %v4384_v14  ;;  %4490 = vmatpush.msrb.mxu3 %v4392_v55 }
0x1833   :  { %v4261_v58 = vsel %vm4260_vm4, %v4752_v18, %v4257_v4  ;;  %v4251_v17 = vsel %vm4248_vm8, %v4250_v12, %v4246_v24  ;;  %v4382_v4 = vld [vmem:[%s6819_s3 + $0x8] sm:$0xff] }
0x1834   :  { %v4266_v20 = vsel %vm4263_vm6, %v4265_v29, %v4261_v58  ;;  %v4270_v6 = vmul.f32 %v4251_v17, %v4174_v62  ;;  %4468 = vmatpush.msrb.mxu2 %v4383_v33  ;;  %4491 = vmatpush.msrb.mxu3 %v4391_v9  ;;  %v4601_v24 = vld [vmem:[%s6819_s3 + $0x69] ss:$0 sm:$0xff] }
0x1835   :  { %v4268_v5 = vmul.f32 2.0, %v4266_v20 }
0x1836   :  { %4469 = vmatpush.msrb.mxu2 %v4382_v4 }
0x1837   :  { %v4585_v42 = vadd.f32 -1.0, %v4268_v5  ;;  %v4420_v5 = vpop.f32.mrf.mxu0 }
0x1838   :  { %v4421_v12 = vadd.f32 %v4601_v24, %v4420_v5 }
0x1839   :  { %v4271_v25 = vmul.f32 %v4585_v42, %v4251_v17  ;;  %v4390_v17 = vld [vmem:[%s6819_s3 + $0x48] sm:$0xff] }
0x183a   :  { %v4423_v42 = vmax.f32 %v4421_v12, 0.0  ;;  %4492 = vmatpush.msrb.mxu3 %v4390_v17 }
0x183b   :  { %4273 = vrot.lane.b32.xlu1 %v4271_v25, %s4808_s0 }
0x18ad   :  { %v4274_v43 = vpop.permute.xlu1 %4273 }
0x18ae   :  { %v6742_v40 = vadd.f32 %v4274_v43, %v4270_v6 }
0x18b0   :  { %4753 = vtanh.f32 %v6742_v40 }
0x18b6   :  { %v4754_v54 = vpop.eup %4753 }
0x18b7   :  { %v4278_v48 = vmul.f32 %v4754_v54, %v4266_v20 }
0x18b9   :  { %4286 = vrot.lane.b32.xlu2 %v4278_v48, %s4808_s0  ;;  %v4602_v48 = vld [vmem:[%s6819_s3 + $0x6a] ss:$0 sm:$0xff] }
0x18c1   :  { %4424 = vrot.lane.b32.xlu2 %v6653_v45, %s4809_s11 }
0x1913   :  { %v4287_v45 = vpop.permute.xlu2 %4286 }
0x1914   :  { %4586 = vmatmul.msk.f32.vlgmr.msra.gmra.mxu2 %vm835_vm9, %v4287_v45  ;;  %4587 = vmatmul.msk.f32.vlgmr.msra.gmra.mxu3 %vm835_vm9, %v4287_v45 }
0x191b   :  { %v4425_v27 = vpop.permute.xlu2 %4424 }
0x191c   :  { %4592 = vmatmul.msk.f32.vlgmr.msrb.gmra.mxu1 %vm4426_vm10, %v4425_v27  ;;  %4594 = vmatmul.msk.f32.vlgmr.msrb.gmra.mxu3 %vm4426_vm10, %v4423_v42 }
0x1997   :  { %v4307_v63 = vpop.f32.mrf.mxu2  ;;  %v4327_v10 = vpop.f32.mrf.mxu3 }
0x1998   :  { %v4330_v28 = vadd.f32 %v4307_v63, %v6517_v41  ;;  %v4331_v32 = vadd.f32 %v4327_v10, %v6620_v36  ;;  %v4604_v63 = vld [vmem:[%s6819_s3 + $0x6b] ss:$0 sm:$0xff] }
0x1999   :  { %v4446_v6 = vpop.f32.mrf.mxu1 }
0x199a   :  { %v4588_v11 = vmul.f32 -1.442695, %v4330_v28  ;;  %v4589_v46 = vmul.f32 -1.442695, %v4331_v32 }
0x199c   :  { %4755 = vpow2.f32 %v4588_v11 }
0x199d   :  { %4757 = vpow2.f32 %v4589_v46 }
0x19a2   :  { %v4756_v60 = vpop.eup %4755 }
0x19a3   :  { %v4758_v7 = vpop.eup %4757  ;;  %v4338_v41 = vadd.f32 1.0, %v4756_v60 }
0x19a4   :  { %v4339_v34 = vadd.f32 1.0, %v4758_v7 }
0x19a5   :  { %4759 = vrcp.f32 %v4338_v41  ;;  %v4351_v52 = vand.u32 2147483648, %v4338_v41  ;;  %vm4345_vm13 = vweird.f32 %v4338_v41  ;;  %v4349_v39 = vand.u32 2147483647, %v4338_v41 }
0x19a6   :  { %4761 = vrcp.f32 %v4339_v34  ;;  %v4366_v37 = vand.u32 2147483648, %v4339_v34  ;;  %v4364_v47 = vand.u32 2147483647, %v4339_v34  ;;  %vm4360_vm0 = vweird.f32 %v4339_v34 }
0x19a7   :  { %v4352_v18 = vor.u32 1.1754944e-38, %v4351_v52  ;;  %vm4350_vm1 = vcmp.eq.f32.partialorder %v4349_v39, 8.507059e+37 }
0x19a8   :  { %v4367_v57 = vor.u32 1.1754944e-38, %v4366_v37  ;;  %vm4365_vm14 = vcmp.eq.f32.partialorder %v4364_v47, 8.507059e+37 }
0x19ab   :  { %v4760_v36 = vpop.eup %4759 }
0x19ac   :  { %v4762_v19 = vpop.eup %4761  ;;  %v4341_v30 = vmul.f32 %v4760_v36, %v4338_v41  ;;  %vm4346_vm11 = vweird.f32 %v4760_v36 }
0x19ad   :  { %v4356_v13 = vmul.f32 %v4762_v19, %v4339_v34  ;;  %vm4361_vm9 = vweird.f32 %v4762_v19  ;;  %vm4347_vm15 = vmor %vm4345_vm13, %vm4346_vm11 }
0x19ae   :  { %v4342_v62 = vsub.f32 1.0, %v4341_v30  ;;  %vm4362_vm12 = vmor %vm4360_vm0, %vm4361_vm9 }
0x19af   :  { %v4357_v51 = vsub.f32 1.0, %v4356_v13 }
0x19b0   :  { %v4343_v59 = vmul.f32 %v4760_v36, %v4342_v62 }
0x19b1   :  { %v4358_v2 = vmul.f32 %v4762_v19, %v4357_v51 }
0x19b2   :  { %v4344_v16 = vadd.f32 %v4760_v36, %v4343_v59 }
0x19b3   :  { %v4359_v21 = vadd.f32 %v4762_v19, %v4358_v2 }
0x19b4   :  { %v4348_v56 = vsel %vm4347_vm15, %v4760_v36, %v4344_v16 }
0x19b5   :  { %v4363_v8 = vsel %vm4362_vm12, %v4762_v19, %v4359_v21  ;;  %v4353_v22 = vsel %vm4350_vm1, %v4352_v18, %v4348_v56 }
0x19b6   :  { %v4368_v0 = vsel %vm4365_vm14, %v4367_v57, %v4363_v8  ;;  %v4372_v1 = vmul.f32 %v4353_v22, %v6742_v40  ;;  %v4494_v40 = vpop.f32.mrf.mxu3 }
0x19b7   :  { %v4370_v53 = vmul.f32 2.0, %v4368_v0 }
0x19b9   :  { %v4590_v26 = vadd.f32 -1.0, %v4370_v53 }
0x19bb   :  { %v4373_v49 = vmul.f32 %v4590_v26, %v4353_v22 }
0x19bd   :  { %4375 = vrot.lane.b32.xlu0 %v4373_v49, %s4808_s0 }
0x1a2f   :  { %v4376_v29 = vpop.permute.xlu0 %4375 }
0x1a30   :  { %v4378_v3 = vadd.f32 %v4376_v29, %v4372_v1 }
0x1a32   :  { %4763 = vtanh.f32 %v4378_v3 }
0x1a38   :  { %v4764_v58 = vpop.eup %4763 }
0x1a39   :  { %v4380_v20 = vmul.f32 %v4764_v58, %v4368_v0 }
0x1a3b   :  { %4450 = vrot.lane.b32.xlu1 %v4380_v20, %s4808_s0 }
0x1aad   :  { %v4451_v25 = vpop.permute.xlu1 %4450 }
0x1aae   :  { %4593 = vmatmul.msk.f32.vlgmr.msrb.gmra.mxu2 %vm4426_vm10, %v4451_v25 }
0x1b31   :  { %v4471_v43 = vpop.f32.mrf.mxu2 }
0x1b32   :  { %v4472_v54 = vadd.f32 %v4471_v43, %v4446_v6 }
0x1b34   :  { %v4497_v31 = vadd.f32 %v4494_v40, %v4472_v54 }
0x1b36   :  { %v4499_v61 = vadd.f32 %v4602_v48, %v4497_v31 }
0x1b38   :  { %v4500_v35 = vmax.f32 %v4499_v61, 0.0 }
0x1b3a   :  { %v4502_v45 = vmul.f32 %v4603_v38, %v4500_v35 }
0x1b3c   :  { %v4503_v27 = vsel %vm4426_vm10, %v4502_v45, 0.0 }
0x1b3d   :  { %4504 = vadd.xlane.f32.xlu0 %v4503_v27 }
0x1bb0   :  { %v4505_v10 = vpop.xlane.xlu0 %4504 }
0x1bb1   :  { %v4507_v28 = vadd.f32 %v4604_v63, %v4505_v10 }
0x1bb3   :  { %4509 = vst.msk [vmem:[%s6820_s4] sm:$0xff] %vm4508_vm2, %v4507_v28 }
0x1bb4   :  { %4514 = vsyncpa [#allocation7], 1 }

</bundles_post_ra>
